<compile_context>
chip_gen: v7x
topology: tpu7x:2x2x1
jax: 0.10.0
libtpu: 0.0.40
codegen_flags: <defaults>
</compile_context>

<pallas_src>
import functools
import math

import jax
import jax.numpy as jnp
from jax import lax
from jax.experimental import pallas as pl
from jax.experimental.pallas import tpu as pltpu

_NEG_INF = -1e30
_VMEM_LIMIT = 32 * 1024 * 1024


def _tile(dim_size, preferred):
    """Preferred tile if it divides the dim, else fall back to the full dim."""
    return preferred if dim_size % preferred == 0 else dim_size


# ----------------------------------------------------------------------------
# Tiled linear kernel:  o = x @ W^T + b       (W stored as (Out, In), bf16 I/O)
# ----------------------------------------------------------------------------
def _linear_kernel(x_ref, w_ref, b_ref, o_ref, acc_ref):
    @pl.when(pl.program_id(2) == 0)
    def _init():
        acc_ref[...] = jnp.zeros(acc_ref.shape, jnp.float32)

    acc_ref[...] += lax.dot_general(
        x_ref[...], w_ref[...], (((1,), (1,)), ((), ())),
        preferred_element_type=jnp.float32)

    @pl.when(pl.program_id(2) == pl.num_programs(2) - 1)
    def _store():
        o_ref[...] = (acc_ref[...] + b_ref[...]).astype(o_ref.dtype)


def linear(x, w, b, *, tm=128, tn=128, tkc=256):
    """x: (S, In) bf16, w: (Out, In) bf16, b: (Out,) f32 -> (S, Out) bf16."""
    S, In = x.shape
    Out = w.shape[0]
    tm, tn, tkc = _tile(S, tm), _tile(Out, tn), _tile(In, tkc)
    grid = (S // tm, Out // tn, In // tkc)
    return pl.pallas_call(
        _linear_kernel,
        out_shape=jax.ShapeDtypeStruct((S, Out), jnp.bfloat16),
        grid=grid,
        in_specs=[
            pl.BlockSpec((tm, tkc), lambda i, j, k: (i, k)),
            pl.BlockSpec((tn, tkc), lambda i, j, k: (j, k)),
            pl.BlockSpec((1, tn), lambda i, j, k: (0, j)),
        ],
        out_specs=pl.BlockSpec((tm, tn), lambda i, j, k: (i, j)),
        scratch_shapes=[pltpu.VMEM((tm, tn), jnp.float32)],
        compiler_params=pltpu.CompilerParams(
            dimension_semantics=("parallel", "parallel", "arbitrary"),
            vmem_limit_bytes=_VMEM_LIMIT),
        cost_estimate=pl.CostEstimate(
            flops=int(2 * S * In * Out),
            transcendentals=0,
            bytes_accessed=int(2 * (S * In + In * Out + S * Out) + 4 * Out)),
    )(x, w, b.reshape(1, Out).astype(jnp.float32))


# ----------------------------------------------------------------------------
# Rotary kernel (vision variant): rotates Q and K once per token.
#   q_out = (q*cos + rotate_half(q)*sin) / sqrt(D)     (scale folded into Q)
#   k_out =  k*cos + rotate_half(k)*sin
# The rotate_half sign is folded into the sin table ([-sin, sin]).
# ----------------------------------------------------------------------------
def _rotary_kernel(q_ref, k_ref, cos_ref, sin_ref, qo_ref, ko_ref,
                   *, num_heads, head_dim, scale):
    H, D = num_heads, head_dim
    h2 = D // 2
    cos = cos_ref[...]                           # (tm, D) f32
    sin = sin_ref[...]                           # (tm, D) f32, sign folded
    q = q_ref[...].astype(jnp.float32)           # (tm, dim)
    k = k_ref[...].astype(jnp.float32)
    q_parts, k_parts = [], []
    for h in range(H):                           # once per token: cheap
        qh = q[:, h * D:(h + 1) * D]
        kh = k[:, h * D:(h + 1) * D]
        qh_r = jnp.concatenate([qh[:, h2:], qh[:, :h2]], axis=-1)
        kh_r = jnp.concatenate([kh[:, h2:], kh[:, :h2]], axis=-1)
        q_parts.append((qh * cos + qh_r * sin) * scale)
        k_parts.append(kh * cos + kh_r * sin)
    qo_ref[...] = jnp.concatenate(q_parts, axis=-1).astype(qo_ref.dtype)
    ko_ref[...] = jnp.concatenate(k_parts, axis=-1).astype(ko_ref.dtype)


def rotary_qk(qkv, cos_f, sin_f, *, num_heads, head_dim, scale, tm=128):
    S = qkv.shape[0]
    dim = num_heads * head_dim
    tm = _tile(S, tm)
    kernel = functools.partial(_rotary_kernel, num_heads=num_heads,
                               head_dim=head_dim, scale=scale)
    return pl.pallas_call(
        kernel,
        out_shape=(jax.ShapeDtypeStruct((S, dim), jnp.bfloat16),
                   jax.ShapeDtypeStruct((S, dim), jnp.bfloat16)),
        grid=(S // tm,),
        in_specs=[
            pl.BlockSpec((tm, dim), lambda i: (i, 0)),        # Q cols of QKV
            pl.BlockSpec((tm, dim), lambda i: (i, 1)),        # K cols of QKV
            pl.BlockSpec((tm, head_dim), lambda i: (i, 0)),
            pl.BlockSpec((tm, head_dim), lambda i: (i, 0)),
        ],
        out_specs=(pl.BlockSpec((tm, dim), lambda i: (i, 0)),
                   pl.BlockSpec((tm, dim), lambda i: (i, 0))),
        compiler_params=pltpu.CompilerParams(
            dimension_semantics=("parallel",),
            vmem_limit_bytes=_VMEM_LIMIT),
        cost_estimate=pl.CostEstimate(
            flops=int(8 * S * dim),
            transcendentals=0,
            bytes_accessed=int(2 * 4 * S * dim + 4 * 2 * S * head_dim)),
    )(qkv, qkv, cos_f, sin_f)


# ----------------------------------------------------------------------------
# Flash attention kernel (varlen / block-diagonal, non-causal).
# Q/K already rotated (and Q pre-scaled); V read directly from the QKV slab.
# Grid = (num_q_tiles, num_kv_tiles); all heads handled per tile.
# ----------------------------------------------------------------------------
def _flash_kernel(qmin_ref, qmax_ref, kmin_ref, kmax_ref,          # SMEM prefetch
                  q_ref, k_ref, v_ref,                             # (tq|tk, dim) bf16
                  qseg_ref, kseg_ref,                              # segment ids
                  o_ref,                                           # (tq, dim) bf16
                  m_ref, l_ref, acc_ref,                           # scratch
                  *, num_heads, head_dim):
    qi = pl.program_id(0)
    ki = pl.program_id(1)
    nk = pl.num_programs(1)
    H, D = num_heads, head_dim

    @pl.when(ki == 0)
    def _init():
        m_ref[...] = jnp.full(m_ref.shape, _NEG_INF, jnp.float32)
        l_ref[...] = jnp.zeros(l_ref.shape, jnp.float32)
        acc_ref[...] = jnp.zeros(acc_ref.shape, jnp.float32)

    # Skip kv tiles whose segment range does not intersect this q tile's range.
    overlap = jnp.logical_and(qmin_ref[qi] <= kmax_ref[ki],
                              kmin_ref[ki] <= qmax_ref[qi])

    @pl.when(overlap)
    def _compute():
        mask = qseg_ref[...] == kseg_ref[...]      # (tq,1)==(1,tk) -> (tq,tk)
        q_all = q_ref[...]                         # rotated + 1/sqrt(D) scaled
        k_all = k_ref[...]
        v_all = v_ref[...]

        # TODO(synk): for H=16 switch to lax.fori_loop to bound vreg live ranges.
        for h in range(H):
            q = q_all[:, h * D:(h + 1) * D]
            k = k_all[:, h * D:(h + 1) * D]
            v = v_all[:, h * D:(h + 1) * D]

            s = lax.dot_general(q, k, (((1,), (1,)), ((), ())),
                                preferred_element_type=jnp.float32)
            s = jnp.where(mask, s, _NEG_INF)

            m_prev = m_ref[h]
            l_prev = l_ref[h]
            m_new = jnp.maximum(m_prev, jnp.max(s, axis=-1, keepdims=True))
            alpha = jnp.exp(m_prev - m_new)
            # NOTE: this second mask is required: rows fully masked within an
            # overlapping kv tile have s - m_new == 0 (exp -> 1) while m is
            # still -inf-ish; do not "simplify" it away.
            p = jnp.where(mask, jnp.exp(s - m_new), 0.0)

            l_ref[h] = alpha * l_prev + jnp.sum(p, axis=-1, keepdims=True)
            acc_ref[h] = alpha * acc_ref[h] + jnp.dot(
                p.astype(jnp.bfloat16), v, preferred_element_type=jnp.float32)
            m_ref[h] = m_new

    @pl.when(ki == nk - 1)
    def _finalize():
        parts = []
        for h in range(H):
            inv_l = pl.reciprocal(l_ref[h], approx=True)
            parts.append(acc_ref[h] * inv_l)
        # single lane-dense (tq, dim) store
        o_ref[...] = jnp.concatenate(parts, axis=-1).astype(o_ref.dtype)


def flash_varlen_attention(q_rot, k_rot, qkv, seg_ids,
                           *, num_heads, head_dim, tq=128, tk=128):
    S, dim = q_rot.shape
    assert dim == num_heads * head_dim
    tq, tk = _tile(S, tq), _tile(S, tk)
    nq, nk = S // tq, S // tk

    q_seg = seg_ids.reshape(S, 1)
    k_seg = seg_ids.reshape(1, S)
    q_min = seg_ids.reshape(nq, tq).min(axis=1)
    q_max = seg_ids.reshape(nq, tq).max(axis=1)
    k_min = seg_ids.reshape(nk, tk).min(axis=1)
    k_max = seg_ids.reshape(nk, tk).max(axis=1)

    kernel = functools.partial(_flash_kernel, num_heads=num_heads,
                               head_dim=head_dim)
    return pl.pallas_call(
        kernel,
        out_shape=jax.ShapeDtypeStruct((S, dim), jnp.bfloat16),
        grid_spec=pltpu.PrefetchScalarGridSpec(
            num_scalar_prefetch=4,
            grid=(nq, nk),
            in_specs=[
                pl.BlockSpec((tq, dim), lambda qi, ki, *_: (qi, 0)),   # Q (rot)
                pl.BlockSpec((tk, dim), lambda qi, ki, *_: (ki, 0)),   # K (rot)
                pl.BlockSpec((tk, dim), lambda qi, ki, *_: (ki, 2)),   # V from QKV
                pl.BlockSpec((tq, 1), lambda qi, ki, *_: (qi, 0)),     # q seg ids
                pl.BlockSpec((1, tk), lambda qi, ki, *_: (0, ki)),     # k seg ids
            ],
            out_specs=pl.BlockSpec((tq, dim), lambda qi, ki, *_: (qi, 0)),
            scratch_shapes=[
                pltpu.VMEM((num_heads, tq, 1), jnp.float32),           # m
                pltpu.VMEM((num_heads, tq, 1), jnp.float32),           # l
                pltpu.VMEM((num_heads, tq, head_dim), jnp.float32),    # acc
            ]),
        compiler_params=pltpu.CompilerParams(
            dimension_semantics=("parallel", "arbitrary"),
            vmem_limit_bytes=_VMEM_LIMIT),
        cost_estimate=pl.CostEstimate(
            flops=int(4 * S * S * dim),
            transcendentals=int(S * S * num_heads),
            # Q read once per q tile, K and V re-read nq times, O written once.
            bytes_accessed=int(2 * S * dim * (2 + 2 * nq) + 8 * S)),
    )(q_min, q_max, k_min, k_max, q_rot, k_rot, qkv, q_seg, k_seg)


# ----------------------------------------------------------------------------
# Full VisionFlashAttention2 forward.
# ----------------------------------------------------------------------------
def vision_flash_attention2(hidden_states, cu_seqlens, rotary_pos_emb, params,
                            num_heads, tile=128):
    S, dim = hidden_states.shape
    head_dim = dim // num_heads

    # Pad S to a multiple of the tile size; padded tokens get their own
    # segment id (searchsorted naturally assigns them `num_segments`).
    s_pad = ((S + tile - 1) // tile) * tile
    pad = s_pad - S
    x = jnp.pad(hidden_states.astype(jnp.bfloat16), ((0, pad), (0, 0)))
    freqs = jnp.pad(rotary_pos_emb.astype(jnp.float32), ((0, pad), (0, 0)))

    qkv_w = params["qkv_w"].astype(jnp.bfloat16)
    qkv_b = params["qkv_b"].astype(jnp.float32)
    proj_w = params["proj_w"].astype(jnp.bfloat16)
    proj_b = params["proj_b"].astype(jnp.float32)

    # QKV projection -> (s_pad, 3*dim) bf16, consumed with no transposes.
    qkv = linear(x, qkv_w, qkv_b)

    # Rotary tables: rotate_half sign folded into sin; 1/sqrt(D) folded into Q.
    cos_f = jnp.concatenate([jnp.cos(freqs), jnp.cos(freqs)], axis=-1)
    sin_f = jnp.concatenate([-jnp.sin(freqs), jnp.sin(freqs)], axis=-1)
    scale = 1.0 / math.sqrt(head_dim)
    q_rot, k_rot = rotary_qk(qkv, cos_f, sin_f, num_heads=num_heads,
                             head_dim=head_dim, scale=scale, tm=tile)

    # Per-token segment ids from cu_seqlens (varlen block-diagonal attention).
    # TODO(synk): flash_attn_varlen's max_seqlen .item() host sync is not
    # needed; the mask/skip logic is derived from cu_seqlens on device.
    pos = jnp.arange(s_pad, dtype=jnp.int32)
    seg_ids = jnp.searchsorted(cu_seqlens[1:], pos, side="right").astype(jnp.int32)

    attn = flash_varlen_attention(q_rot, k_rot, qkv, seg_ids,
                                  num_heads=num_heads, head_dim=head_dim,
                                  tq=tile, tk=tile)

    # Output projection, then strip padding.
    out = linear(attn, proj_w, proj_b)
    return out[:S].astype(hidden_states.dtype)


# ----------------------------------------------------------------------------
# Pure-JAX reference (mirrors the PyTorch module) for a sanity check.
# ----------------------------------------------------------------------------
def _reference(hidden_states, cu_seqlens, rotary_pos_emb, params, num_heads):
    S, dim = hidden_states.shape
    hd = dim // num_heads
    qkv = hidden_states @ params["qkv_w"].T + params["qkv_b"]
    qkv = qkv.reshape(S, 3, num_heads, hd)
    q, k, v = qkv[:, 0], qkv[:, 1], qkv[:, 2]          # (S, H, hd)

    freqs = rotary_pos_emb
    cos = jnp.concatenate([jnp.cos(freqs), jnp.cos(freqs)], -1)[:, None, :]
    sin = jnp.concatenate([jnp.sin(freqs), jnp.sin(freqs)], -1)[:, None, :]

    def rot_half(x):
        x1, x2 = x[..., : hd // 2], x[..., hd // 2:]
        return jnp.concatenate([-x2, x1], -1)

    q = q * cos + rot_half(q) * sin
    k = k * cos + rot_half(k) * sin

    pos = jnp.arange(S)
    seg = jnp.searchsorted(cu_seqlens[1:], pos, side="right")
    mask = seg[:, None] == seg[None, :]

    scores = jnp.einsum("qhd,khd->hqk", q, k) / (hd ** 0.5)
    scores = jnp.where(mask[None], scores, -1e9)
    p = jax.nn.softmax(scores, axis=-1)
    out = jnp.einsum("hqk,khd->qhd", p, v).reshape(S, dim)
    return out @ params["proj_w"].T + params["proj_b"]


if __name__ == "__main__":
    # Small but representative shapes consistent with the module.
    SEQ = 256
    DIM = 128
    NUM_HEADS = 2
    HEAD_DIM = DIM // NUM_HEADS

    key = jax.random.PRNGKey(0)
    k_x, k_r, k_w1, k_b1, k_w2, k_b2 = jax.random.split(key, 6)

    hidden_states = jax.random.normal(k_x, (SEQ, DIM), dtype=jnp.float32)
    rotary_pos_emb = jax.random.normal(k_r, (SEQ, HEAD_DIM // 2),
                                       dtype=jnp.float32)
    # Three variable-length sequences -> exercises in-kernel mask AND tile skip.
    cu_seqlens = jnp.array([0, 128, 160, SEQ], dtype=jnp.int32)

    params = {
        "qkv_w": 0.05 * jax.random.normal(k_w1, (3 * DIM, DIM), jnp.float32),
        "qkv_b": 0.05 * jax.random.normal(k_b1, (3 * DIM,), jnp.float32),
        "proj_w": 0.05 * jax.random.normal(k_w2, (DIM, DIM), jnp.float32),
        "proj_b": 0.05 * jax.random.normal(k_b2, (DIM,), jnp.float32),
    }

    fwd = functools.partial(vision_flash_attention2, num_heads=NUM_HEADS)
    out = jax.jit(fwd)(hidden_states, cu_seqlens, rotary_pos_emb, params)
    out = jax.block_until_ready(out)

    ref = _reference(hidden_states, cu_seqlens, rotary_pos_emb, params,
                     NUM_HEADS)
    assert out.shape == (SEQ, DIM)
    max_err = float(jnp.max(jnp.abs(out - ref)))
    # bf16 kernel I/O + bf16 MXU operands + approx reciprocal -> relaxed tol.
    assert jnp.allclose(out, ref, rtol=3e-2, atol=3e-2), max_err

    print("KERNEL_OK")
</pallas_src>

<mosaic_0001>
module attributes {stable_mosaic.version = 11 : i64} {
  func.func @_linear_kernel(%arg0: i32, %arg1: i32, %arg2: i32, %arg3: memref<128x128xbf16, #tpu.memory_space<vmem>>, %arg4: memref<128x128xbf16, #tpu.memory_space<vmem>>, %arg5: memref<1x128xf32, #tpu.memory_space<vmem>>, %arg6: memref<128x128xbf16, #tpu.memory_space<vmem>>, %arg7: memref<128x128xf32, #tpu.memory_space<vmem>>) attributes {dimension_semantics = [#tpu.dimension_semantics<parallel>, #tpu.dimension_semantics<parallel>, #tpu.dimension_semantics<arbitrary>], iteration_bounds = array<i64: 2, 3, 1>, scalar_prefetch = 0 : i64, scratch_operands = 1 : i64, tpu.core_type = #tpu.core_type<tc>, window_params = [{transform_indices = @transform_0, window_bounds = array<i64: 128, 128>}, {transform_indices = @transform_1, window_bounds = array<i64: 128, 128>}, {transform_indices = @transform_2, window_bounds = array<i64: 1, 128>}, {transform_indices = @transform_3, window_bounds = array<i64: 128, 128>}]} {
    %c0_i32 = arith.constant 0 : i32
    %0 = arith.cmpi eq, %arg2, %c0_i32 : i32
    %1 = arith.extui %0 : i1 to i32
    %c0_i32_0 = arith.constant 0 : i32
    %2 = arith.cmpi ne, %1, %c0_i32_0 : i32
    scf.if %2 {
      %cst_10 = arith.constant 0.000000e+00 : f32
      %12 = vector.broadcast %cst_10 : f32 to vector<128x128xf32>
      %c0_11 = arith.constant 0 : index
      %c0_12 = arith.constant 0 : index
      %13 = vector.load %arg7[%c0_11, %c0_12] : memref<128x128xf32, #tpu.memory_space<vmem>>, vector<128x128xf32>
      tpu.vector_store %arg7[%c0_11, %c0_12], %12 {strides = array<i32>} : memref<128x128xf32, #tpu.memory_space<vmem>>, vector<128x128xf32>,
    } else {
    }
    %c0 = arith.constant 0 : index
    %c0_1 = arith.constant 0 : index
    %3 = vector.load %arg7[%c0, %c0_1] : memref<128x128xf32, #tpu.memory_space<vmem>>, vector<128x128xf32>
    %c0_2 = arith.constant 0 : index
    %c0_3 = arith.constant 0 : index
    %4 = vector.load %arg3[%c0_2, %c0_3] : memref<128x128xbf16, #tpu.memory_space<vmem>>, vector<128x128xbf16>
    %c0_4 = arith.constant 0 : index
    %c0_5 = arith.constant 0 : index
    %5 = vector.load %arg4[%c0_4, %c0_5] : memref<128x128xbf16, #tpu.memory_space<vmem>>, vector<128x128xbf16>
    %cst = arith.constant dense<0.000000e+00> : vector<128x128xf32>
    %6 = tpu.matmul %4, %5, %cst {dimension_numbers = #tpu.dot_dimension_numbers<[1], [1], [0], [0], [0, 0, 1, 0], [], []>} : vector<128x128xbf16>, vector<128x128xbf16>, vector<128x128xf32> -> vector<128x128xf32>
    %7 = arith.addf %3, %6 : vector<128x128xf32>
    %c0_6 = arith.constant 0 : index
    %c0_7 = arith.constant 0 : index
    %8 = vector.load %arg7[%c0_6, %c0_7] : memref<128x128xf32, #tpu.memory_space<vmem>>, vector<128x128xf32>
    tpu.vector_store %arg7[%c0_6, %c0_7], %7 {strides = array<i32>} : memref<128x128xf32, #tpu.memory_space<vmem>>, vector<128x128xf32>,
    %c0_i32_8 = arith.constant 0 : i32
    %9 = arith.cmpi eq, %arg2, %c0_i32_8 : i32
    %10 = arith.extui %9 : i1 to i32
    %c0_i32_9 = arith.constant 0 : i32
    %11 = arith.cmpi ne, %10, %c0_i32_9 : i32
    scf.if %11 {
      %c0_10 = arith.constant 0 : index
      %c0_11 = arith.constant 0 : index
      %12 = vector.load %arg7[%c0_10, %c0_11] : memref<128x128xf32, #tpu.memory_space<vmem>>, vector<128x128xf32>
      %c0_12 = arith.constant 0 : index
      %c0_13 = arith.constant 0 : index
      %13 = vector.load %arg5[%c0_12, %c0_13] : memref<1x128xf32, #tpu.memory_space<vmem>>, vector<1x128xf32>
      %14 = vector.broadcast %13 : vector<1x128xf32> to vector<128x128xf32>
      %15 = arith.addf %12, %14 : vector<128x128xf32>
      %16 = arith.truncf %15 : vector<128x128xf32> to vector<128x128xbf16>
      %c0_14 = arith.constant 0 : index
      %c0_15 = arith.constant 0 : index
      %17 = vector.load %arg6[%c0_14, %c0_15] : memref<128x128xbf16, #tpu.memory_space<vmem>>, vector<128x128xbf16>
      tpu.vector_store %arg6[%c0_14, %c0_15], %16 {strides = array<i32>} : memref<128x128xbf16, #tpu.memory_space<vmem>>, vector<128x128xbf16>,
    } else {
    }
    return
  }
  func.func @transform_0(%arg0: i32, %arg1: i32, %arg2: i32) -> (i32, i32) {
    %c0_i32 = arith.constant 0 : i32
    return %arg0, %arg2 : i32, i32
  }
  func.func @transform_1(%arg0: i32, %arg1: i32, %arg2: i32) -> (i32, i32) {
    %c0_i32 = arith.constant 0 : i32
    return %arg1, %arg2 : i32, i32
  }
  func.func @transform_2(%arg0: i32, %arg1: i32, %arg2: i32) -> (i32, i32) {
    %c0_i32 = arith.constant 0 : i32
    %c0_i32_0 = arith.constant 0 : i32
    return %c0_i32, %arg1 : i32, i32
  }
  func.func @transform_3(%arg0: i32, %arg1: i32, %arg2: i32) -> (i32, i32) {
    %c0_i32 = arith.constant 0 : i32
    return %arg0, %arg1 : i32, i32
  }
}

module attributes {stable_mosaic.version = 11 : i64} {
  func.func @_rotary_kernel(%arg0: i32, %arg1: memref<128x128xbf16, #tpu.memory_space<vmem>>, %arg2: memref<128x128xbf16, #tpu.memory_space<vmem>>, %arg3: memref<128x64xf32, #tpu.memory_space<vmem>>, %arg4: memref<128x64xf32, #tpu.memory_space<vmem>>, %arg5: memref<128x128xbf16, #tpu.memory_space<vmem>>, %arg6: memref<128x128xbf16, #tpu.memory_space<vmem>>) attributes {dimension_semantics = [#tpu.dimension_semantics<parallel>], iteration_bounds = array<i64: 2>, scalar_prefetch = 0 : i64, scratch_operands = 0 : i64, tpu.core_type = #tpu.core_type<tc>, window_params = [{transform_indices = @transform_0, window_bounds = array<i64: 128, 128>}, {transform_indices = @transform_1, window_bounds = array<i64: 128, 128>}, {transform_indices = @transform_2, window_bounds = array<i64: 128, 64>}, {transform_indices = @transform_3, window_bounds = array<i64: 128, 64>}, {transform_indices = @transform_4, window_bounds = array<i64: 128, 128>}, {transform_indices = @transform_5, window_bounds = array<i64: 128, 128>}]} {
    %c0 = arith.constant 0 : index
    %c0_0 = arith.constant 0 : index
    %0 = vector.load %arg3[%c0, %c0_0] : memref<128x64xf32, #tpu.memory_space<vmem>>, vector<128x64xf32>
    %c0_1 = arith.constant 0 : index
    %c0_2 = arith.constant 0 : index
    %1 = vector.load %arg4[%c0_1, %c0_2] : memref<128x64xf32, #tpu.memory_space<vmem>>, vector<128x64xf32>
    %c0_3 = arith.constant 0 : index
    %c0_4 = arith.constant 0 : index
    %2 = vector.load %arg1[%c0_3, %c0_4] : memref<128x128xbf16, #tpu.memory_space<vmem>>, vector<128x128xbf16>
    %3 = arith.extf %2 : vector<128x128xbf16> to vector<128x128xf32>
    %c0_5 = arith.constant 0 : index
    %c0_6 = arith.constant 0 : index
    %4 = vector.load %arg2[%c0_5, %c0_6] : memref<128x128xbf16, #tpu.memory_space<vmem>>, vector<128x128xbf16>
    %5 = arith.extf %4 : vector<128x128xbf16> to vector<128x128xf32>
    %6 = vector.extract_strided_slice %3 {offsets = [0, 0], sizes = [128, 64], strides = [1, 1]} : vector<128x128xf32> to vector<128x64xf32>
    %7 = vector.extract_strided_slice %5 {offsets = [0, 0], sizes = [128, 64], strides = [1, 1]} : vector<128x128xf32> to vector<128x64xf32>
    %8 = vector.extract_strided_slice %6 {offsets = [0, 32], sizes = [128, 32], strides = [1, 1]} : vector<128x64xf32> to vector<128x32xf32>
    %9 = vector.extract_strided_slice %6 {offsets = [0, 0], sizes = [128, 32], strides = [1, 1]} : vector<128x64xf32> to vector<128x32xf32>
    %10 = tpu.concatenate %8, %9 in 1 : vector<128x32xf32>, vector<128x32xf32> -> vector<128x64xf32>
    %11 = vector.extract_strided_slice %7 {offsets = [0, 32], sizes = [128, 32], strides = [1, 1]} : vector<128x64xf32> to vector<128x32xf32>
    %12 = vector.extract_strided_slice %7 {offsets = [0, 0], sizes = [128, 32], strides = [1, 1]} : vector<128x64xf32> to vector<128x32xf32>
    %13 = tpu.concatenate %11, %12 in 1 : vector<128x32xf32>, vector<128x32xf32> -> vector<128x64xf32>
    %14 = arith.mulf %6, %0 : vector<128x64xf32>
    %15 = arith.mulf %10, %1 : vector<128x64xf32>
    %16 = arith.addf %14, %15 : vector<128x64xf32>
    %cst = arith.constant 1.250000e-01 : f32
    %17 = vector.broadcast %cst : f32 to vector<128x64xf32>
    %18 = arith.mulf %16, %17 : vector<128x64xf32>
    %19 = arith.mulf %7, %0 : vector<128x64xf32>
    %20 = arith.mulf %13, %1 : vector<128x64xf32>
    %21 = arith.addf %19, %20 : vector<128x64xf32>
    %22 = vector.extract_strided_slice %3 {offsets = [0, 64], sizes = [128, 64], strides = [1, 1]} : vector<128x128xf32> to vector<128x64xf32>
    %23 = vector.extract_strided_slice %5 {offsets = [0, 64], sizes = [128, 64], strides = [1, 1]} : vector<128x128xf32> to vector<128x64xf32>
    %24 = vector.extract_strided_slice %22 {offsets = [0, 32], sizes = [128, 32], strides = [1, 1]} : vector<128x64xf32> to vector<128x32xf32>
    %25 = vector.extract_strided_slice %22 {offsets = [0, 0], sizes = [128, 32], strides = [1, 1]} : vector<128x64xf32> to vector<128x32xf32>
    %26 = tpu.concatenate %24, %25 in 1 : vector<128x32xf32>, vector<128x32xf32> -> vector<128x64xf32>
    %27 = vector.extract_strided_slice %23 {offsets = [0, 32], sizes = [128, 32], strides = [1, 1]} : vector<128x64xf32> to vector<128x32xf32>
    %28 = vector.extract_strided_slice %23 {offsets = [0, 0], sizes = [128, 32], strides = [1, 1]} : vector<128x64xf32> to vector<128x32xf32>
    %29 = tpu.concatenate %27, %28 in 1 : vector<128x32xf32>, vector<128x32xf32> -> vector<128x64xf32>
    %30 = arith.mulf %22, %0 : vector<128x64xf32>
    %31 = arith.mulf %26, %1 : vector<128x64xf32>
    %32 = arith.addf %30, %31 : vector<128x64xf32>
    %cst_7 = arith.constant 1.250000e-01 : f32
    %33 = vector.broadcast %cst_7 : f32 to vector<128x64xf32>
    %34 = arith.mulf %32, %33 : vector<128x64xf32>
    %35 = arith.mulf %23, %0 : vector<128x64xf32>
    %36 = arith.mulf %29, %1 : vector<128x64xf32>
    %37 = arith.addf %35, %36 : vector<128x64xf32>
    %38 = tpu.concatenate %18, %34 in 1 : vector<128x64xf32>, vector<128x64xf32> -> vector<128x128xf32>
    %39 = arith.truncf %38 : vector<128x128xf32> to vector<128x128xbf16>
    %c0_8 = arith.constant 0 : index
    %c0_9 = arith.constant 0 : index
    %40 = vector.load %arg5[%c0_8, %c0_9] : memref<128x128xbf16, #tpu.memory_space<vmem>>, vector<128x128xbf16>
    tpu.vector_store %arg5[%c0_8, %c0_9], %39 {strides = array<i32>} : memref<128x128xbf16, #tpu.memory_space<vmem>>, vector<128x128xbf16>,
    %41 = tpu.concatenate %21, %37 in 1 : vector<128x64xf32>, vector<128x64xf32> -> vector<128x128xf32>
    %42 = arith.truncf %41 : vector<128x128xf32> to vector<128x128xbf16>
    %c0_10 = arith.constant 0 : index
    %c0_11 = arith.constant 0 : index
    %43 = vector.load %arg6[%c0_10, %c0_11] : memref<128x128xbf16, #tpu.memory_space<vmem>>, vector<128x128xbf16>
    tpu.vector_store %arg6[%c0_10, %c0_11], %42 {strides = array<i32>} : memref<128x128xbf16, #tpu.memory_space<vmem>>, vector<128x128xbf16>,
    return
  }
  func.func @transform_0(%arg0: i32) -> (i32, i32) {
    %c0_i32 = arith.constant 0 : i32
    %c0_i32_0 = arith.constant 0 : i32
    return %arg0, %c0_i32 : i32, i32
  }
  func.func @transform_1(%arg0: i32) -> (i32, i32) {
    %c1_i32 = arith.constant 1 : i32
    %c0_i32 = arith.constant 0 : i32
    return %arg0, %c1_i32 : i32, i32
  }
  func.func @transform_2(%arg0: i32) -> (i32, i32) {
    %c0_i32 = arith.constant 0 : i32
    %c0_i32_0 = arith.constant 0 : i32
    return %arg0, %c0_i32 : i32, i32
  }
  func.func @transform_3(%arg0: i32) -> (i32, i32) {
    %c0_i32 = arith.constant 0 : i32
    %c0_i32_0 = arith.constant 0 : i32
    return %arg0, %c0_i32 : i32, i32
  }
  func.func @transform_4(%arg0: i32) -> (i32, i32) {
    %c0_i32 = arith.constant 0 : i32
    %c0_i32_0 = arith.constant 0 : i32
    return %arg0, %c0_i32 : i32, i32
  }
  func.func @transform_5(%arg0: i32) -> (i32, i32) {
    %c0_i32 = arith.constant 0 : i32
    %c0_i32_0 = arith.constant 0 : i32
    return %arg0, %c0_i32 : i32, i32
  }
}

module attributes {stable_mosaic.version = 11 : i64} {
  func.func @_flash_kernel(%arg0: i32, %arg1: i32, %arg2: memref<2xi32, #tpu.memory_space<smem>>, %arg3: memref<2xi32, #tpu.memory_space<smem>>, %arg4: memref<2xi32, #tpu.memory_space<smem>>, %arg5: memref<2xi32, #tpu.memory_space<smem>>, %arg6: memref<128x128xbf16, #tpu.memory_space<vmem>>, %arg7: memref<128x128xbf16, #tpu.memory_space<vmem>>, %arg8: memref<128x128xbf16, #tpu.memory_space<vmem>>, %arg9: memref<128x1xi32, #tpu.memory_space<vmem>>, %arg10: memref<1x128xi32, #tpu.memory_space<vmem>>, %arg11: memref<128x128xbf16, #tpu.memory_space<vmem>>, %arg12: memref<2x128x1xf32, #tpu.memory_space<vmem>>, %arg13: memref<2x128x1xf32, #tpu.memory_space<vmem>>, %arg14: memref<2x128x64xf32, #tpu.memory_space<vmem>>) attributes {dimension_semantics = [#tpu.dimension_semantics<parallel>, #tpu.dimension_semantics<arbitrary>], iteration_bounds = array<i64: 2, 2>, scalar_prefetch = 4 : i64, scratch_operands = 3 : i64, tpu.core_type = #tpu.core_type<tc>, window_params = [{transform_indices = @transform_0, window_bounds = array<i64: 128, 128>}, {transform_indices = @transform_1, window_bounds = array<i64: 128, 128>}, {transform_indices = @transform_2, window_bounds = array<i64: 128, 128>}, {transform_indices = @transform_3, window_bounds = array<i64: 128, 1>}, {transform_indices = @transform_4, window_bounds = array<i64: 1, 128>}, {transform_indices = @transform_5, window_bounds = array<i64: 128, 128>}]} {
    %c0_i32 = arith.constant 0 : i32
    %0 = arith.cmpi eq, %arg1, %c0_i32 : i32
    %1 = arith.extui %0 : i1 to i32
    %c0_i32_0 = arith.constant 0 : i32
    %2 = arith.cmpi ne, %1, %c0_i32_0 : i32
    scf.if %2 {
      %cst = arith.constant -1.000000e+30 : f32
      %19 = vector.broadcast %cst : f32 to vector<2x128x1xf32>
      %c0 = arith.constant 0 : index
      %c0_3 = arith.constant 0 : index
      %c0_4 = arith.constant 0 : index
      %20 = vector.load %arg12[%c0, %c0_3, %c0_4] : memref<2x128x1xf32, #tpu.memory_space<vmem>>, vector<2x128x1xf32>
      tpu.vector_store %arg12[%c0, %c0_3, %c0_4], %19 {strides = array<i32>} : memref<2x128x1xf32, #tpu.memory_space<vmem>>, vector<2x128x1xf32>,
      %cst_5 = arith.constant 0.000000e+00 : f32
      %21 = vector.broadcast %cst_5 : f32 to vector<2x128x1xf32>
      %c0_6 = arith.constant 0 : index
      %c0_7 = arith.constant 0 : index
      %c0_8 = arith.constant 0 : index
      %22 = vector.load %arg13[%c0_6, %c0_7, %c0_8] : memref<2x128x1xf32, #tpu.memory_space<vmem>>, vector<2x128x1xf32>
      tpu.vector_store %arg13[%c0_6, %c0_7, %c0_8], %21 {strides = array<i32>} : memref<2x128x1xf32, #tpu.memory_space<vmem>>, vector<2x128x1xf32>,
      %cst_9 = arith.constant 0.000000e+00 : f32
      %23 = vector.broadcast %cst_9 : f32 to vector<2x128x64xf32>
      %c0_10 = arith.constant 0 : index
      %c0_11 = arith.constant 0 : index
      %c0_12 = arith.constant 0 : index
      %24 = vector.load %arg14[%c0_10, %c0_11, %c0_12] : memref<2x128x64xf32, #tpu.memory_space<vmem>>, vector<2x128x64xf32>
      tpu.vector_store %arg14[%c0_10, %c0_11, %c0_12], %23 {strides = array<i32>} : memref<2x128x64xf32, #tpu.memory_space<vmem>>, vector<2x128x64xf32>,
    } else {
    }
    %3 = arith.index_cast %arg0 : i32 to index
    %4 = memref.load %arg2[%3] : memref<2xi32, #tpu.memory_space<smem>>
    %5 = arith.index_cast %arg1 : i32 to index
    %6 = memref.load %arg5[%5] : memref<2xi32, #tpu.memory_space<smem>>
    %7 = arith.cmpi sle, %4, %6 : i32
    %8 = arith.index_cast %arg1 : i32 to index
    %9 = memref.load %arg4[%8] : memref<2xi32, #tpu.memory_space<smem>>
    %10 = arith.index_cast %arg0 : i32 to index
    %11 = memref.load %arg3[%10] : memref<2xi32, #tpu.memory_space<smem>>
    %12 = arith.cmpi sle, %9, %11 : i32
    %13 = arith.andi %7, %12 : i1
    %14 = arith.extui %13 : i1 to i32
    %c0_i32_1 = arith.constant 0 : i32
    %15 = arith.cmpi ne, %14, %c0_i32_1 : i32
    scf.if %15 {
      %c0 = arith.constant 0 : index
      %c0_3 = arith.constant 0 : index
      %19 = vector.load %arg9[%c0, %c0_3] : memref<128x1xi32, #tpu.memory_space<vmem>>, vector<128x1xi32>
      %c0_4 = arith.constant 0 : index
      %c0_5 = arith.constant 0 : index
      %20 = vector.load %arg10[%c0_4, %c0_5] : memref<1x128xi32, #tpu.memory_space<vmem>>, vector<1x128xi32>
      %21 = vector.broadcast %19 : vector<128x1xi32> to vector<128x128xi32>
      %22 = vector.broadcast %20 : vector<1x128xi32> to vector<128x128xi32>
      %23 = arith.cmpi eq, %21, %22 : vector<128x128xi32>
      %c0_6 = arith.constant 0 : index
      %c0_7 = arith.constant 0 : index
      %24 = vector.load %arg6[%c0_6, %c0_7] : memref<128x128xbf16, #tpu.memory_space<vmem>>, vector<128x128xbf16>
      %c0_8 = arith.constant 0 : index
      %c0_9 = arith.constant 0 : index
      %25 = vector.load %arg7[%c0_8, %c0_9] : memref<128x128xbf16, #tpu.memory_space<vmem>>, vector<128x128xbf16>
      %c0_10 = arith.constant 0 : index
      %c0_11 = arith.constant 0 : index
      %26 = vector.load %arg8[%c0_10, %c0_11] : memref<128x128xbf16, #tpu.memory_space<vmem>>, vector<128x128xbf16>
      %27 = vector.extract_strided_slice %24 {offsets = [0, 0], sizes = [128, 64], strides = [1, 1]} : vector<128x128xbf16> to vector<128x64xbf16>
      %28 = vector.extract_strided_slice %25 {offsets = [0, 0], sizes = [128, 64], strides = [1, 1]} : vector<128x128xbf16> to vector<128x64xbf16>
      %29 = vector.extract_strided_slice %26 {offsets = [0, 0], sizes = [128, 64], strides = [1, 1]} : vector<128x128xbf16> to vector<128x64xbf16>
      %cst = arith.constant dense<0.000000e+00> : vector<128x128xf32>
      %30 = tpu.matmul %27, %28, %cst {dimension_numbers = #tpu.dot_dimension_numbers<[1], [1], [0], [0], [0, 0, 1, 0], [], []>} : vector<128x64xbf16>, vector<128x64xbf16>, vector<128x128xf32> -> vector<128x128xf32>
      %cst_12 = arith.constant -1.000000e+30 : f32
      %31 = vector.broadcast %cst_12 : f32 to vector<128x128xf32>
      %32 = arith.select %23, %30, %31 : vector<128x128xi1>, vector<128x128xf32>
      %c0_13 = arith.constant 0 : index
      %c0_14 = arith.constant 0 : index
      %c0_15 = arith.constant 0 : index
      %33 = vector.load %arg12[%c0_13, %c0_14, %c0_15] : memref<2x128x1xf32, #tpu.memory_space<vmem>>, vector<1x128x1xf32>
      %34 = vector.shape_cast %33 : vector<1x128x1xf32> to vector<128x1xf32>
      %c0_16 = arith.constant 0 : index
      %c0_17 = arith.constant 0 : index
      %c0_18 = arith.constant 0 : index
      %35 = vector.load %arg13[%c0_16, %c0_17, %c0_18] : memref<2x128x1xf32, #tpu.memory_space<vmem>>, vector<1x128x1xf32>
      %36 = vector.shape_cast %35 : vector<1x128x1xf32> to vector<128x1xf32>
      %cst_19 = arith.constant dense<0xFF800000> : vector<128xf32>
      %37 = vector.multi_reduction <maximumf>, %32, %cst_19 [1] : vector<128x128xf32> to vector<128xf32>
      %38 = vector.shape_cast %37 : vector<128xf32> to vector<128x1xf32>
      %39 = arith.maximumf %34, %38 : vector<128x1xf32>
      %40 = arith.subf %34, %39 : vector<128x1xf32>
      %41 = math.exp %40 : vector<128x1xf32>
      %42 = vector.broadcast %39 : vector<128x1xf32> to vector<128x128xf32>
      %43 = arith.subf %32, %42 : vector<128x128xf32>
      %44 = math.exp %43 : vector<128x128xf32>
      %cst_20 = arith.constant 0.000000e+00 : f32
      %45 = vector.broadcast %cst_20 : f32 to vector<128x128xf32>
      %46 = arith.select %23, %44, %45 : vector<128x128xi1>, vector<128x128xf32>
      %47 = arith.mulf %41, %36 : vector<128x1xf32>
      %cst_21 = arith.constant dense<0.000000e+00> : vector<128xf32>
      %48 = vector.multi_reduction <add>, %46, %cst_21 [1] : vector<128x128xf32> to vector<128xf32>
      %49 = vector.shape_cast %48 : vector<128xf32> to vector<128x1xf32>
      %50 = arith.addf %47, %49 : vector<128x1xf32>
      %c0_22 = arith.constant 0 : index
      %c0_23 = arith.constant 0 : index
      %c0_24 = arith.constant 0 : index
      %51 = vector.load %arg13[%c0_22, %c0_23, %c0_24] : memref<2x128x1xf32, #tpu.memory_space<vmem>>, vector<1x128x1xf32>
      %52 = vector.shape_cast %51 : vector<1x128x1xf32> to vector<128x1xf32>
      %53 = vector.shape_cast %50 : vector<128x1xf32> to vector<1x128x1xf32>
      tpu.vector_store %arg13[%c0_22, %c0_23, %c0_24], %53 {strides = array<i32>} : memref<2x128x1xf32, #tpu.memory_space<vmem>>, vector<1x128x1xf32>,
      %c0_25 = arith.constant 0 : index
      %c0_26 = arith.constant 0 : index
      %c0_27 = arith.constant 0 : index
      %54 = vector.load %arg14[%c0_25, %c0_26, %c0_27] : memref<2x128x64xf32, #tpu.memory_space<vmem>>, vector<1x128x64xf32>
      %55 = vector.shape_cast %54 : vector<1x128x64xf32> to vector<128x64xf32>
      %56 = vector.broadcast %41 : vector<128x1xf32> to vector<128x64xf32>
      %57 = arith.mulf %56, %55 : vector<128x64xf32>
      %58 = arith.truncf %46 : vector<128x128xf32> to vector<128x128xbf16>
      %cst_28 = arith.constant dense<0.000000e+00> : vector<128x64xf32>
      %59 = tpu.matmul %58, %29, %cst_28 {dimension_numbers = #tpu.dot_dimension_numbers<[1], [0], [0], [1], [0, 0, 1, 1], [], []>} : vector<128x128xbf16>, vector<128x64xbf16>, vector<128x64xf32> -> vector<128x64xf32>
      %60 = arith.addf %57, %59 : vector<128x64xf32>
      %c0_29 = arith.constant 0 : index
      %c0_30 = arith.constant 0 : index
      %c0_31 = arith.constant 0 : index
      %61 = vector.load %arg14[%c0_29, %c0_30, %c0_31] : memref<2x128x64xf32, #tpu.memory_space<vmem>>, vector<1x128x64xf32>
      %62 = vector.shape_cast %61 : vector<1x128x64xf32> to vector<128x64xf32>
      %63 = vector.shape_cast %60 : vector<128x64xf32> to vector<1x128x64xf32>
      tpu.vector_store %arg14[%c0_29, %c0_30, %c0_31], %63 {strides = array<i32>} : memref<2x128x64xf32, #tpu.memory_space<vmem>>, vector<1x128x64xf32>,
      %c0_32 = arith.constant 0 : index
      %c0_33 = arith.constant 0 : index
      %c0_34 = arith.constant 0 : index
      %64 = vector.load %arg12[%c0_32, %c0_33, %c0_34] : memref<2x128x1xf32, #tpu.memory_space<vmem>>, vector<1x128x1xf32>
      %65 = vector.shape_cast %64 : vector<1x128x1xf32> to vector<128x1xf32>
      %66 = vector.shape_cast %39 : vector<128x1xf32> to vector<1x128x1xf32>
      tpu.vector_store %arg12[%c0_32, %c0_33, %c0_34], %66 {strides = array<i32>} : memref<2x128x1xf32, #tpu.memory_space<vmem>>, vector<1x128x1xf32>,
      %67 = vector.extract_strided_slice %24 {offsets = [0, 64], sizes = [128, 64], strides = [1, 1]} : vector<128x128xbf16> to vector<128x64xbf16>
      %68 = vector.extract_strided_slice %25 {offsets = [0, 64], sizes = [128, 64], strides = [1, 1]} : vector<128x128xbf16> to vector<128x64xbf16>
      %69 = vector.extract_strided_slice %26 {offsets = [0, 64], sizes = [128, 64], strides = [1, 1]} : vector<128x128xbf16> to vector<128x64xbf16>
      %cst_35 = arith.constant dense<0.000000e+00> : vector<128x128xf32>
      %70 = tpu.matmul %67, %68, %cst_35 {dimension_numbers = #tpu.dot_dimension_numbers<[1], [1], [0], [0], [0, 0, 1, 0], [], []>} : vector<128x64xbf16>, vector<128x64xbf16>, vector<128x128xf32> -> vector<128x128xf32>
      %cst_36 = arith.constant -1.000000e+30 : f32
      %71 = vector.broadcast %cst_36 : f32 to vector<128x128xf32>
      %72 = arith.select %23, %70, %71 : vector<128x128xi1>, vector<128x128xf32>
      %c1 = arith.constant 1 : index
      %c0_37 = arith.constant 0 : index
      %c0_38 = arith.constant 0 : index
      %73 = vector.load %arg12[%c1, %c0_37, %c0_38] : memref<2x128x1xf32, #tpu.memory_space<vmem>>, vector<1x128x1xf32>
      %74 = vector.shape_cast %73 : vector<1x128x1xf32> to vector<128x1xf32>
      %c1_39 = arith.constant 1 : index
      %c0_40 = arith.constant 0 : index
      %c0_41 = arith.constant 0 : index
      %75 = vector.load %arg13[%c1_39, %c0_40, %c0_41] : memref<2x128x1xf32, #tpu.memory_space<vmem>>, vector<1x128x1xf32>
      %76 = vector.shape_cast %75 : vector<1x128x1xf32> to vector<128x1xf32>
      %cst_42 = arith.constant dense<0xFF800000> : vector<128xf32>
      %77 = vector.multi_reduction <maximumf>, %72, %cst_42 [1] : vector<128x128xf32> to vector<128xf32>
      %78 = vector.shape_cast %77 : vector<128xf32> to vector<128x1xf32>
      %79 = arith.maximumf %74, %78 : vector<128x1xf32>
      %80 = arith.subf %74, %79 : vector<128x1xf32>
      %81 = math.exp %80 : vector<128x1xf32>
      %82 = vector.broadcast %79 : vector<128x1xf32> to vector<128x128xf32>
      %83 = arith.subf %72, %82 : vector<128x128xf32>
      %84 = math.exp %83 : vector<128x128xf32>
      %cst_43 = arith.constant 0.000000e+00 : f32
      %85 = vector.broadcast %cst_43 : f32 to vector<128x128xf32>
      %86 = arith.select %23, %84, %85 : vector<128x128xi1>, vector<128x128xf32>
      %87 = arith.mulf %81, %76 : vector<128x1xf32>
      %cst_44 = arith.constant dense<0.000000e+00> : vector<128xf32>
      %88 = vector.multi_reduction <add>, %86, %cst_44 [1] : vector<128x128xf32> to vector<128xf32>
      %89 = vector.shape_cast %88 : vector<128xf32> to vector<128x1xf32>
      %90 = arith.addf %87, %89 : vector<128x1xf32>
      %c1_45 = arith.constant 1 : index
      %c0_46 = arith.constant 0 : index
      %c0_47 = arith.constant 0 : index
      %91 = vector.load %arg13[%c1_45, %c0_46, %c0_47] : memref<2x128x1xf32, #tpu.memory_space<vmem>>, vector<1x128x1xf32>
      %92 = vector.shape_cast %91 : vector<1x128x1xf32> to vector<128x1xf32>
      %93 = vector.shape_cast %90 : vector<128x1xf32> to vector<1x128x1xf32>
      tpu.vector_store %arg13[%c1_45, %c0_46, %c0_47], %93 {strides = array<i32>} : memref<2x128x1xf32, #tpu.memory_space<vmem>>, vector<1x128x1xf32>,
      %c1_48 = arith.constant 1 : index
      %c0_49 = arith.constant 0 : index
      %c0_50 = arith.constant 0 : index
      %94 = vector.load %arg14[%c1_48, %c0_49, %c0_50] : memref<2x128x64xf32, #tpu.memory_space<vmem>>, vector<1x128x64xf32>
      %95 = vector.shape_cast %94 : vector<1x128x64xf32> to vector<128x64xf32>
      %96 = vector.broadcast %81 : vector<128x1xf32> to vector<128x64xf32>
      %97 = arith.mulf %96, %95 : vector<128x64xf32>
      %98 = arith.truncf %86 : vector<128x128xf32> to vector<128x128xbf16>
      %cst_51 = arith.constant dense<0.000000e+00> : vector<128x64xf32>
      %99 = tpu.matmul %98, %69, %cst_51 {dimension_numbers = #tpu.dot_dimension_numbers<[1], [0], [0], [1], [0, 0, 1, 1], [], []>} : vector<128x128xbf16>, vector<128x64xbf16>, vector<128x64xf32> -> vector<128x64xf32>
      %100 = arith.addf %97, %99 : vector<128x64xf32>
      %c1_52 = arith.constant 1 : index
      %c0_53 = arith.constant 0 : index
      %c0_54 = arith.constant 0 : index
      %101 = vector.load %arg14[%c1_52, %c0_53, %c0_54] : memref<2x128x64xf32, #tpu.memory_space<vmem>>, vector<1x128x64xf32>
      %102 = vector.shape_cast %101 : vector<1x128x64xf32> to vector<128x64xf32>
      %103 = vector.shape_cast %100 : vector<128x64xf32> to vector<1x128x64xf32>
      tpu.vector_store %arg14[%c1_52, %c0_53, %c0_54], %103 {strides = array<i32>} : memref<2x128x64xf32, #tpu.memory_space<vmem>>, vector<1x128x64xf32>,
      %c1_55 = arith.constant 1 : index
      %c0_56 = arith.constant 0 : index
      %c0_57 = arith.constant 0 : index
      %104 = vector.load %arg12[%c1_55, %c0_56, %c0_57] : memref<2x128x1xf32, #tpu.memory_space<vmem>>, vector<1x128x1xf32>
      %105 = vector.shape_cast %104 : vector<1x128x1xf32> to vector<128x1xf32>
      %106 = vector.shape_cast %79 : vector<128x1xf32> to vector<1x128x1xf32>
      tpu.vector_store %arg12[%c1_55, %c0_56, %c0_57], %106 {strides = array<i32>} : memref<2x128x1xf32, #tpu.memory_space<vmem>>, vector<1x128x1xf32>,
    } else {
    }
    %c1_i32 = arith.constant 1 : i32
    %16 = arith.cmpi eq, %arg1, %c1_i32 : i32
    %17 = arith.extui %16 : i1 to i32
    %c0_i32_2 = arith.constant 0 : i32
    %18 = arith.cmpi ne, %17, %c0_i32_2 : i32
    scf.if %18 {
      %c0 = arith.constant 0 : index
      %c0_3 = arith.constant 0 : index
      %c0_4 = arith.constant 0 : index
      %19 = vector.load %arg13[%c0, %c0_3, %c0_4] : memref<2x128x1xf32, #tpu.memory_space<vmem>>, vector<1x128x1xf32>
      %20 = vector.shape_cast %19 : vector<1x128x1xf32> to vector<128x1xf32>
      %21 = tpu.reciprocal %20 {approx = true} : vector<128x1xf32> -> vector<128x1xf32>
      %c0_5 = arith.constant 0 : index
      %c0_6 = arith.constant 0 : index
      %c0_7 = arith.constant 0 : index
      %22 = vector.load %arg14[%c0_5, %c0_6, %c0_7] : memref<2x128x64xf32, #tpu.memory_space<vmem>>, vector<1x128x64xf32>
      %23 = vector.shape_cast %22 : vector<1x128x64xf32> to vector<128x64xf32>
      %24 = vector.broadcast %21 : vector<128x1xf32> to vector<128x64xf32>
      %25 = arith.mulf %23, %24 : vector<128x64xf32>
      %c1 = arith.constant 1 : index
      %c0_8 = arith.constant 0 : index
      %c0_9 = arith.constant 0 : index
      %26 = vector.load %arg13[%c1, %c0_8, %c0_9] : memref<2x128x1xf32, #tpu.memory_space<vmem>>, vector<1x128x1xf32>
      %27 = vector.shape_cast %26 : vector<1x128x1xf32> to vector<128x1xf32>
      %28 = tpu.reciprocal %27 {approx = true} : vector<128x1xf32> -> vector<128x1xf32>
      %c1_10 = arith.constant 1 : index
      %c0_11 = arith.constant 0 : index
      %c0_12 = arith.constant 0 : index
      %29 = vector.load %arg14[%c1_10, %c0_11, %c0_12] : memref<2x128x64xf32, #tpu.memory_space<vmem>>, vector<1x128x64xf32>
      %30 = vector.shape_cast %29 : vector<1x128x64xf32> to vector<128x64xf32>
      %31 = vector.broadcast %28 : vector<128x1xf32> to vector<128x64xf32>
      %32 = arith.mulf %30, %31 : vector<128x64xf32>
      %33 = tpu.concatenate %25, %32 in 1 : vector<128x64xf32>, vector<128x64xf32> -> vector<128x128xf32>
      %34 = arith.truncf %33 : vector<128x128xf32> to vector<128x128xbf16>
      %c0_13 = arith.constant 0 : index
      %c0_14 = arith.constant 0 : index
      %35 = vector.load %arg11[%c0_13, %c0_14] : memref<128x128xbf16, #tpu.memory_space<vmem>>, vector<128x128xbf16>
      tpu.vector_store %arg11[%c0_13, %c0_14], %34 {strides = array<i32>} : memref<128x128xbf16, #tpu.memory_space<vmem>>, vector<128x128xbf16>,
    } else {
    }
    return
  }
  func.func @transform_0(%arg0: i32, %arg1: i32, %arg2: memref<2xi32, #tpu.memory_space<smem>>, %arg3: memref<2xi32, #tpu.memory_space<smem>>, %arg4: memref<2xi32, #tpu.memory_space<smem>>, %arg5: memref<2xi32, #tpu.memory_space<smem>>) -> (i32, i32) {
    %c0_i32 = arith.constant 0 : i32
    %c0_i32_0 = arith.constant 0 : i32
    return %arg0, %c0_i32 : i32, i32
  }
  func.func @transform_1(%arg0: i32, %arg1: i32, %arg2: memref<2xi32, #tpu.memory_space<smem>>, %arg3: memref<2xi32, #tpu.memory_space<smem>>, %arg4: memref<2xi32, #tpu.memory_space<smem>>, %arg5: memref<2xi32, #tpu.memory_space<smem>>) -> (i32, i32) {
    %c0_i32 = arith.constant 0 : i32
    %c0_i32_0 = arith.constant 0 : i32
    return %arg1, %c0_i32 : i32, i32
  }
  func.func @transform_2(%arg0: i32, %arg1: i32, %arg2: memref<2xi32, #tpu.memory_space<smem>>, %arg3: memref<2xi32, #tpu.memory_space<smem>>, %arg4: memref<2xi32, #tpu.memory_space<smem>>, %arg5: memref<2xi32, #tpu.memory_space<smem>>) -> (i32, i32) {
    %c2_i32 = arith.constant 2 : i32
    %c0_i32 = arith.constant 0 : i32
    return %arg1, %c2_i32 : i32, i32
  }
  func.func @transform_3(%arg0: i32, %arg1: i32, %arg2: memref<2xi32, #tpu.memory_space<smem>>, %arg3: memref<2xi32, #tpu.memory_space<smem>>, %arg4: memref<2xi32, #tpu.memory_space<smem>>, %arg5: memref<2xi32, #tpu.memory_space<smem>>) -> (i32, i32) {
    %c0_i32 = arith.constant 0 : i32
    %c0_i32_0 = arith.constant 0 : i32
    return %arg0, %c0_i32 : i32, i32
  }
  func.func @transform_4(%arg0: i32, %arg1: i32, %arg2: memref<2xi32, #tpu.memory_space<smem>>, %arg3: memref<2xi32, #tpu.memory_space<smem>>, %arg4: memref<2xi32, #tpu.memory_space<smem>>, %arg5: memref<2xi32, #tpu.memory_space<smem>>) -> (i32, i32) {
    %c0_i32 = arith.constant 0 : i32
    %c0_i32_0 = arith.constant 0 : i32
    return %c0_i32, %arg1 : i32, i32
  }
  func.func @transform_5(%arg0: i32, %arg1: i32, %arg2: memref<2xi32, #tpu.memory_space<smem>>, %arg3: memref<2xi32, #tpu.memory_space<smem>>, %arg4: memref<2xi32, #tpu.memory_space<smem>>, %arg5: memref<2xi32, #tpu.memory_space<smem>>) -> (i32, i32) {
    %c0_i32 = arith.constant 0 : i32
    %c0_i32_0 = arith.constant 0 : i32
    return %arg0, %c0_i32 : i32, i32
  }
}

module attributes {stable_mosaic.version = 11 : i64} {
  func.func @_linear_kernel(%arg0: i32, %arg1: i32, %arg2: i32, %arg3: memref<128x128xbf16, #tpu.memory_space<vmem>>, %arg4: memref<128x128xbf16, #tpu.memory_space<vmem>>, %arg5: memref<1x128xf32, #tpu.memory_space<vmem>>, %arg6: memref<128x128xbf16, #tpu.memory_space<vmem>>, %arg7: memref<128x128xf32, #tpu.memory_space<vmem>>) attributes {dimension_semantics = [#tpu.dimension_semantics<parallel>, #tpu.dimension_semantics<parallel>, #tpu.dimension_semantics<arbitrary>], iteration_bounds = array<i64: 2, 1, 1>, scalar_prefetch = 0 : i64, scratch_operands = 1 : i64, tpu.core_type = #tpu.core_type<tc>, window_params = [{transform_indices = @transform_0, window_bounds = array<i64: 128, 128>}, {transform_indices = @transform_1, window_bounds = array<i64: 128, 128>}, {transform_indices = @transform_2, window_bounds = array<i64: 1, 128>}, {transform_indices = @transform_3, window_bounds = array<i64: 128, 128>}]} {
    %c0_i32 = arith.constant 0 : i32
    %0 = arith.cmpi eq, %arg2, %c0_i32 : i32
    %1 = arith.extui %0 : i1 to i32
    %c0_i32_0 = arith.constant 0 : i32
    %2 = arith.cmpi ne, %1, %c0_i32_0 : i32
    scf.if %2 {
      %cst_10 = arith.constant 0.000000e+00 : f32
      %12 = vector.broadcast %cst_10 : f32 to vector<128x128xf32>
      %c0_11 = arith.constant 0 : index
      %c0_12 = arith.constant 0 : index
      %13 = vector.load %arg7[%c0_11, %c0_12] : memref<128x128xf32, #tpu.memory_space<vmem>>, vector<128x128xf32>
      tpu.vector_store %arg7[%c0_11, %c0_12], %12 {strides = array<i32>} : memref<128x128xf32, #tpu.memory_space<vmem>>, vector<128x128xf32>,
    } else {
    }
    %c0 = arith.constant 0 : index
    %c0_1 = arith.constant 0 : index
    %3 = vector.load %arg7[%c0, %c0_1] : memref<128x128xf32, #tpu.memory_space<vmem>>, vector<128x128xf32>
    %c0_2 = arith.constant 0 : index
    %c0_3 = arith.constant 0 : index
    %4 = vector.load %arg3[%c0_2, %c0_3] : memref<128x128xbf16, #tpu.memory_space<vmem>>, vector<128x128xbf16>
    %c0_4 = arith.constant 0 : index
    %c0_5 = arith.constant 0 : index
    %5 = vector.load %arg4[%c0_4, %c0_5] : memref<128x128xbf16, #tpu.memory_space<vmem>>, vector<128x128xbf16>
    %cst = arith.constant dense<0.000000e+00> : vector<128x128xf32>
    %6 = tpu.matmul %4, %5, %cst {dimension_numbers = #tpu.dot_dimension_numbers<[1], [1], [0], [0], [0, 0, 1, 0], [], []>} : vector<128x128xbf16>, vector<128x128xbf16>, vector<128x128xf32> -> vector<128x128xf32>
    %7 = arith.addf %3, %6 : vector<128x128xf32>
    %c0_6 = arith.constant 0 : index
    %c0_7 = arith.constant 0 : index
    %8 = vector.load %arg7[%c0_6, %c0_7] : memref<128x128xf32, #tpu.memory_space<vmem>>, vector<128x128xf32>
    tpu.vector_store %arg7[%c0_6, %c0_7], %7 {strides = array<i32>} : memref<128x128xf32, #tpu.memory_space<vmem>>, vector<128x128xf32>,
    %c0_i32_8 = arith.constant 0 : i32
    %9 = arith.cmpi eq, %arg2, %c0_i32_8 : i32
    %10 = arith.extui %9 : i1 to i32
    %c0_i32_9 = arith.constant 0 : i32
    %11 = arith.cmpi ne, %10, %c0_i32_9 : i32
    scf.if %11 {
      %c0_10 = arith.constant 0 : index
      %c0_11 = arith.constant 0 : index
      %12 = vector.load %arg7[%c0_10, %c0_11] : memref<128x128xf32, #tpu.memory_space<vmem>>, vector<128x128xf32>
      %c0_12 = arith.constant 0 : index
      %c0_13 = arith.constant 0 : index
      %13 = vector.load %arg5[%c0_12, %c0_13] : memref<1x128xf32, #tpu.memory_space<vmem>>, vector<1x128xf32>
      %14 = vector.broadcast %13 : vector<1x128xf32> to vector<128x128xf32>
      %15 = arith.addf %12, %14 : vector<128x128xf32>
      %16 = arith.truncf %15 : vector<128x128xf32> to vector<128x128xbf16>
      %c0_14 = arith.constant 0 : index
      %c0_15 = arith.constant 0 : index
      %17 = vector.load %arg6[%c0_14, %c0_15] : memref<128x128xbf16, #tpu.memory_space<vmem>>, vector<128x128xbf16>
      tpu.vector_store %arg6[%c0_14, %c0_15], %16 {strides = array<i32>} : memref<128x128xbf16, #tpu.memory_space<vmem>>, vector<128x128xbf16>,
    } else {
    }
    return
  }
  func.func @transform_0(%arg0: i32, %arg1: i32, %arg2: i32) -> (i32, i32) {
    %c0_i32 = arith.constant 0 : i32
    return %arg0, %arg2 : i32, i32
  }
  func.func @transform_1(%arg0: i32, %arg1: i32, %arg2: i32) -> (i32, i32) {
    %c0_i32 = arith.constant 0 : i32
    return %arg1, %arg2 : i32, i32
  }
  func.func @transform_2(%arg0: i32, %arg1: i32, %arg2: i32) -> (i32, i32) {
    %c0_i32 = arith.constant 0 : i32
    %c0_i32_0 = arith.constant 0 : i32
    return %c0_i32, %arg1 : i32, i32
  }
  func.func @transform_3(%arg0: i32, %arg1: i32, %arg2: i32) -> (i32, i32) {
    %c0_i32 = arith.constant 0 : i32
    return %arg0, %arg1 : i32, i32
  }
}

</mosaic_0001>

<bundles_post_ra>
// kernel: neg.1
= control target key start
LH: loop header
LB: loop body
LE: loop exit
PB: predicated region body
PF: predicated region fallthrough
CT: control target
= control target key end

     0   :  { %s520_s0 = inlined_call_operand.vmem [shape: f32[256,32], index: 0, kind: input, shape index: {}]   ;;  %s521_s1 = inlined_call_operand.vmem [shape: f32[256,32], index: 1, kind: output, shape index: {}]  }
   0x1   :  { %v2_v0 = vld [vmem:[%s520_s0] sm:$0xff]  ;;  %v256_v1 = vld [vmem:[%s520_s0 + $0x8] sm:$0xff]  ;;  %v258_v2 = vld [vmem:[%s520_s0 + $0x10] sm:$0xff] }
   0x2   :  { %v5_v3 = vxor.u32 2147483648, %v2_v0  ;;  %v12_v4 = vxor.u32 2147483648, %v256_v1  ;;  %v20_v5 = vxor.u32 2147483648, %v258_v2  ;;  %v260_v6 = vld [vmem:[%s520_s0 + $0x18] sm:$0xff]  ;;  %v262_v7 = vld [vmem:[%s520_s0 + $0x20] sm:$0xff]  ;;  %v264_v8 = vld [vmem:[%s520_s0 + $0x28] sm:$0xff] }
   0x3   :  { %v28_v9 = vxor.u32 2147483648, %v260_v6  ;;  %v36_v10 = vxor.u32 2147483648, %v262_v7  ;;  %v44_v11 = vxor.u32 2147483648, %v264_v8  ;;  %v266_v12 = vld [vmem:[%s520_s0 + $0x30] sm:$0xff]  ;;  %v268_v13 = vld [vmem:[%s520_s0 + $0x38] sm:$0xff]  ;;  %v270_v14 = vld [vmem:[%s520_s0 + $0x40] sm:$0xff] }
   0x4   :  { %7 = vst [vmem:[%s521_s1] sm:$0xff] %v5_v3  ;;  %257 = vst [vmem:[%s521_s1 + $0x8] sm:$0xff] %v12_v4  ;;  %v52_v15 = vxor.u32 2147483648, %v266_v12  ;;  %v60_v16 = vxor.u32 2147483648, %v268_v13  ;;  %v68_v17 = vxor.u32 2147483648, %v270_v14  ;;  %v272_v18 = vld [vmem:[%s520_s0 + $0x48] sm:$0xff]  ;;  %v274_v19 = vld [vmem:[%s520_s0 + $0x50] sm:$0xff] }
   0x5   :  { %259 = vst [vmem:[%s521_s1 + $0x10] sm:$0xff] %v20_v5  ;;  %v276_v20 = vld [vmem:[%s520_s0 + $0x58] sm:$0xff]  ;;  %261 = vst [vmem:[%s521_s1 + $0x18] sm:$0xff] %v28_v9  ;;  %v76_v21 = vxor.u32 2147483648, %v272_v18  ;;  %v84_v22 = vxor.u32 2147483648, %v274_v19  ;;  %v278_v24 = vld [vmem:[%s520_s0 + $0x60] sm:$0xff] }
   0x6   :  { %263 = vst [vmem:[%s521_s1 + $0x20] sm:$0xff] %v36_v10  ;;  %265 = vst [vmem:[%s521_s1 + $0x28] sm:$0xff] %v44_v11  ;;  %v92_v23 = vxor.u32 2147483648, %v276_v20  ;;  %v280_v25 = vld [vmem:[%s520_s0 + $0x68] sm:$0xff]  ;;  %v282_v26 = vld [vmem:[%s520_s0 + $0x70] sm:$0xff]  ;;  %v100_v27 = vxor.u32 2147483648, %v278_v24 }
   0x7   :  { %267 = vst [vmem:[%s521_s1 + $0x30] sm:$0xff] %v52_v15  ;;  %269 = vst [vmem:[%s521_s1 + $0x38] sm:$0xff] %v60_v16  ;;  %v108_v28 = vxor.u32 2147483648, %v280_v25  ;;  %v116_v29 = vxor.u32 2147483648, %v282_v26  ;;  %v284_v30 = vld [vmem:[%s520_s0 + $0x78] sm:$0xff]  ;;  %v286_v31 = vld [vmem:[%s520_s0 + $0x80] sm:$0xff] }
   0x8   :  { %271 = vst [vmem:[%s521_s1 + $0x40] sm:$0xff] %v68_v17  ;;  %v288_v32 = vld [vmem:[%s520_s0 + $0x88] sm:$0xff]  ;;  %273 = vst [vmem:[%s521_s1 + $0x48] sm:$0xff] %v76_v21  ;;  %v124_v33 = vxor.u32 2147483648, %v284_v30  ;;  %v132_v34 = vxor.u32 2147483648, %v286_v31  ;;  %v290_v36 = vld [vmem:[%s520_s0 + $0x90] sm:$0xff] }
   0x9   :  { %275 = vst [vmem:[%s521_s1 + $0x50] sm:$0xff] %v84_v22  ;;  %277 = vst [vmem:[%s521_s1 + $0x58] sm:$0xff] %v92_v23  ;;  %v140_v35 = vxor.u32 2147483648, %v288_v32  ;;  %v292_v37 = vld [vmem:[%s520_s0 + $0x98] sm:$0xff]  ;;  %v294_v38 = vld [vmem:[%s520_s0 + $0xa0] sm:$0xff]  ;;  %v148_v39 = vxor.u32 2147483648, %v290_v36 }
   0xa   :  { %279 = vst [vmem:[%s521_s1 + $0x60] sm:$0xff] %v100_v27  ;;  %281 = vst [vmem:[%s521_s1 + $0x68] sm:$0xff] %v108_v28  ;;  %v156_v40 = vxor.u32 2147483648, %v292_v37  ;;  %v164_v41 = vxor.u32 2147483648, %v294_v38  ;;  %v296_v42 = vld [vmem:[%s520_s0 + $0xa8] sm:$0xff]  ;;  %v298_v43 = vld [vmem:[%s520_s0 + $0xb0] sm:$0xff] }
   0xb   :  { %283 = vst [vmem:[%s521_s1 + $0x70] sm:$0xff] %v116_v29  ;;  %v300_v44 = vld [vmem:[%s520_s0 + $0xb8] sm:$0xff]  ;;  %285 = vst [vmem:[%s521_s1 + $0x78] sm:$0xff] %v124_v33  ;;  %v172_v45 = vxor.u32 2147483648, %v296_v42  ;;  %v180_v46 = vxor.u32 2147483648, %v298_v43  ;;  %v302_v48 = vld [vmem:[%s520_s0 + $0xc0] sm:$0xff] }
   0xc   :  { %287 = vst [vmem:[%s521_s1 + $0x80] sm:$0xff] %v132_v34  ;;  %289 = vst [vmem:[%s521_s1 + $0x88] sm:$0xff] %v140_v35  ;;  %v188_v47 = vxor.u32 2147483648, %v300_v44  ;;  %v304_v49 = vld [vmem:[%s520_s0 + $0xc8] sm:$0xff]  ;;  %v306_v50 = vld [vmem:[%s520_s0 + $0xd0] sm:$0xff]  ;;  %v196_v51 = vxor.u32 2147483648, %v302_v48 }
   0xd   :  { %291 = vst [vmem:[%s521_s1 + $0x90] sm:$0xff] %v148_v39  ;;  %293 = vst [vmem:[%s521_s1 + $0x98] sm:$0xff] %v156_v40  ;;  %v204_v52 = vxor.u32 2147483648, %v304_v49  ;;  %v212_v53 = vxor.u32 2147483648, %v306_v50  ;;  %v308_v54 = vld [vmem:[%s520_s0 + $0xd8] sm:$0xff]  ;;  %v310_v55 = vld [vmem:[%s520_s0 + $0xe0] sm:$0xff] }
   0xe   :  { %295 = vst [vmem:[%s521_s1 + $0xa0] sm:$0xff] %v164_v41  ;;  %v312_v56 = vld [vmem:[%s520_s0 + $0xe8] sm:$0xff]  ;;  %297 = vst [vmem:[%s521_s1 + $0xa8] sm:$0xff] %v172_v45  ;;  %v220_v57 = vxor.u32 2147483648, %v308_v54  ;;  %v228_v58 = vxor.u32 2147483648, %v310_v55  ;;  %v314_v60 = vld [vmem:[%s520_s0 + $0xf0] sm:$0xff] }
   0xf   :  { %299 = vst [vmem:[%s521_s1 + $0xb0] sm:$0xff] %v180_v46  ;;  %301 = vst [vmem:[%s521_s1 + $0xb8] sm:$0xff] %v188_v47  ;;  %v236_v59 = vxor.u32 2147483648, %v312_v56  ;;  %v316_v61 = vld [vmem:[%s520_s0 + $0xf8] sm:$0xff]  ;;  %v244_v62 = vxor.u32 2147483648, %v314_v60 }
  0x10   :  { %303 = vst [vmem:[%s521_s1 + $0xc0] sm:$0xff] %v196_v51  ;;  %305 = vst [vmem:[%s521_s1 + $0xc8] sm:$0xff] %v204_v52  ;;  %v252_v63 = vxor.u32 2147483648, %v316_v61 }
  0x11   :  { %307 = vst [vmem:[%s521_s1 + $0xd0] sm:$0xff] %v212_v53  ;;  %309 = vst [vmem:[%s521_s1 + $0xd8] sm:$0xff] %v220_v57 }
  0x12   :  { %311 = vst [vmem:[%s521_s1 + $0xe0] sm:$0xff] %v228_v58  ;;  %313 = vst [vmem:[%s521_s1 + $0xe8] sm:$0xff] %v236_v59 }
  0x13   :  { %315 = vst [vmem:[%s521_s1 + $0xf0] sm:$0xff] %v244_v62  ;;  %317 = vst [vmem:[%s521_s1 + $0xf8] sm:$0xff] %v252_v63 }

// kernel: custom-call
= control target key start
LH: loop header
LB: loop body
LE: loop exit
PB: predicated region body
PF: predicated region fallthrough
CT: control target
= control target key end

     0   :  { %s6_s0 = inlined_call_operand.vmem [shape: u32[256], index: 0, kind: output, shape index: {}]  }

// kernel: vision_flash_attention2.4
= control target key start
LH: loop header
LB: loop body
LE: loop exit
PB: predicated region body
PF: predicated region fallthrough
CT: control target
= control target key end

     0   :  { %s1193_s12 = smov 0   ;;  %s1195_s13 = smov 0   ;;  %s1340_s0 = inlined_call_operand.vmem [shape: bf16[256,128], index: 0, kind: input, shape index: {}]   ;;  %s1341_s1 = inlined_call_operand.vmem [shape: bf16[384,128], index: 1, kind: input, shape index: {}]   ;;  %s1342_s2 = inlined_call_operand.vmem [shape: f32[1,384], index: 2, kind: input, shape index: {}]   ;;  %s1343_s3 = inlined_call_operand.vmem [shape: bf16[256,384], index: 3, kind: output, shape index: {}]  }
   0x1   :  { %s1197_s14 = smov 0   ;;  %s1199_s15 = smov 0  }
   0x2   :  { %s1201_s16 = smov 0   ;;  %s1203_s17 = smov 0  }
   0x3   :  { %s1205_s18 = smov 0  }
   0x4 LB: > { %s28_s19 = sadd.s32 1, %s1163_s16  ;;  %s32_s20 = sadd.s32 1, %s1167_s17  ;;  %s1171_s18 = sphi %s1205_s18, %s13_s18   ;;  %s1167_s17 = sphi %s1203_s17, %s1350_s17   ;;  %s1163_s16 = sphi %s1201_s16, %s1349_s16   ;;  %s1159_s15 = sphi %s1199_s15, %s1348_s15   ;;  %s1155_s14 = sphi %s1197_s14, %s1347_s14   ;;  %s1151_s13 = sphi %s1195_s13, %s1346_s13   ;;  %s1147_s12 = sphi %s1193_s12, %s1345_s12  }
   0x5   : > { %p30_p0 = scmp.ge.s32.totalorder %s28_s19, 3  ;;  %s868_s21 = sadd.s32 4294967295, %s1171_s18  }
   0x6   : > { %p133_p1 = scmp.ne.s32.totalorder %s1151_s13, %s1147_s12  ;;  %p134_p2 = scmp.eq.s32.totalorder %s868_s21, 5 }
   0x7   : > { %s1352_s19 = smov (%p30_p0, %s28_s19), 0  ;;  %s1354_s20 = smov (!%p30_p0, %s32_s20), %s1167_s17 }
   0x8   : > { %s119_s22 = ssub.s32 %s1163_s16, %s1352_s19  ;;  %p34_p3 = scmp.ge.s32.totalorder %s1354_s20, 2 }
   0x9   : > { %p872_p4 = scmp.ge.s32.totalorder %s1171_s18, 1  ;;  %p1239_p5 = por %p134_p2, %p133_p1 }
   0xa   : > { %p188_p6 = scmp.lt.s32.totalorder %s1171_s18, 7  ;;  %s1356_s20 = smov (%p34_p3, %s1354_s20), 0 }
   0xb   : > { %s118_s24 = ssub.s32 %s1167_s17, %s1356_s20  ;;  %s123_s26 = sadd.s32 1, %s1151_s13 }
   0xc   : > { %p189_p7 = pnand %p872_p4, %p188_p6  ;;  %s120_s25 = sor.u32 %s119_s22, %s118_s24 }
   0xd   : > { %p121_p8 = scmp.eq.s32.totalorder %s120_s25, 0  ;;  %s876_s28 = sshll.u32 (!%p189_p7), %s1155_s14, 4 }
   0xe   : > { %192 = sbr.rel (%p189_p7) target bundleno = 328 (0x148), region = 32  ;;  %s874_s29 = sshll.u32 (!%p189_p7), %s1159_s15, 4 }
   0xf   : > { %s1250_s27 = scalar_select %p121_p8, %s1151_s13, %s123_s26  }
  0x10   : > { %p235_p9 = scmp.lt.s32.totalorder (!%p189_p7), %s876_s28, 47  ;;  %p226_p10 = scmp.lt.s32.totalorder (!%p189_p7), %s874_s29, 31 }
  0x11   : > { %p243_p11 = scmp.lt.s32.totalorder (!%p189_p7), %s1155_s14, 2  ;;  %s222_s25 = sand.u32 (!%p189_p7), 1, %s1147_s12  }
  0x12   : > { %s873_s26 = sshll.u32 (!%p189_p7), %s222_s25, 6 }
  0x13   : > { %s1286_s12 = scalar_lea.vmem (!%p189_p7), [#allocation3], %s873_s26 }
  0x15   : > { %s1358_s28 = smov (!%p235_p9, %s876_s28), 47  ;;  %s1360_s29 = smov (!%p226_p10, %s874_s29), 31 }
  0x16   : > { %s877_s30 = sshll.u32 %s1358_s28, 2  ;;  %s875_s7 = sshll.u32 %s1360_s29, 2 }
  0x17   : > { %s1257_s6 = scalar_lea.vmem %s1341_s1, %s877_s30  ;;  %s1264_s10 = scalar_lea.vmem %s1340_s0, %s875_s7 }
  0x18   : > { %v1101_v0 = vld [vmem:[%s1257_s6] sm:$0xff]   ;;  %v1102_v1 = vld [vmem:[%s1257_s6 + $0x8] sm:$0xff]   ;;  %v1103_v2 = vld [vmem:[%s1257_s6 + $0x10] sm:$0xff]   ;;  %s244_s11 = scalar_select %p243_p11, %s1155_s14, 2 }
  0x19   : > { %996 = vmatprep.subr.bf16.mxu0 %v1101_v0  ;;  %1028 = vmatprep.subr.bf16.mxu1 %v1101_v0  ;;  %v1109_v3 = vld [vmem:[%s1264_s10] sm:$0xff]   ;;  %v1104_v5 = vld [vmem:[%s1257_s6 + $0x18] sm:$0xff]   ;;  %v1106_v7 = vld [vmem:[%s1257_s6 + $0x28] sm:$0xff]   ;;  %s1044_s28 = smul.u32 (%p1239_p5), 48, %s1159_s15 }
  0x1a   : > { %997 = vmatpush3.bf16.xpose.msra.mxu0 %v1101_v0  ;;  %1036 = vmatpush3.bf16.xpose.msra.mxu1 %v1101_v0  ;;  %v1110_v4 = vld [vmem:[%s1264_s10 + $0x20] sm:$0xff]   ;;  %v1107_v8 = vld [vmem:[%s1257_s6 + $0x30] sm:$0xff]   ;;  %v1108_v9 = vld [vmem:[%s1257_s6 + $0x38] sm:$0xff]   ;;  %s245_s24 = scalar_lea.vmem %s1342_s2, %s244_s11 }
  0x1b   : > { %998 = vmatprep.subr.bf16.mxu0 %v1102_v1  ;;  %1029 = vmatprep.subr.bf16.mxu1 %v1102_v1  ;;  %v1105_v6 = vld [vmem:[%s1257_s6 + $0x20] sm:$0xff]   ;;  %v1111_v10 = vld [vmem:[%s1264_s10 + $0x8] sm:$0xff]   ;;  %v1113_v12 = vld [vmem:[%s1264_s10 + $0x10] sm:$0xff]   ;;  %s672_s23 = sadd.s32 (%p1239_p5), %s1155_s14, %s1044_s28 }
  0x1c   : > { %1012 = vmatprep.mubr.bf16.mxu0 %v1109_v3  ;;  %1020 = vmatprep.mubr.bf16.mxu1 %v1110_v4  ;;  %v1112_v11 = vld [vmem:[%s1264_s10 + $0x28] sm:$0xff]   ;;  %v1114_v13 = vld [vmem:[%s1264_s10 + $0x30] sm:$0xff]   ;;  %v1115_v14 = vld [vmem:[%s1264_s10 + $0x18] sm:$0xff]   ;;  %s914_s29 = sshll.u32 (%p1239_p5), %s672_s23, 2 }
  0x1d   : > { %v1116_v15 = vld [vmem:[%s1264_s10 + $0x38] sm:$0xff]   ;;  %v894_v17 = vld [vmem:[%s245_s24] ss:$0 sm:$0xff]  ;;  %s674_s5 = scalar_lea.vmem (%p1239_p5), %s1343_s3, %s914_s29 }
  0x22   : > { %999 = vmatpush3.bf16.xpose.msra.mxu0 %v1102_v1  ;;  %1037 = vmatpush3.bf16.xpose.msra.mxu1 %v1102_v1 }
  0x23   : > { %1000 = vmatprep.subr.bf16.mxu0 %v1103_v2  ;;  %1030 = vmatprep.subr.bf16.mxu1 %v1103_v2 }
  0x2a   : > { %1001 = vmatpush3.bf16.xpose.msra.mxu0 %v1103_v2  ;;  %1038 = vmatpush3.bf16.xpose.msra.mxu1 %v1103_v2 }
  0x2b   : > { %1002 = vmatprep.subr.bf16.mxu0 %v1104_v5  ;;  %1031 = vmatprep.subr.bf16.mxu1 %v1104_v5 }
  0x32   : > { %1003 = vmatpush3.bf16.xpose.msra.mxu0 %v1104_v5  ;;  %1039 = vmatpush3.bf16.xpose.msra.mxu1 %v1104_v5 }
  0x33   : > { %1004 = vmatprep.subr.bf16.mxu0 %v1105_v6  ;;  %1032 = vmatprep.subr.bf16.mxu1 %v1105_v6 }
  0x3a   : > { %1005 = vmatpush3.bf16.xpose.msra.mxu0 %v1105_v6  ;;  %1040 = vmatpush3.bf16.xpose.msra.mxu1 %v1105_v6 }
  0x3b   : > { %1006 = vmatprep.subr.bf16.mxu0 %v1106_v7  ;;  %1033 = vmatprep.subr.bf16.mxu1 %v1106_v7 }
  0x42   : > { %1007 = vmatpush3.bf16.xpose.msra.mxu0 %v1106_v7  ;;  %1041 = vmatpush3.bf16.xpose.msra.mxu1 %v1106_v7 }
  0x43   : > { %1008 = vmatprep.subr.bf16.mxu0 %v1107_v8  ;;  %1034 = vmatprep.subr.bf16.mxu1 %v1107_v8 }
  0x4a   : > { %1009 = vmatpush3.bf16.xpose.msra.mxu0 %v1107_v8  ;;  %1042 = vmatpush3.bf16.xpose.msra.mxu1 %v1107_v8 }
  0x4b   : > { %1010 = vmatprep.subr.bf16.mxu0 %v1108_v9  ;;  %1035 = vmatprep.subr.bf16.mxu1 %v1108_v9 }
  0x52   : > { %1011 = vmatpush3.bf16.xpose.msra.mxu0 %v1108_v9  ;;  %1043 = vmatpush3.bf16.xpose.msra.mxu1 %v1108_v9 }
  0x59   : > { %1013 = vmatmul.mubr.bf16.vlgmr.msra.gmra.mrb[0].mxu0 %v1111_v10  ;;  %1021 = vmatmul.mubr.bf16.vlgmr.msra.gmra.mrb[0].mxu1 %v1112_v11 }
  0x5a   : > { %1016 = vmatprep.mubr.bf16.mxu0 %v1113_v12  ;;  %1024 = vmatprep.mubr.bf16.mxu1 %v1114_v13 }
  0x61   : > { %1017 = vmatmul.mubr.bf16.gmra.mrb[4].mxu0 %v1115_v14  ;;  %1025 = vmatmul.mubr.bf16.gmra.mrb[4].mxu1 %v1116_v15 }
 0x12c   : > { %v1014_v16 = vpop.f32.mrb[0].mxu0  ;;  %v1022_v18 = vpop.f32.mrb[0].mxu1 }
 0x12d   : > { %v446_v19 = vpop.f32.mrb[1].mxu0  ;;  %v478_v20 = vpop.f32.mrb[1].mxu1  ;;  %v569_v23 = vadd.f32 %v1014_v16, %v894_v17  ;;  %v577_v24 = vadd.f32 %v1022_v18, %v894_v17 }
 0x12e   : > { %v1015_v21 = vpop.f32.mrb[2].mxu0  ;;  %v1023_v22 = vpop.f32.mrb[2].mxu1  ;;  %v567_v29 = vadd.f32 %v894_v17, %v446_v19  ;;  %v575_v30 = vadd.f32 %v894_v17, %v478_v20 }
 0x12f   : > { %v570_v25 = vadd.f32 %v1015_v21, %v894_v17  ;;  %v578_v26 = vadd.f32 %v1023_v22, %v894_v17  ;;  %v449_v27 = vpop.f32.mrb[3].mxu0  ;;  %v481_v28 = vpop.f32.mrb[3].mxu1 }
 0x130   : > { %v568_v31 = vadd.f32 %v894_v17, %v449_v27  ;;  %v576_v32 = vadd.f32 %v894_v17, %v481_v28 }
 0x131   : > { %v941_v33 = vpack.c.bf16 %v570_v25, %v569_v23  ;;  %v961_v34 = vpack.c.bf16 %v578_v26, %v577_v24 }
 0x132   : > { %v936_v35 = vpack.c.bf16 %v568_v31, %v567_v29  ;;  %v956_v36 = vpack.c.bf16 %v576_v32, %v575_v30 }
 0x133   : > { %973 = vst [vmem:[%s1286_s12 + $0x8] sm:$0xff] %v941_v33   ;;  %977 = vst [vmem:[%s1286_s12 + $0x28] sm:$0xff] %v961_v34  }
 0x134   : > { %937 = vst [vmem:[%s1286_s12] sm:$0xff] %v936_v35   ;;  %976 = vst [vmem:[%s1286_s12 + $0x20] sm:$0xff] %v956_v36   ;;  %v1018_v37 = vpop.f32.mrb[4].mxu0  ;;  %v1026_v38 = vpop.f32.mrb[4].mxu1 }
 0x135   : > { %v462_v39 = vpop.f32.mrb[5].mxu0  ;;  %v494_v40 = vpop.f32.mrb[5].mxu1  ;;  %v573_v43 = vadd.f32 %v1018_v37, %v894_v17  ;;  %v581_v44 = vadd.f32 %v1026_v38, %v894_v17 }
 0x136   : > { %v1019_v41 = vpop.f32.mrb[6].mxu0  ;;  %v1027_v42 = vpop.f32.mrb[6].mxu1  ;;  %v571_v49 = vadd.f32 %v894_v17, %v462_v39  ;;  %v579_v50 = vadd.f32 %v894_v17, %v494_v40  ;;  %669 = sbr.rel (!%p1239_p5) target bundleno = 328 (0x148), region = 44 }
 0x137   : > { %v574_v45 = vadd.f32 %v1019_v41, %v894_v17  ;;  %v582_v46 = vadd.f32 %v1027_v42, %v894_v17  ;;  %v465_v47 = vpop.f32.mrb[7].mxu0  ;;  %v497_v48 = vpop.f32.mrb[7].mxu1 }
 0x138   : > { %v572_v51 = vadd.f32 %v894_v17, %v465_v47  ;;  %v580_v52 = vadd.f32 %v894_v17, %v497_v48 }
 0x139   : > { %v951_v53 = vpack.c.bf16 %v574_v45, %v573_v43  ;;  %v971_v54 = vpack.c.bf16 %v582_v46, %v581_v44 }
 0x13a   : > { %v946_v55 = vpack.c.bf16 %v572_v51, %v571_v49  ;;  %v966_v56 = vpack.c.bf16 %v580_v52, %v579_v50  ;;  %v694_v59 = vld [vmem:[%s1286_s12 + $0x8] sm:$0xf] (%p1239_p5)  ;;  %v696_v60 = vld [vmem:[%s1286_s12 + $0xc] sm:$0xf] (%p1239_p5) }
 0x13b   : > { %975 = vst [vmem:[%s1286_s12 + $0x18] sm:$0xff] %v951_v53   ;;  %979 = vst [vmem:[%s1286_s12 + $0x38] sm:$0xff] %v971_v54   ;;  %v690_v57 = vld [vmem:[%s1286_s12] sm:$0xf] (%p1239_p5)  ;;  %v692_v58 = vld [vmem:[%s1286_s12 + $0x4] sm:$0xf] (%p1239_p5) }
 0x13c   : > { %974 = vst [vmem:[%s1286_s12 + $0x10] sm:$0xff] %v946_v55   ;;  %978 = vst [vmem:[%s1286_s12 + $0x30] sm:$0xff] %v966_v56   ;;  %v706_v1 = vld [vmem:[%s1286_s12 + $0x20] sm:$0xf] (%p1239_p5)  ;;  %v708_v2 = vld [vmem:[%s1286_s12 + $0x24] sm:$0xf] (%p1239_p5) }
 0x13d   : > { %v710_v3 = vld [vmem:[%s1286_s12 + $0x28] sm:$0xf]  ;;  %v712_v4 = vld [vmem:[%s1286_s12 + $0x2c] sm:$0xf]  ;;  %691 = vst [vmem:[%s674_s5] sm:$0xf] %v690_v57 }
 0x13e   : > { %693 = vst [vmem:[%s674_s5 + $0xc] sm:$0xf] %v692_v58  ;;  %695 = vst [vmem:[%s674_s5 + $0x18] sm:$0xf] %v694_v59 }
 0x13f   : > { %697 = vst [vmem:[%s674_s5 + $0x24] sm:$0xf] %v696_v60  ;;  %707 = vst [vmem:[%s674_s5 + $0x60] sm:$0xf] %v706_v1 }
 0x140   : > { %709 = vst [vmem:[%s674_s5 + $0x6c] sm:$0xf] %v708_v2  ;;  %711 = vst [vmem:[%s674_s5 + $0x78] sm:$0xf] %v710_v3 }
 0x141   : > { %713 = vst [vmem:[%s674_s5 + $0x84] sm:$0xf] %v712_v4 }
 0x142   : > { %v702_v63 = vld [vmem:[%s1286_s12 + $0x18] sm:$0xf]  ;;  %v704_v0 = vld [vmem:[%s1286_s12 + $0x1c] sm:$0xf] }
 0x143   : > { %v698_v61 = vld [vmem:[%s1286_s12 + $0x10] sm:$0xf]  ;;  %v700_v62 = vld [vmem:[%s1286_s12 + $0x14] sm:$0xf]  ;;  %703 = vst [vmem:[%s674_s5 + $0x48] sm:$0xf] %v702_v63 }
 0x144   : > { %v714_v5 = vld [vmem:[%s1286_s12 + $0x30] sm:$0xf]  ;;  %699 = vst [vmem:[%s674_s5 + $0x30] sm:$0xf] %v698_v61  ;;  %701 = vst [vmem:[%s674_s5 + $0x3c] sm:$0xf] %v700_v62 }
 0x145   : > { %705 = vst [vmem:[%s674_s5 + $0x54] sm:$0xf] %v704_v0  ;;  %715 = vst [vmem:[%s674_s5 + $0x90] sm:$0xf] %v714_v5  ;;  %v716_v6 = vld [vmem:[%s1286_s12 + $0x34] sm:$0xf] }
 0x146   : > { %v718_v7 = vld [vmem:[%s1286_s12 + $0x38] sm:$0xf]  ;;  %v720_v8 = vld [vmem:[%s1286_s12 + $0x3c] sm:$0xf]  ;;  %717 = vst [vmem:[%s674_s5 + $0x9c] sm:$0xf] %v716_v6 }
 0x147   : > { %719 = vst [vmem:[%s674_s5 + $0xa8] sm:$0xf] %v718_v7  ;;  %721 = vst [vmem:[%s674_s5 + $0xb4] sm:$0xf] %v720_v8 }
 0x148 PF: > { %s13_s18 = sadd.s32 1, %s1171_s18   ;;  %s1345_s12 = smov %s1151_s13 }
 0x149   : > { %p10_p12 = scmp.ge.s32.totalorder %s13_s18, 8   ;;  %s1346_s13 = smov %s1250_s27 }
 0x14a   : > { %s1347_s14 = smov %s1163_s16  ;;  %s1348_s15 = smov %s1167_s17 }
 0x14b   : > { %s1349_s16 = smov %s1352_s19  ;;  %s1350_s17 = smov %s1356_s20 }
 0x14c   :  { %12 = sbr.rel (!%p10_p12) target bundleno = 4 (0x4), region = 117 }

// kernel: vision_flash_attention2.7
= control target key start
LH: loop header
LB: loop body
LE: loop exit
PB: predicated region body
PF: predicated region fallthrough
CT: control target
= control target key end

     0   :  { %s1043_s12 = smov 0   ;;  %s1045_s13 = smov 0   ;;  %s1130_s0 = inlined_call_operand.vmem [shape: bf16[256,128], index: 0, kind: input, shape index: {}]   ;;  %s1131_s1 = inlined_call_operand.vmem [shape: bf16[128,128], index: 1, kind: input, shape index: {}]   ;;  %s1132_s2 = inlined_call_operand.vmem [shape: f32[1,128], index: 2, kind: input, shape index: {}]   ;;  %s1133_s3 = inlined_call_operand.vmem [shape: bf16[256,128], index: 3, kind: output, shape index: {}]  }
   0x1   :  { %s1047_s14 = smov 0  }
   0x2 LB: > { %s32_s15 = sadd.s32 1, %s1017_s13  ;;  %p792_p0 = scmp.ge.s32.totalorder %s1021_s14, 1  ;;  %s1021_s14 = sphi %s1047_s14, %s13_s14   ;;  %s1017_s13 = sphi %s1045_s13, %s1135_s13   ;;  %s1013_s12 = sphi %s1043_s12, %s1134_s12  }
   0x3   : > { %p34_p1 = scmp.ge.s32.totalorder %s32_s15, 2  ;;  %p188_p2 = scmp.lt.s32.totalorder %s1021_s14, 3 }
   0x5   : > { %s1137_s15 = smov (%p34_p1, %s32_s15), 0  ;;  %p189_p3 = pnand %p792_p0, %p188_p2 }
   0x6   : > { %v983_v0 = vld [vmem:[%s1131_s1] sm:$0xff] (!%p189_p3)   ;;  %s793_s18 = sshll.u32 (!%p189_p3), %s1013_s12, 4  ;;  %v984_v1 = vld [vmem:[%s1131_s1 + $0x8] sm:$0xff] (!%p189_p3)   ;;  %v985_v2 = vld [vmem:[%s1131_s1 + $0x10] sm:$0xff] (!%p189_p3)  }
   0x7   : > { %192 = sbr.rel (%p189_p3) target bundleno = 299 (0x12b), region = 32  ;;  %p230_p4 = scmp.lt.s32.totalorder (!%p189_p3), %s793_s18, 31  ;;  %911 = vmatprep.subr.bf16.mxu0 (!%p189_p3), %v983_v0  ;;  %943 = vmatprep.subr.bf16.mxu1 (!%p189_p3), %v983_v0  ;;  %v986_v5 = vld [vmem:[%s1131_s1 + $0x18] sm:$0xff] (!%p189_p3)   ;;  %v987_v6 = vld [vmem:[%s1131_s1 + $0x20] sm:$0xff] (!%p189_p3)   ;;  %v988_v7 = vld [vmem:[%s1131_s1 + $0x28] sm:$0xff] (!%p189_p3)  }
   0x8   : > { %912 = vmatpush3.bf16.xpose.msra.mxu0 (!%p189_p3), %v983_v0  ;;  %951 = vmatpush3.bf16.xpose.msra.mxu1 (!%p189_p3), %v983_v0  ;;  %v989_v8 = vld [vmem:[%s1131_s1 + $0x30] sm:$0xff] (!%p189_p3)   ;;  %v990_v9 = vld [vmem:[%s1131_s1 + $0x38] sm:$0xff] (!%p189_p3)   ;;  %v813_v17 = vld [vmem:[%s1132_s2] ss:$0 sm:$0xff] (!%p189_p3) }
   0x9   : > { %913 = vmatprep.subr.bf16.mxu0 (!%p189_p3), %v984_v1  ;;  %944 = vmatprep.subr.bf16.mxu1 (!%p189_p3), %v984_v1 }
   0xe   : > { %s1139_s18 = smov (!%p230_p4, %s793_s18), 31 }
   0xf   : > { %s794_s21 = sshll.u32 %s1139_s18, 2 }
  0x10   : > { %s1075_s24 = scalar_lea.vmem %s1130_s0, %s794_s21  ;;  %914 = vmatpush3.bf16.xpose.msra.mxu0 %v984_v1  ;;  %952 = vmatpush3.bf16.xpose.msra.mxu1 %v984_v1  ;;  %s1111_s17 = scalar_lea.vmem %s1133_s3, %s794_s21 }
  0x11   : > { %v991_v3 = vld [vmem:[%s1075_s24] sm:$0xff]   ;;  %915 = vmatprep.subr.bf16.mxu0 %v985_v2  ;;  %945 = vmatprep.subr.bf16.mxu1 %v985_v2  ;;  %v993_v10 = vld [vmem:[%s1075_s24 + $0x8] sm:$0xff]   ;;  %v995_v12 = vld [vmem:[%s1075_s24 + $0x10] sm:$0xff]  }
  0x12   : > { %v992_v4 = vld [vmem:[%s1075_s24 + $0x20] sm:$0xff]   ;;  %927 = vmatprep.mubr.bf16.mxu0 %v991_v3  ;;  %v994_v11 = vld [vmem:[%s1075_s24 + $0x28] sm:$0xff]   ;;  %v996_v13 = vld [vmem:[%s1075_s24 + $0x30] sm:$0xff]  }
  0x13   : > { %935 = vmatprep.mubr.bf16.mxu1 %v992_v4  ;;  %v997_v14 = vld [vmem:[%s1075_s24 + $0x18] sm:$0xff]  }
  0x14   : > { %v998_v15 = vld [vmem:[%s1075_s24 + $0x38] sm:$0xff]  }
  0x18   : > { %916 = vmatpush3.bf16.xpose.msra.mxu0 %v985_v2  ;;  %953 = vmatpush3.bf16.xpose.msra.mxu1 %v985_v2 }
  0x19   : > { %917 = vmatprep.subr.bf16.mxu0 %v986_v5  ;;  %946 = vmatprep.subr.bf16.mxu1 %v986_v5 }
  0x20   : > { %918 = vmatpush3.bf16.xpose.msra.mxu0 %v986_v5  ;;  %954 = vmatpush3.bf16.xpose.msra.mxu1 %v986_v5 }
  0x21   : > { %919 = vmatprep.subr.bf16.mxu0 %v987_v6  ;;  %947 = vmatprep.subr.bf16.mxu1 %v987_v6 }
  0x28   : > { %920 = vmatpush3.bf16.xpose.msra.mxu0 %v987_v6  ;;  %955 = vmatpush3.bf16.xpose.msra.mxu1 %v987_v6 }
  0x29   : > { %921 = vmatprep.subr.bf16.mxu0 %v988_v7  ;;  %948 = vmatprep.subr.bf16.mxu1 %v988_v7 }
  0x30   : > { %922 = vmatpush3.bf16.xpose.msra.mxu0 %v988_v7  ;;  %956 = vmatpush3.bf16.xpose.msra.mxu1 %v988_v7 }
  0x31   : > { %923 = vmatprep.subr.bf16.mxu0 %v989_v8  ;;  %949 = vmatprep.subr.bf16.mxu1 %v989_v8 }
  0x38   : > { %924 = vmatpush3.bf16.xpose.msra.mxu0 %v989_v8  ;;  %957 = vmatpush3.bf16.xpose.msra.mxu1 %v989_v8 }
  0x39   : > { %925 = vmatprep.subr.bf16.mxu0 %v990_v9  ;;  %950 = vmatprep.subr.bf16.mxu1 %v990_v9 }
  0x40   : > { %926 = vmatpush3.bf16.xpose.msra.mxu0 %v990_v9  ;;  %958 = vmatpush3.bf16.xpose.msra.mxu1 %v990_v9 }
  0x47   : > { %928 = vmatmul.mubr.bf16.vlgmr.msra.gmra.mrb[0].mxu0 %v993_v10  ;;  %936 = vmatmul.mubr.bf16.vlgmr.msra.gmra.mrb[0].mxu1 %v994_v11 }
  0x48   : > { %931 = vmatprep.mubr.bf16.mxu0 %v995_v12  ;;  %939 = vmatprep.mubr.bf16.mxu1 %v996_v13 }
  0x4f   : > { %932 = vmatmul.mubr.bf16.gmra.mrb[4].mxu0 %v997_v14  ;;  %940 = vmatmul.mubr.bf16.gmra.mrb[4].mxu1 %v998_v15 }
 0x11a   : > { %v929_v16 = vpop.f32.mrb[0].mxu0  ;;  %v937_v18 = vpop.f32.mrb[0].mxu1 }
 0x11b   : > { %v458_v19 = vpop.f32.mrb[1].mxu0  ;;  %v490_v20 = vpop.f32.mrb[1].mxu1  ;;  %v581_v23 = vadd.f32 %v929_v16, %v813_v17  ;;  %v589_v24 = vadd.f32 %v937_v18, %v813_v17 }
 0x11c   : > { %v930_v21 = vpop.f32.mrb[2].mxu0  ;;  %v938_v22 = vpop.f32.mrb[2].mxu1  ;;  %v579_v29 = vadd.f32 %v813_v17, %v458_v19  ;;  %v587_v30 = vadd.f32 %v813_v17, %v490_v20 }
 0x11d   : > { %v582_v25 = vadd.f32 %v930_v21, %v813_v17  ;;  %v590_v26 = vadd.f32 %v938_v22, %v813_v17  ;;  %v461_v27 = vpop.f32.mrb[3].mxu0  ;;  %v493_v28 = vpop.f32.mrb[3].mxu1 }
 0x11e   : > { %v580_v31 = vadd.f32 %v813_v17, %v461_v27  ;;  %v588_v32 = vadd.f32 %v813_v17, %v493_v28 }
 0x11f   : > { %v856_v33 = vpack.c.bf16 %v582_v25, %v581_v23  ;;  %v876_v34 = vpack.c.bf16 %v590_v26, %v589_v24 }
 0x120   : > { %v851_v35 = vpack.c.bf16 %v580_v31, %v579_v29  ;;  %v871_v36 = vpack.c.bf16 %v588_v32, %v587_v30 }
 0x121   : > { %888 = vst [vmem:[%s1111_s17 + $0x8] sm:$0xff] %v856_v33   ;;  %892 = vst [vmem:[%s1111_s17 + $0x28] sm:$0xff] %v876_v34  }
 0x122   : > { %852 = vst [vmem:[%s1111_s17] sm:$0xff] %v851_v35   ;;  %891 = vst [vmem:[%s1111_s17 + $0x20] sm:$0xff] %v871_v36   ;;  %v933_v37 = vpop.f32.mrb[4].mxu0  ;;  %v941_v38 = vpop.f32.mrb[4].mxu1 }
 0x123   : > { %v474_v39 = vpop.f32.mrb[5].mxu0  ;;  %v506_v40 = vpop.f32.mrb[5].mxu1  ;;  %v585_v43 = vadd.f32 %v933_v37, %v813_v17  ;;  %v593_v44 = vadd.f32 %v941_v38, %v813_v17 }
 0x124   : > { %v934_v41 = vpop.f32.mrb[6].mxu0  ;;  %v942_v42 = vpop.f32.mrb[6].mxu1  ;;  %v583_v49 = vadd.f32 %v813_v17, %v474_v39  ;;  %v591_v50 = vadd.f32 %v813_v17, %v506_v40 }
 0x125   : > { %v586_v45 = vadd.f32 %v934_v41, %v813_v17  ;;  %v594_v46 = vadd.f32 %v942_v42, %v813_v17  ;;  %v477_v47 = vpop.f32.mrb[7].mxu0  ;;  %v509_v48 = vpop.f32.mrb[7].mxu1 }
 0x126   : > { %v584_v51 = vadd.f32 %v813_v17, %v477_v47  ;;  %v592_v52 = vadd.f32 %v813_v17, %v509_v48 }
 0x127   : > { %v866_v53 = vpack.c.bf16 %v586_v45, %v585_v43  ;;  %v886_v54 = vpack.c.bf16 %v594_v46, %v593_v44 }
 0x128   : > { %v861_v55 = vpack.c.bf16 %v584_v51, %v583_v49  ;;  %v881_v56 = vpack.c.bf16 %v592_v52, %v591_v50 }
 0x129   : > { %890 = vst [vmem:[%s1111_s17 + $0x18] sm:$0xff] %v866_v53   ;;  %894 = vst [vmem:[%s1111_s17 + $0x38] sm:$0xff] %v886_v54  }
 0x12a   : > { %889 = vst [vmem:[%s1111_s17 + $0x10] sm:$0xff] %v861_v55   ;;  %893 = vst [vmem:[%s1111_s17 + $0x30] sm:$0xff] %v881_v56  }
 0x12b PF: > { %s13_s14 = sadd.s32 1, %s1021_s14   ;;  %s1134_s12 = smov %s1017_s13 }
 0x12c   : > { %p10_p5 = scmp.ge.s32.totalorder %s13_s14, 4   ;;  %s1135_s13 = smov %s1137_s15 }
 0x12e   :  { %12 = sbr.rel (!%p10_p5) target bundleno = 2 (0x2), region = 76 }

// kernel: vision_flash_attention2.5
= control target key start
LH: loop header
LB: loop body
LE: loop exit
PB: predicated region body
PF: predicated region fallthrough
CT: control target
= control target key end

     0   :  { %s2172_s18 = smov 0   ;;  %s2174_s19 = smov 0   ;;  %s3352_s0 = inlined_call_operand.vmem [shape: bf16[256,384], index: 0, kind: input, shape index: {}, may-alias: {0,1}]   ;;  %s3353_s1 = inlined_call_operand.vmem [shape: bf16[256,384], index: 1, kind: input, shape index: {}, may-alias: {0,1}]   ;;  %s3354_s2 = inlined_call_operand.vmem [shape: f32[256,64], index: 2, kind: input, shape index: {}]   ;;  %s3355_s3 = inlined_call_operand.vmem [shape: f32[256,64], index: 3, kind: input, shape index: {}]   ;;  %s3356_s4 = inlined_call_operand.vmem [shape: bf16[256,128], index: 4, kind: output, shape index: {0}]   ;;  %s3357_s5 = inlined_call_operand.vmem [shape: bf16[256,128], index: 5, kind: output, shape index: {1}]  }
   0x1   :  { %s2176_s20 = smov 0  }
   0x2 LB: > { %s1647_s21 = sadd.s32 4294967295, %s2137_s20   ;;  %s2189_s22 = sadd.s32 1, %s2137_s20   ;;  %s2137_s20 = sphi %s2176_s20, %s3603_s20   ;;  %s2133_s19 = sphi %s2174_s19, %s3602_s19   ;;  %s2129_s18 = sphi %s2172_s18, %s3601_s18  }
   0x3   : > { %s20_s23 = ssub.s32 %s2137_s20, %s2189_s22  ;;  %s23_s24 = sadd.s32 1, %s2133_s19 }
   0x4   : > { %p21_p0 = scmp.eq.s32.totalorder %s20_s23, 0  ;;  %p30_p1 = scmp.ne.s32.totalorder %s2133_s19, %s2129_s18 }
   0x5   : > { %p31_p2 = scmp.eq.s32.totalorder %s2137_s20, 0  ;;  %p1650_p4 = scmp.ge.s32.totalorder %s2137_s20, 2 }
   0x6   : > { %s2198_s25 = scalar_select %p21_p0, %s2133_s19, %s23_s24  }
   0x7   : > { %p2200_p3 = por %p31_p2, %p30_p1  ;;  %186 = sbr.rel (%p1650_p4) target bundleno = 44 (0x2c), region = 16 }
   0xe   : > { %189 = sbr.rel (!%p2200_p3) target bundleno = 29 (0x1d), region = 20  ;;  %s191_s27 = sand.u32 (%p2200_p3), 1, %s2133_s19  }
   0xf   : > { %s1922_s28 = smul.u32 (%p2200_p3), 192, %s2137_s20  ;;  %s1651_s29 = sshll.u32 (%p2200_p3), %s191_s27, 6 }
  0x10   : > { %s193_s8 = scalar_lea.vmem (%p2200_p3), [#allocation2], %s1651_s29 }
  0x11   : > { %s2212_s7 = scalar_lea.vmem (%p2200_p3), %s3352_s0, %s1922_s28 }
  0x12   : > { %v213_v0 = vld [vmem:[%s2212_s7] sm:$0xf] (%p2200_p3)  ;;  %v215_v1 = vld [vmem:[%s2212_s7 + $0xc] sm:$0xf] (%p2200_p3)  ;;  %v217_v2 = vld [vmem:[%s2212_s7 + $0x18] sm:$0xf] (%p2200_p3) }
  0x13   : > { %214 = vst [vmem:[%s193_s8] sm:$0xf] (%p2200_p3), %v213_v0  ;;  %216 = vst [vmem:[%s193_s8 + $0x4] sm:$0xf] (%p2200_p3), %v215_v1  ;;  %v219_v3 = vld [vmem:[%s2212_s7 + $0x24] sm:$0xf] (%p2200_p3) }
  0x14   : > { %218 = vst [vmem:[%s193_s8 + $0x8] sm:$0xf] (%p2200_p3), %v217_v2  ;;  %v221_v4 = vld [vmem:[%s2212_s7 + $0x30] sm:$0xf] (%p2200_p3)  ;;  %v223_v5 = vld [vmem:[%s2212_s7 + $0x3c] sm:$0xf] (%p2200_p3) }
  0x15   : > { %220 = vst [vmem:[%s193_s8 + $0xc] sm:$0xf] %v219_v3  ;;  %222 = vst [vmem:[%s193_s8 + $0x10] sm:$0xf] %v221_v4  ;;  %v225_v6 = vld [vmem:[%s2212_s7 + $0x48] sm:$0xf] }
  0x16   : > { %224 = vst [vmem:[%s193_s8 + $0x14] sm:$0xf] %v223_v5  ;;  %v227_v7 = vld [vmem:[%s2212_s7 + $0x54] sm:$0xf]  ;;  %v229_v8 = vld [vmem:[%s2212_s7 + $0x60] sm:$0xf] }
  0x17   : > { %226 = vst [vmem:[%s193_s8 + $0x18] sm:$0xf] %v225_v6  ;;  %228 = vst [vmem:[%s193_s8 + $0x1c] sm:$0xf] %v227_v7  ;;  %v231_v9 = vld [vmem:[%s2212_s7 + $0x6c] sm:$0xf] }
  0x18   : > { %230 = vst [vmem:[%s193_s8 + $0x20] sm:$0xf] %v229_v8  ;;  %v233_v10 = vld [vmem:[%s2212_s7 + $0x78] sm:$0xf]  ;;  %v235_v11 = vld [vmem:[%s2212_s7 + $0x84] sm:$0xf] }
  0x19   : > { %232 = vst [vmem:[%s193_s8 + $0x24] sm:$0xf] %v231_v9  ;;  %234 = vst [vmem:[%s193_s8 + $0x28] sm:$0xf] %v233_v10  ;;  %v237_v12 = vld [vmem:[%s2212_s7 + $0x90] sm:$0xf] }
  0x1a   : > { %236 = vst [vmem:[%s193_s8 + $0x2c] sm:$0xf] %v235_v11  ;;  %v239_v13 = vld [vmem:[%s2212_s7 + $0x9c] sm:$0xf]  ;;  %v241_v14 = vld [vmem:[%s2212_s7 + $0xa8] sm:$0xf] }
  0x1b   : > { %238 = vst [vmem:[%s193_s8 + $0x30] sm:$0xf] %v237_v12  ;;  %240 = vst [vmem:[%s193_s8 + $0x34] sm:$0xf] %v239_v13  ;;  %v243_v15 = vld [vmem:[%s2212_s7 + $0xb4] sm:$0xf] }
  0x1c   : > { %242 = vst [vmem:[%s193_s8 + $0x38] sm:$0xf] %v241_v14  ;;  %244 = vst [vmem:[%s193_s8 + $0x3c] sm:$0xf] %v243_v15 }
  0x1d PF: > { %299 = sbr.rel (!%p2200_p3) target bundleno = 44 (0x2c), region = 61  ;;  %s301_s9 = sand.u32 (%p2200_p3), 1, %s2133_s19  }
  0x1e   : > { %s1656_s10 = smul.u32 (%p2200_p3), 192, %s2137_s20  ;;  %s1655_s11 = sshll.u32 (%p2200_p3), %s301_s9, 6 }
  0x1f   : > { %s303_s15 = scalar_lea.vmem (%p2200_p3), [#allocation3], %s1655_s11 }
  0x20   : > { %s2237_s14 = scalar_lea.vmem (%p2200_p3), %s3353_s1, %s1656_s10 }
  0x21   : > { %v1657_v16 = vld [vmem:[%s2237_s14 + $0x4] sm:$0xf] (%p2200_p3)  ;;  %v1658_v17 = vld [vmem:[%s2237_s14 + $0x10] sm:$0xf] (%p2200_p3)  ;;  %v1659_v18 = vld [vmem:[%s2237_s14 + $0x1c] sm:$0xf] (%p2200_p3) }
  0x22   : > { %325 = vst [vmem:[%s303_s15] sm:$0xf] (%p2200_p3), %v1657_v16  ;;  %327 = vst [vmem:[%s303_s15 + $0x4] sm:$0xf] (%p2200_p3), %v1658_v17  ;;  %v1660_v19 = vld [vmem:[%s2237_s14 + $0x28] sm:$0xf] (%p2200_p3) }
  0x23   : > { %329 = vst [vmem:[%s303_s15 + $0x8] sm:$0xf] (%p2200_p3), %v1659_v18  ;;  %v1661_v20 = vld [vmem:[%s2237_s14 + $0x34] sm:$0xf] (%p2200_p3)  ;;  %v1662_v21 = vld [vmem:[%s2237_s14 + $0x40] sm:$0xf] (%p2200_p3) }
  0x24   : > { %331 = vst [vmem:[%s303_s15 + $0xc] sm:$0xf] %v1660_v19  ;;  %333 = vst [vmem:[%s303_s15 + $0x10] sm:$0xf] %v1661_v20  ;;  %v1663_v22 = vld [vmem:[%s2237_s14 + $0x4c] sm:$0xf] }
  0x25   : > { %335 = vst [vmem:[%s303_s15 + $0x14] sm:$0xf] %v1662_v21  ;;  %v1664_v23 = vld [vmem:[%s2237_s14 + $0x58] sm:$0xf]  ;;  %v1665_v24 = vld [vmem:[%s2237_s14 + $0x64] sm:$0xf] }
  0x26   : > { %337 = vst [vmem:[%s303_s15 + $0x18] sm:$0xf] %v1663_v22  ;;  %339 = vst [vmem:[%s303_s15 + $0x1c] sm:$0xf] %v1664_v23  ;;  %v1666_v25 = vld [vmem:[%s2237_s14 + $0x70] sm:$0xf] }
  0x27   : > { %341 = vst [vmem:[%s303_s15 + $0x20] sm:$0xf] %v1665_v24  ;;  %v1667_v26 = vld [vmem:[%s2237_s14 + $0x7c] sm:$0xf]  ;;  %v1668_v27 = vld [vmem:[%s2237_s14 + $0x88] sm:$0xf] }
  0x28   : > { %343 = vst [vmem:[%s303_s15 + $0x24] sm:$0xf] %v1666_v25  ;;  %345 = vst [vmem:[%s303_s15 + $0x28] sm:$0xf] %v1667_v26  ;;  %v1669_v28 = vld [vmem:[%s2237_s14 + $0x94] sm:$0xf] }
  0x29   : > { %347 = vst [vmem:[%s303_s15 + $0x2c] sm:$0xf] %v1668_v27  ;;  %v1670_v29 = vld [vmem:[%s2237_s14 + $0xa0] sm:$0xf]  ;;  %v1671_v30 = vld [vmem:[%s2237_s14 + $0xac] sm:$0xf] }
  0x2a   : > { %349 = vst [vmem:[%s303_s15 + $0x30] sm:$0xf] %v1669_v28  ;;  %351 = vst [vmem:[%s303_s15 + $0x34] sm:$0xf] %v1670_v29  ;;  %v1672_v31 = vld [vmem:[%s2237_s14 + $0xb8] sm:$0xf] }
  0x2b   : > { %353 = vst [vmem:[%s303_s15 + $0x38] sm:$0xf] %v1671_v30  ;;  %355 = vst [vmem:[%s303_s15 + $0x3c] sm:$0xf] %v1672_v31 }
  0x2c PF: > { %p1673_p5 = scmp.ge.s32.totalorder %s2137_s20, 1  ;;  %p427_p6 = scmp.lt.s32.totalorder %s2137_s20, 3 }
  0x2e   : > { %p428_p7 = pnand %p1673_p5, %p427_p6 }
  0x30   : > { %431 = sbr.rel (%p428_p7) target bundleno = 400 (0x190), region = 110 }
  0x37   : > { %s434_s16 = sand.u32 1, %s2129_s18   ;;  %s2139_s18 = smov 96   ;;  %vm721_vm0 = vcmask 261120   ;;  %vm1314_vm1 = vcmask 523264  }
  0x38   : > { %s2258_s17 = sshll.u32 %s434_s16, 6  ;;  %s2140_s24 = smov 32  }
  0x39   : > { %s436_s23 = scalar_lea.vmem [#allocation2], %s2258_s17  ;;  %s443_s26 = scalar_lea.vmem [#allocation3], %s2258_s17 }
  0x3a   : > { %v1895_v32 = vld [vmem:[%s436_s23 + $0x10] sm:$0xff]   ;;  %v1751_v33 = vld [vmem:[%s436_s23] sm:$0xff]   ;;  %v1896_v34 = vld [vmem:[%s436_s23 + $0x18] sm:$0xff]   ;;  %s1676_s27 = sshll.u32 %s1647_s21, 4  ;;  %s2141_s30 = smov 64  }
  0x3b   : > { %v2261_v35 = vunpack.c.l.bf16 %v1895_v32  ;;  %v2263_v36 = vunpack.c.h.bf16 %v1895_v32  ;;  %v2265_v37 = vunpack.c.l.bf16 %v1751_v33  ;;  %v2267_v38 = vunpack.c.h.bf16 %v1751_v33  ;;  %v1894_v39 = vld [vmem:[%s436_s23 + $0x8] sm:$0xff]   ;;  %v1897_v45 = vld [vmem:[%s436_s23 + $0x20] sm:$0xff]   ;;  %v1900_v54 = vld [vmem:[%s436_s23 + $0x38] sm:$0xff]   ;;  %p490_p8 = scmp.lt.s32.totalorder %s1676_s27, 31 }
  0x3c   : > { %v1898_v40 = vld [vmem:[%s436_s23 + $0x28] sm:$0xff]   ;;  %v2269_v41 = vunpack.c.l.bf16 %v1896_v34  ;;  %v2271_v42 = vunpack.c.h.bf16 %v1896_v34  ;;  %v2273_v43 = vunpack.c.l.bf16 %v1894_v39  ;;  %v2275_v44 = vunpack.c.h.bf16 %v1894_v39  ;;  %v1899_v55 = vld [vmem:[%s436_s23 + $0x30] sm:$0xff]   ;;  %v1783_v1 = vld [vmem:[%s443_s26] sm:$0xff]  }
  0x3d   : > { %3417 = vst [vmem:[#allocation4_spill] sm:$0xff] %v2261_v35  ;;  %3418 = vst [vmem:[#allocation5_spill] sm:$0xff] %v2263_v36  ;;  %v1960_v46 = vpack.i.bf16 %v2263_v36, %v2261_v35  ;;  %v1950_v47 = vpack.i.bf16 %v2267_v38, %v2265_v37  ;;  %v2281_v48 = vunpack.c.l.bf16 %v1898_v40  ;;  %v2283_v49 = vunpack.c.h.bf16 %v1898_v40  ;;  %v1901_v0 = vld [vmem:[%s443_s26 + $0x8] sm:$0xff]   ;;  %v1903_v6 = vld [vmem:[%s443_s26 + $0x18] sm:$0xff]   ;;  %s3605_s27 = smov (!%p490_p8, %s1676_s27), 31 }
  0x3e   : > { %3419 = vst [vmem:[#allocation6_spill] sm:$0xff] %v2265_v37  ;;  %3420 = vst [vmem:[#allocation7_spill] sm:$0xff] %v2267_v38  ;;  %v1965_v50 = vpack.i.bf16 %v2271_v42, %v2269_v41  ;;  %v1955_v51 = vpack.i.bf16 %v2275_v44, %v2273_v43  ;;  %v2291_v52 = vunpack.c.l.bf16 %v1897_v45  ;;  %v2293_v53 = vunpack.c.h.bf16 %v1897_v45  ;;  %v1902_v7 = vld [vmem:[%s443_s26 + $0x10] sm:$0xff]   ;;  %v1905_v14 = vld [vmem:[%s443_s26 + $0x28] sm:$0xff]   ;;  %s1677_s28 = sshll.u32 %s3605_s27, 3  ;;  %s1681_s9 = sshll.u32 %s3605_s27, 2 }
  0x3f   : > { %3421 = vst [vmem:[#allocation8_spill] sm:$0xff] %v2269_v41  ;;  %3422 = vst [vmem:[#allocation9_spill] sm:$0xff] %v2271_v42  ;;  %1961 = vrot.lane.b32.xlu1 %v1960_v46, %s2139_s18  ;;  %1951 = vrot.lane.b32.xlu0 %v1950_v47, %s2139_s18  ;;  %v1975_v56 = vpack.i.bf16 %v2283_v49, %v2281_v48  ;;  %v2297_v57 = vunpack.c.l.bf16 %v1900_v54  ;;  %v2303_v59 = vunpack.c.h.bf16 %v1900_v54  ;;  %v2305_v60 = vunpack.c.l.bf16 %v1899_v55  ;;  %v1904_v15 = vld [vmem:[%s443_s26 + $0x20] sm:$0xff]   ;;  %v1907_v22 = vld [vmem:[%s443_s26 + $0x38] sm:$0xff]   ;;  %s2398_s29 = scalar_lea.vmem %s3354_s2, %s1677_s28  ;;  %s2503_s8 = scalar_lea.vmem %s3355_s3, %s1677_s28 }
  0x40   : > { %3423 = vst [vmem:[#allocation10_spill] sm:$0xff] %v2273_v43  ;;  %3424 = vst [vmem:[#allocation11_spill] sm:$0xff] %v2275_v44  ;;  %v1970_v58 = vpack.i.bf16 %v2293_v53, %v2291_v52  ;;  %v2307_v61 = vunpack.c.h.bf16 %v1899_v55  ;;  %v2324_v2 = vunpack.c.l.bf16 %v1901_v0  ;;  %v2326_v3 = vunpack.c.h.bf16 %v1901_v0  ;;  %v1906_v23 = vld [vmem:[%s443_s26 + $0x30] sm:$0xff]   ;;  %v2403_v32 = vld [vmem:[%s2398_s29 + $0x8] sm:$0xff]  ;;  %s3176_s12 = scalar_lea.vmem %s3356_s4, %s1681_s9  ;;  %s3265_s15 = scalar_lea.vmem %s3357_s5, %s1681_s9 }
  0x41   : > { %3425 = vst [vmem:[#allocation12_spill] sm:$0xff] %v2281_v48  ;;  %3426 = vst [vmem:[#allocation13_spill] sm:$0xff] %v2283_v49  ;;  %v1985_v62 = vpack.i.bf16 %v2303_v59, %v2297_v57  ;;  %v2328_v4 = vunpack.c.l.bf16 %v1783_v1  ;;  %v2330_v5 = vunpack.c.h.bf16 %v1783_v1  ;;  %v2332_v8 = vunpack.c.l.bf16 %v1903_v6  ;;  %v2406_v33 = vld [vmem:[%s2398_s29] sm:$0xff]  ;;  %v2413_v34 = vld [vmem:[%s2398_s29 + $0x18] sm:$0xff] }
  0x42   : > { %3427 = vst [vmem:[#allocation14_spill] sm:$0xff] %v2291_v52  ;;  %3428 = vst [vmem:[#allocation15_spill] sm:$0xff] %v2293_v53  ;;  %v1980_v63 = vpack.i.bf16 %v2307_v61, %v2305_v60  ;;  %v2334_v9 = vunpack.c.h.bf16 %v1903_v6  ;;  %v2035_v10 = vpack.i.bf16 %v2326_v3, %v2324_v2  ;;  %v2342_v12 = vunpack.c.l.bf16 %v1902_v7  ;;  %v2416_v39 = vld [vmem:[%s2398_s29 + $0x10] sm:$0xff]  ;;  %v2423_v40 = vld [vmem:[%s2398_s29 + $0x28] sm:$0xff] }
  0x43   : > { %3429 = vst [vmem:[#allocation16_spill] sm:$0xff] %v2297_v57  ;;  %1966 = vrot.lane.b32.xlu1 %v1965_v50, %s2139_s18  ;;  %1956 = vrot.lane.b32.xlu0 %v1955_v51, %s2139_s18  ;;  %3430 = vst [vmem:[#allocation17_spill] sm:$0xff] %v2303_v59  ;;  %v2030_v11 = vpack.i.bf16 %v2330_v5, %v2328_v4  ;;  %v2344_v13 = vunpack.c.h.bf16 %v1902_v7  ;;  %v2346_v16 = vunpack.c.l.bf16 %v1905_v14  ;;  %v2348_v17 = vunpack.c.h.bf16 %v1905_v14  ;;  %v2426_v45 = vld [vmem:[%s2398_s29 + $0x20] sm:$0xff]  ;;  %v2453_v54 = vld [vmem:[%s2398_s29 + $0x58] sm:$0xff] }
  0x44   : > { %3431 = vst [vmem:[#allocation18_spill] sm:$0xff] %v2305_v60  ;;  %3432 = vst [vmem:[#allocation19_spill] sm:$0xff] %v2307_v61  ;;  %v2045_v18 = vpack.i.bf16 %v2334_v9, %v2332_v8  ;;  %v2356_v20 = vunpack.c.l.bf16 %v1904_v15  ;;  %v2358_v21 = vunpack.c.h.bf16 %v1904_v15  ;;  %v2362_v25 = vunpack.c.l.bf16 %v1907_v22  ;;  %v2456_v55 = vld [vmem:[%s2398_s29 + $0x50] sm:$0xff]  ;;  %v2536_v60 = vld [vmem:[%s2503_s8] sm:$0xff] }
  0x45   : > { %3433 = vst [vmem:[#allocation20_spill] sm:$0xff] %v2324_v2  ;;  %3434 = vst [vmem:[#allocation21_spill] sm:$0xff] %v2332_v8  ;;  %v2040_v19 = vpack.i.bf16 %v2344_v13, %v2342_v12  ;;  %v2055_v24 = vpack.i.bf16 %v2348_v17, %v2346_v16  ;;  %v2368_v27 = vunpack.c.h.bf16 %v1907_v22  ;;  %v2370_v28 = vunpack.c.l.bf16 %v1906_v23 }
  0x46   : > { %3435 = vst [vmem:[#allocation22_spill] sm:$0xff] %v2334_v9  ;;  %3436 = vst [vmem:[#allocation23_spill] sm:$0xff] %v2342_v12  ;;  %v2050_v26 = vpack.i.bf16 %v2358_v21, %v2356_v20  ;;  %v2372_v29 = vunpack.c.h.bf16 %v1906_v23  ;;  %v869_v22 = vmul.f32 %v2275_v44, %v2413_v34  ;;  %v868_v23 = vmul.f32 %v2273_v43, %v2416_v39  ;;  %v2581_v44 = vld [vmem:[%s2503_s8 + $0x38] sm:$0xff] }
  0x47   : > { %1976 = vrot.lane.b32.xlu1 %v1975_v56, %s2139_s18  ;;  %1971 = vrot.lane.b32.xlu0 %v1970_v58, %s2139_s18  ;;  %3437 = vst [vmem:[#allocation24_spill] sm:$0xff] %v2344_v13  ;;  %3438 = vst [vmem:[#allocation25_spill] sm:$0xff] %v2346_v16  ;;  %v2065_v30 = vpack.i.bf16 %v2368_v27, %v2362_v25  ;;  %v2526_v16 = vld [vmem:[%s2503_s8 + $0x10] sm:$0xff] }
  0x48   : > { %3439 = vst [vmem:[#allocation26_spill] sm:$0xff] %v2348_v17  ;;  %3440 = vst [vmem:[#allocation27_spill] sm:$0xff] %v2356_v20  ;;  %v2060_v31 = vpack.i.bf16 %v2372_v29, %v2370_v28 }
  0x49   : > { %3441 = vst [vmem:[#allocation28_spill] sm:$0xff] %v2358_v21  ;;  %3442 = vst [vmem:[#allocation29_spill] sm:$0xff] %v2362_v25 }
  0x4a   : > { %3443 = vst [vmem:[#allocation30_spill] sm:$0xff] %v2368_v27  ;;  %3444 = vst [vmem:[#allocation31_spill] sm:$0xff] %v2370_v28 }
  0x4b   : > { %1986 = vrot.lane.b32.xlu1 %v1985_v62, %s2139_s18  ;;  %1981 = vrot.lane.b32.xlu0 %v1980_v63, %s2139_s18  ;;  %3445 = vst [vmem:[#allocation32_spill] sm:$0xff] %v2372_v29  ;;  %3446 = vst [vmem:[#allocation33_spill] sm:$0xff] %v2453_v54 }
  0x4c   : > { %3447 = vst [vmem:[#allocation34_spill] sm:$0xff] %v2456_v55 }
  0x4f   : > { %1996 = vrot.lane.b32.xlu1 %v1955_v51, %s2140_s24  ;;  %1991 = vrot.lane.b32.xlu0 %v1950_v47, %s2140_s24  ;;  %v2436_v47 = vld [vmem:[%s2398_s29 + $0x30] sm:$0xff]  ;;  %v2446_v51 = vld [vmem:[%s2398_s29 + $0x40] sm:$0xff] }
  0x53   : > { %2006 = vrot.lane.b32.xlu1 %v1965_v50, %s2140_s24  ;;  %2001 = vrot.lane.b32.xlu0 %v1960_v46, %s2140_s24  ;;  %v2433_v46 = vld [vmem:[%s2398_s29 + $0x38] sm:$0xff]  ;;  %v2443_v50 = vld [vmem:[%s2398_s29 + $0x48] sm:$0xff] }
  0x57   : > { %2016 = vrot.lane.b32.xlu1 %v1975_v56, %s2140_s24  ;;  %2011 = vrot.lane.b32.xlu0 %v1970_v58, %s2140_s24  ;;  %v2463_v56 = vld [vmem:[%s2398_s29 + $0x68] sm:$0xff]  ;;  %v2466_v58 = vld [vmem:[%s2398_s29 + $0x60] sm:$0xff] }
  0x58   : > { %3448 = vst [vmem:[#allocation35_spill] sm:$0xff] %v2463_v56  ;;  %3449 = vst [vmem:[#allocation36_spill] sm:$0xff] %v2466_v58 }
  0x5b   : > { %2026 = vrot.lane.b32.xlu1 %v1985_v62, %s2140_s24  ;;  %2021 = vrot.lane.b32.xlu0 %v1980_v63, %s2140_s24  ;;  %v2473_v62 = vld [vmem:[%s2398_s29 + $0x78] sm:$0xff]  ;;  %v2476_v63 = vld [vmem:[%s2398_s29 + $0x70] sm:$0xff] }
  0x5c   : > { %3450 = vst [vmem:[#allocation37_spill] sm:$0xff] %v2473_v62  ;;  %3451 = vst [vmem:[#allocation38_spill] sm:$0xff] %v2476_v63 }
  0x5f   : > { %2036 = vrot.lane.b32.xlu1 %v2035_v10, %s2139_s18  ;;  %2031 = vrot.lane.b32.xlu0 %v2030_v11, %s2139_s18 }
  0x63   : > { %2046 = vrot.lane.b32.xlu1 %v2045_v18, %s2139_s18  ;;  %2041 = vrot.lane.b32.xlu0 %v2040_v19, %s2139_s18 }
  0x67   : > { %2056 = vrot.lane.b32.xlu1 %v2055_v24, %s2139_s18  ;;  %2051 = vrot.lane.b32.xlu0 %v2050_v26, %s2139_s18 }
  0x6b   : > { %2066 = vrot.lane.b32.xlu1 %v2065_v30, %s2139_s18  ;;  %2061 = vrot.lane.b32.xlu0 %v2060_v31, %s2139_s18 }
  0x6f   : > { %2076 = vrot.lane.b32.xlu1 %v2035_v10, %s2140_s24  ;;  %2071 = vrot.lane.b32.xlu0 %v2030_v11, %s2140_s24 }
  0x73   : > { %2086 = vrot.lane.b32.xlu1 %v2045_v18, %s2140_s24  ;;  %2081 = vrot.lane.b32.xlu0 %v2040_v19, %s2140_s24  ;;  %v867_v18 = vmul.f32 %v2267_v38, %v2403_v32  ;;  %v866_v19 = vmul.f32 %v2265_v37, %v2406_v33  ;;  %v2584_v37 = vld [vmem:[%s2503_s8 + $0x20] sm:$0xff]  ;;  %v2587_v38 = vld [vmem:[%s2503_s8 + $0x28] sm:$0xff] }
  0x77   : > { %2096 = vrot.lane.b32.xlu1 %v2055_v24, %s2140_s24  ;;  %2091 = vrot.lane.b32.xlu0 %v2050_v26, %s2140_s24  ;;  %v871_v24 = vmul.f32 %v2263_v36, %v2423_v40  ;;  %v870_v26 = vmul.f32 %v2261_v35, %v2426_v45 }
  0x7b   : > { %2106 = vrot.lane.b32.xlu1 %v2065_v30, %s2140_s24  ;;  %2101 = vrot.lane.b32.xlu0 %v2060_v31, %s2140_s24  ;;  %v873_v30 = vmul.f32 %v2271_v42, %v2433_v46  ;;  %v872_v31 = vmul.f32 %v2269_v41, %v2436_v47 }
  0x7f   : > { %1028 = vrot.lane.b32.xlu1 %v2403_v32, %s2141_s30  ;;  %1026 = vrot.lane.b32.xlu0 %v2406_v33, %s2141_s30 }
  0x83   : > { %1032 = vrot.lane.b32.xlu1 %v2413_v34, %s2141_s30  ;;  %1030 = vrot.lane.b32.xlu0 %v2416_v39, %s2141_s30 }
  0x87   : > { %1036 = vrot.lane.b32.xlu1 %v2423_v40, %s2141_s30  ;;  %1034 = vrot.lane.b32.xlu0 %v2426_v45, %s2141_s30 }
  0x8b   : > { %1040 = vrot.lane.b32.xlu1 %v2433_v46, %s2141_s30  ;;  %1038 = vrot.lane.b32.xlu0 %v2436_v47, %s2141_s30 }
  0x8f   : > { %1044 = vrot.lane.b32.xlu1 %v2443_v50, %s2141_s30  ;;  %1042 = vrot.lane.b32.xlu0 %v2446_v51, %s2141_s30 }
  0x93   : > { %1048 = vrot.lane.b32.xlu1 %v2453_v54, %s2141_s30  ;;  %1046 = vrot.lane.b32.xlu0 %v2456_v55, %s2141_s30 }
  0x97   : > { %1052 = vrot.lane.b32.xlu1 %v2463_v56, %s2141_s30  ;;  %1050 = vrot.lane.b32.xlu0 %v2466_v58, %s2141_s30  ;;  %v2539_v58 = vld [vmem:[%s2503_s8 + $0x8] sm:$0xff] }
  0x9b   : > { %1056 = vrot.lane.b32.xlu1 %v2473_v62, %s2141_s30  ;;  %1054 = vrot.lane.b32.xlu0 %v2476_v63, %s2141_s30  ;;  %v2531_v63 = vld [vmem:[%s2503_s8 + $0x18] sm:$0xff] }
  0xb1   : > { %v2482_v0 = vpop.permute.xlu1 %1961  ;;  %v2484_v1 = vpop.permute.xlu0 %1951 }
  0xb2   : > { %v1954_v25 = vunpack.i.h.bf16 %v2484_v1  ;;  %v1953_v27 = vunpack.i.l.bf16 %v2484_v1 }
  0xb5   : > { %v2486_v6 = vpop.permute.xlu1 %1966  ;;  %v2488_v7 = vpop.permute.xlu0 %1956 }
  0xb6   : > { %v3452_v59 = vunpack.i.l.bf16 %v2488_v7  ;;  %v3454_v54 = vunpack.i.h.bf16 %v2488_v7 }
  0xb9   : > { %v2490_v10 = vpop.permute.xlu1 %1976  ;;  %v2492_v11 = vpop.permute.xlu0 %1971 }
  0xbd   : > { %v2494_v14 = vpop.permute.xlu1 %1986  ;;  %v2496_v15 = vpop.permute.xlu0 %1981 }
  0xc1   : > { %v2528_v17 = vpop.permute.xlu1 %1996  ;;  %v1992_v57 = vpop.permute.xlu0 %1991 }
  0xc2   : > { %v3390_v62 = vunpack.i.l.bf16 %v2528_v17  ;;  %v1994_v1 = vunpack.i.h.bf16 %v1992_v57  ;;  %v1993_v28 = vunpack.i.l.bf16 %v1992_v57  ;;  %v3453_v49 = vunpack.i.h.bf16 %v2528_v17 }
  0xc4   : > { %v724_v55 = vsel %vm721_vm0, %v3452_v59, %v3390_v62  ;;  %v725_v57 = vsel %vm721_vm0, %v3454_v54, %v3453_v49  ;;  %v722_v29 = vsel %vm721_vm0, %v1953_v27, %v1993_v28  ;;  %v723_v61 = vsel %vm721_vm0, %v1954_v25, %v1994_v1  ;;  %v2566_v49 = vld [vmem:[%s2503_s8 + $0x30] sm:$0xff] }
  0xc5   : > { %v884_v56 = vmul.f32 %v724_v55, %v2526_v16  ;;  %v885_v48 = vmul.f32 %v725_v57, %v2531_v63  ;;  %v882_v41 = vmul.f32 %v722_v29, %v2536_v60  ;;  %v883_v59 = vmul.f32 %v723_v61, %v2539_v58  ;;  %v2561_v62 = vpop.permute.xlu1 %2006  ;;  %v2563_v42 = vpop.permute.xlu0 %2001 }
  0xc6   : > { %v3398_v54 = vunpack.i.h.bf16 %v2561_v62  ;;  %v3399_v35 = vunpack.i.l.bf16 %v2561_v62  ;;  %v3459_v55 = vunpack.i.h.bf16 %v2486_v6 }
  0xc7   : > { %v2572_v57 = vadd.f32 %v884_v56, %v868_v23  ;;  %v2574_v43 = vadd.f32 %v885_v48, %v869_v22  ;;  %v2576_v29 = vadd.f32 %v882_v41, %v866_v19  ;;  %v2578_v61 = vadd.f32 %v883_v59, %v867_v18 }
  0xc8   : > { %v729_v36 = vsel %vm721_vm0, %v3459_v55, %v3398_v54  ;;  %v3460_v48 = vunpack.i.l.bf16 %v2486_v6  ;;  %v3461_v56 = vunpack.i.h.bf16 %v2563_v42  ;;  %v3462_v18 = vunpack.i.h.bf16 %v2482_v0 }
  0xc9   : > { %3455 = vst [vmem:[#allocation39_spill] sm:$0xff] %v2572_v57  ;;  %3456 = vst [vmem:[#allocation40_spill] sm:$0xff] %v2574_v43  ;;  %v3463_v22 = vunpack.i.l.bf16 %v2563_v42  ;;  %v3464_v23 = vunpack.i.l.bf16 %v2482_v0  ;;  %v2611_v43 = vpop.permute.xlu1 %2016 }
  0xca   : > { %3457 = vst [vmem:[#allocation41_spill] sm:$0xff] %v2576_v29  ;;  %3458 = vst [vmem:[#allocation42_spill] sm:$0xff] %v2578_v61  ;;  %v728_v41 = vsel %vm721_vm0, %v3460_v48, %v3399_v35  ;;  %v727_v19 = vsel %vm721_vm0, %v3462_v18, %v3461_v56  ;;  %v2613_v48 = vpop.permute.xlu0 %2011  ;;  %v889_v35 = vmul.f32 %v729_v36, %v2581_v44  ;;  %v3403_v55 = vunpack.i.h.bf16 %v2611_v43 }
  0xcb   : > { %v726_v59 = vsel %vm721_vm0, %v3464_v23, %v3463_v22  ;;  %v888_v56 = vmul.f32 %v728_v41, %v2566_v49  ;;  %v887_v18 = vmul.f32 %v727_v19, %v2587_v38  ;;  %v979_v22 = vsel %vm721_vm0, %v1994_v1, %v1954_v25  ;;  %v2632_v41 = vld [vmem:[%s2503_s8 + $0x50] sm:$0xff]  ;;  %v2635_v19 = vld [vmem:[%s2503_s8 + $0x58] sm:$0xff] }
  0xcc   : > { %v886_v57 = vmul.f32 %v726_v59, %v2584_v37  ;;  %v978_v23 = vsel %vm721_vm0, %v1993_v28, %v1953_v27  ;;  %v3402_v54 = vunpack.i.l.bf16 %v2611_v43  ;;  %v2623_v61 = vadd.f32 %v889_v35, %v873_v30 }
  0xcd   : > { %v2625_v29 = vadd.f32 %v888_v56, %v872_v31  ;;  %v2627_v20 = vadd.f32 %v887_v18, %v871_v24  ;;  %v1091_v25 = vmul.f32 %v979_v22, %v2539_v58  ;;  %v1090_v27 = vmul.f32 %v978_v23, %v2536_v60  ;;  %v2649_v30 = vpop.permute.xlu1 %2026  ;;  %v2668_v23 = vld [vmem:[%s2503_s8 + $0x40] sm:$0xff]  ;;  %v2711_v56 = vld [vmem:[%s2503_s8 + $0x70] sm:$0xff] }
  0xce   : > { %3465 = vst [vmem:[#allocation43_spill] sm:$0xff] %v2623_v61  ;;  %v2629_v36 = vadd.f32 %v886_v57, %v870_v26  ;;  %v3469_v35 = vunpack.i.h.bf16 %v2490_v10  ;;  %v3470_v24 = vunpack.i.l.bf16 %v2490_v10  ;;  %v2651_v31 = vpop.permute.xlu0 %2021  ;;  %v875_v1 = vmul.f32 %v2293_v53, %v2443_v50 }
  0xcf   : > { %3466 = vst [vmem:[#allocation44_spill] sm:$0xff] %v2625_v29  ;;  %3467 = vst [vmem:[#allocation45_spill] sm:$0xff] %v2627_v20  ;;  %v874_v57 = vmul.f32 %v2291_v52, %v2446_v51  ;;  %1124 = vrot.lane.b32.xlu1 %v1091_v25, %s2141_s30  ;;  %1122 = vrot.lane.b32.xlu0 %v1090_v27, %s2141_s30  ;;  %v3474_v25 = vunpack.i.h.bf16 %v2528_v17  ;;  %v3478_v52 = vunpack.i.l.bf16 %v2492_v11  ;;  %v3481_v29 = vunpack.i.h.bf16 %v2649_v30  ;;  %v2742_v20 = vld [vmem:[%s2503_s8 + $0x60] sm:$0xff] }
  0xd0   : > { %3468 = vst [vmem:[#allocation46_spill] sm:$0xff] %v2629_v36  ;;  %v733_v28 = vsel %vm721_vm0, %v3469_v35, %v3403_v55  ;;  %v732_v26 = vsel %vm721_vm0, %v3470_v24, %v3402_v54  ;;  %v2671_v35 = vld [vmem:[%s2503_s8 + $0x48] sm:$0xff]  ;;  %v3473_v55 = vunpack.i.h.bf16 %v2488_v7  ;;  %v3482_v53 = vunpack.i.h.bf16 %v2494_v14 }
  0xd1   : > { %v2662_v18 = vmul.f32 %v733_v28, %v2635_v19  ;;  %v2665_v22 = vmul.f32 %v732_v26, %v2632_v41  ;;  %v3475_v28 = vunpack.i.l.bf16 %v2488_v7  ;;  %v3476_v26 = vunpack.i.l.bf16 %v2528_v17 }
  0xd2   : > { %v981_v27 = vsel %vm721_vm0, %v3474_v25, %v3473_v55  ;;  %v3479_v7 = vunpack.i.h.bf16 %v2613_v48  ;;  %v3480_v17 = vunpack.i.h.bf16 %v2492_v11  ;;  %v737_v61 = vsel %vm721_vm0, %v3482_v53, %v3481_v29 }
  0xd3   : > { %3471 = vst [vmem:[#allocation47_spill] sm:$0xff] %v2662_v18  ;;  %3472 = vst [vmem:[#allocation48_spill] sm:$0xff] %v2665_v22  ;;  %v980_v59 = vsel %vm721_vm0, %v3476_v26, %v3475_v28  ;;  %v3477_v18 = vunpack.i.l.bf16 %v2613_v48  ;;  %v2700_v28 = vld [vmem:[%s2503_s8 + $0x78] sm:$0xff]  ;;  %v2702_v26 = vpop.permute.xlu1 %2036  ;;  %v2704_v22 = vpop.permute.xlu0 %2031  ;;  %v2024_v53 = vunpack.i.h.bf16 %v2651_v31 }
  0xd4   : > { %v731_v25 = vsel %vm721_vm0, %v3480_v17, %v3479_v7  ;;  %v2732_v17 = vmul.f32 %v737_v61, %v2700_v28  ;;  %v2735_v7 = vld [vmem:[%s2503_s8 + $0x68] sm:$0xff]  ;;  %v3489_v61 = vunpack.i.l.bf16 %v2482_v0 }
  0xd5   : > { %v730_v55 = vsel %vm721_vm0, %v3478_v52, %v3477_v18  ;;  %v891_v24 = vmul.f32 %v731_v25, %v2671_v35  ;;  %v1093_v52 = vmul.f32 %v981_v27, %v2531_v63  ;;  %v1092_v18 = vmul.f32 %v980_v59, %v2526_v16 }
  0xd6   : > { %v890_v54 = vmul.f32 %v730_v55, %v2668_v23  ;;  %v3483_v55 = vunpack.i.l.bf16 %v2649_v30  ;;  %v3484_v25 = vunpack.i.l.bf16 %v2494_v14  ;;  %3485 = vst [vmem:[#allocation49_spill] sm:$0xff] %v2732_v17 }
  0xd7   : > { %v2727_v59 = vadd.f32 %v891_v24, %v875_v1  ;;  %1128 = vrot.lane.b32.xlu1 %v1093_v52, %s2141_s30  ;;  %1126 = vrot.lane.b32.xlu0 %v1092_v18, %s2141_s30  ;;  %v3487_v1 = vunpack.i.h.bf16 %v2482_v0  ;;  %v3490_v52 = vunpack.i.l.bf16 %v2563_v42 }
  0xd8   : > { %v736_v27 = vsel %vm721_vm0, %v3484_v25, %v3483_v55  ;;  %v2725_v36 = vadd.f32 %v890_v54, %v874_v57  ;;  %v2023_v54 = vunpack.i.l.bf16 %v2651_v31  ;;  %v3488_v57 = vunpack.i.h.bf16 %v2563_v42  ;;  %v2755_v55 = vpop.permute.xlu1 %2046  ;;  %v2757_v25 = vpop.permute.xlu0 %2041 }
  0xd9   : > { %v2739_v29 = vmul.f32 %v736_v27, %v2711_v56  ;;  %v982_v18 = vsel %vm721_vm0, %v3490_v52, %v3489_v61  ;;  %v3491_v27 = vunpack.i.h.bf16 %v2496_v15  ;;  %v2771_v42 = vmul.f32 %v2330_v5, %v2403_v32 }
  0xda   : > { %v983_v24 = vsel %vm721_vm0, %v3488_v57, %v3487_v1  ;;  %v2775_v57 = vmul.f32 %v2328_v4, %v2406_v33  ;;  %v1094_v52 = vmul.f32 %v982_v18, %v2584_v37  ;;  %v2791_v32 = vmul.f32 %v2344_v13, %v2423_v40 }
  0xdb   : > { %3486 = vst [vmem:[#allocation50_spill] sm:$0xff] %v2739_v29  ;;  %v735_v31 = vsel %vm721_vm0, %v3491_v27, %v2024_v53  ;;  %v3492_v29 = vunpack.i.l.bf16 %v2496_v15  ;;  %v1095_v0 = vmul.f32 %v983_v24, %v2587_v38  ;;  %v2787_v24 = vmul.f32 %v2324_v2, %v2416_v39 }
  0xdc   : > { %v2766_v1 = vmul.f32 %v735_v31, %v2735_v7  ;;  %v2795_v33 = vmul.f32 %v2342_v12, %v2426_v45  ;;  %v2800_v18 = vpop.permute.xlu0 %2051  ;;  %v2808_v39 = vmul.f32 %v2332_v8, %v2436_v47  ;;  %1130 = vrot.lane.b32.xlu0 %v1094_v52, %s2141_s30  ;;  %v3493_v40 = vunpack.i.h.bf16 %v2486_v6  ;;  %v3497_v47 = vld [vmem:[#allocation27_spill] sm:$0xff] }
  0xdd   : > { %v734_v17 = vsel %vm721_vm0, %v3492_v29, %v2023_v54  ;;  %v2783_v29 = vmul.f32 %v2326_v3, %v2413_v34  ;;  %1132 = vrot.lane.b32.xlu1 %v1095_v0, %s2141_s30  ;;  %v2804_v34 = vmul.f32 %v2334_v9, %v2433_v46  ;;  %v3494_v45 = vunpack.i.h.bf16 %v2561_v62 }
  0xde   : > { %v2778_v61 = vmul.f32 %v734_v17, %v2742_v20  ;;  %v2798_v17 = vpop.permute.xlu1 %2056  ;;  %v3495_v31 = vunpack.i.l.bf16 %v2486_v6  ;;  %v3496_v0 = vunpack.i.l.bf16 %v2561_v62  ;;  %v2823_v46 = vmul.f32 %v2358_v21, %v2443_v50 }
  0xdf   : > { %v985_v27 = vsel %vm721_vm0, %v3494_v45, %v3493_v40  ;;  %v2827_v8 = vmul.f32 %v3497_v47, %v2446_v51  ;;  %v3498_v51 = vunpack.i.h.bf16 %v2492_v11  ;;  %v3500_v52 = vunpack.i.l.bf16 %v2492_v11 }
  0xe0   : > { %v984_v12 = vsel %vm721_vm0, %v3496_v0, %v3495_v31  ;;  %v1097_v9 = vmul.f32 %v985_v27, %v2581_v44  ;;  %v3499_v0 = vunpack.i.h.bf16 %v2613_v48  ;;  %v3501_v6 = vunpack.i.l.bf16 %v2613_v48 }
  0xe1   : > { %v1096_v45 = vmul.f32 %v984_v12, %v2566_v49  ;;  %v2850_v12 = vpop.permute.xlu0 %2061  ;;  %v3508_v31 = vunpack.i.h.bf16 %v2494_v14  ;;  %v3511_v21 = vunpack.i.l.bf16 %v2649_v30 }
  0xe2   : > { %1136 = vrot.lane.b32.xlu1 %v1097_v9, %s2141_s30  ;;  %v987_v27 = vsel %vm721_vm0, %v3499_v0, %v3498_v51  ;;  %v986_v62 = vsel %vm721_vm0, %v3501_v6, %v3500_v52  ;;  %v2848_v40 = vpop.permute.xlu1 %2066  ;;  %v3502_v52 = vunpack.i.h.bf16 %v2490_v10  ;;  %v3503_v6 = vunpack.i.h.bf16 %v2611_v43 }
  0xe3   : > { %1134 = vrot.lane.b32.xlu0 %v1096_v45, %s2141_s30  ;;  %v1099_v11 = vmul.f32 %v987_v27, %v2671_v35  ;;  %v1098_v48 = vmul.f32 %v986_v62, %v2668_v23  ;;  %v3504_v45 = vunpack.i.l.bf16 %v2490_v10  ;;  %v3505_v9 = vunpack.i.l.bf16 %v2611_v43 }
  0xe4   : > { %v989_v0 = vsel %vm721_vm0, %v3503_v6, %v3502_v52  ;;  %v3506_v52 = vunpack.i.h.bf16 %v2496_v15  ;;  %v3507_v43 = vunpack.i.l.bf16 %v2496_v15  ;;  %v3509_v27 = vunpack.i.h.bf16 %v2649_v30 }
  0xe5   : > { %v988_v50 = vsel %vm721_vm0, %v3505_v9, %v3504_v45  ;;  %v1101_v47 = vmul.f32 %v989_v0, %v2635_v19  ;;  %v2072_v45 = vpop.permute.xlu0 %2071  ;;  %v3510_v51 = vunpack.i.l.bf16 %v2494_v14  ;;  %v3513_v0 = vunpack.i.h.bf16 %v2702_v26 }
  0xe6   : > { %1140 = vrot.lane.b32.xlu1 %v1099_v11, %s2141_s30  ;;  %v991_v10 = vsel %vm721_vm0, %v2024_v53, %v3506_v52  ;;  %v990_v9 = vsel %vm721_vm0, %v2023_v54, %v3507_v43  ;;  %v2881_v6 = vpop.permute.xlu1 %2076  ;;  %v993_v62 = vsel %vm721_vm0, %v3509_v27, %v3508_v31  ;;  %v1100_v11 = vmul.f32 %v988_v50, %v2632_v41 }
  0xe7   : > { %1138 = vrot.lane.b32.xlu0 %v1098_v48, %s2141_s30  ;;  %v2079_v53 = vunpack.i.h.bf16 %v2881_v6  ;;  %v3410_v15 = vunpack.i.l.bf16 %v2881_v6  ;;  %v1103_v54 = vmul.f32 %v991_v10, %v2735_v7  ;;  %v2074_v52 = vunpack.i.h.bf16 %v2072_v45 }
  0xe8   : > { %v2073_v43 = vunpack.i.l.bf16 %v2072_v45  ;;  %v992_v31 = vsel %vm721_vm0, %v3511_v21, %v3510_v51  ;;  %v1102_v48 = vmul.f32 %v990_v9, %v2742_v20  ;;  %v3512_v50 = vunpack.i.l.bf16 %v2702_v26 }
  0xe9   : > { %v853_v10 = vsel %vm721_vm0, %v3513_v0, %v2079_v53  ;;  %v1105_v45 = vmul.f32 %v993_v62, %v2700_v28  ;;  %v3514_v30 = vunpack.i.l.bf16 %v2704_v22  ;;  %v3515_v9 = vunpack.i.h.bf16 %v2704_v22  ;;  %v2920_v13 = vpop.permute.xlu0 %2081 }
  0xea   : > { %v852_v27 = vsel %vm721_vm0, %v3512_v50, %v3410_v15  ;;  %1144 = vrot.lane.b32.xlu1 %v1101_v47, %s2141_s30  ;;  %v949_v21 = vmul.f32 %v853_v10, %v2531_v63  ;;  %v2918_v15 = vpop.permute.xlu1 %2086  ;;  %v3415_v2 = vunpack.i.l.bf16 %v2920_v13 }
  0xeb   : > { %v948_v14 = vmul.f32 %v852_v27, %v2526_v16  ;;  %v850_v51 = vsel %vm721_vm0, %v3514_v30, %v2073_v43  ;;  %v851_v50 = vsel %vm721_vm0, %v3515_v9, %v2074_v52  ;;  %1142 = vrot.lane.b32.xlu0 %v1100_v11, %s2141_s30  ;;  %v3414_v0 = vunpack.i.h.bf16 %v2918_v15 }
  0xec   : > { %v946_v47 = vmul.f32 %v850_v51, %v2536_v60  ;;  %v947_v62 = vmul.f32 %v851_v50, %v2539_v58  ;;  %v3413_v27 = vunpack.i.l.bf16 %v2918_v15  ;;  %v2931_v30 = vadd.f32 %v949_v21, %v2783_v29 }
  0xed   : > { %v2928_v10 = vadd.f32 %v948_v14, %v2787_v24  ;;  %v2084_v9 = vunpack.i.h.bf16 %v2920_v13  ;;  %v3518_v50 = vunpack.i.l.bf16 %v2755_v55  ;;  %v3519_v29 = vunpack.i.h.bf16 %v2755_v55 }
  0xee   : > { %3517 = vst [vmem:[#allocation52_spill] sm:$0xff] %v2931_v30  ;;  %v2936_v11 = vadd.f32 %v946_v47, %v2775_v57  ;;  %v2939_v51 = vadd.f32 %v947_v62, %v2771_v42  ;;  %1148 = vrot.lane.b32.xlu1 %v1103_v54, %s2141_s30  ;;  %v3520_v42 = vunpack.i.l.bf16 %v2757_v25  ;;  %v3521_v62 = vunpack.i.h.bf16 %v2757_v25 }
  0xef   : > { %3516 = vst [vmem:[#allocation51_spill] sm:$0xff] %v2928_v10  ;;  %v856_v24 = vsel %vm721_vm0, %v3518_v50, %v3413_v27  ;;  %v857_v14 = vsel %vm721_vm0, %v3519_v29, %v3414_v0  ;;  %v2962_v27 = vpop.permute.xlu1 %2096  ;;  %v2964_v10 = vpop.permute.xlu0 %2091  ;;  %1146 = vrot.lane.b32.xlu0 %v1102_v48, %s2141_s30  ;;  %v3522_v29 = vunpack.i.h.bf16 %v2704_v22  ;;  %v3524_v48 = vunpack.i.h.bf16 %v2702_v26 }
  0xf0   : > { %v952_v57 = vmul.f32 %v856_v24, %v2566_v49  ;;  %v953_v21 = vmul.f32 %v857_v14, %v2581_v44  ;;  %v854_v47 = vsel %vm721_vm0, %v3520_v42, %v3415_v2  ;;  %v855_v50 = vsel %vm721_vm0, %v3521_v62, %v2084_v9 }
  0xf1   : > { %v950_v54 = vmul.f32 %v854_v47, %v2584_v37  ;;  %v951_v24 = vmul.f32 %v855_v50, %v2587_v38  ;;  %v995_v14 = vsel %vm721_vm0, %v2074_v52, %v3522_v29  ;;  %v3523_v42 = vunpack.i.l.bf16 %v2704_v22 }
  0xf2   : > { %v1104_v62 = vmul.f32 %v992_v31, %v2711_v56  ;;  %v2977_v2 = vadd.f32 %v952_v57, %v2808_v39  ;;  %v2980_v30 = vadd.f32 %v953_v21, %v2804_v34  ;;  %v997_v47 = vsel %vm721_vm0, %v2079_v53, %v3524_v48  ;;  %1152 = vrot.lane.b32.xlu1 %v1105_v45, %s2141_s30 }
  0xf3   : > { %v994_v0 = vsel %vm721_vm0, %v2073_v43, %v3523_v42  ;;  %v2986_v50 = vadd.f32 %v950_v54, %v2795_v33  ;;  %v2989_v52 = vadd.f32 %v951_v24, %v2791_v32  ;;  %v2099_v22 = vunpack.i.h.bf16 %v2962_v27  ;;  %v2998_v57 = vpop.permute.xlu1 %2106 }
  0xf4   : > { %v2098_v43 = vunpack.i.l.bf16 %v2962_v27  ;;  %v1219_v39 = vmul.f32 %v995_v14, %v2539_v58  ;;  %v1218_v34 = vmul.f32 %v994_v0, %v2536_v60  ;;  %v2094_v31 = vunpack.i.h.bf16 %v2964_v10  ;;  %1150 = vrot.lane.b32.xlu0 %v1104_v62, %s2141_s30  ;;  %v2102_v14 = vpop.permute.xlu0 %2101 }
  0xf5   : > { %v2093_v53 = vunpack.i.l.bf16 %v2964_v10  ;;  %v3525_v32 = vunpack.i.l.bf16 %v2798_v17  ;;  %v3526_v27 = vunpack.i.h.bf16 %v2798_v17  ;;  %v2109_v58 = vunpack.i.h.bf16 %v2998_v57 }
  0xf6   : > { %v2108_v60 = vunpack.i.l.bf16 %v2998_v57  ;;  %v3527_v21 = vunpack.i.l.bf16 %v2800_v18  ;;  %v3528_v24 = vunpack.i.h.bf16 %v2800_v18  ;;  %v3529_v48 = vunpack.i.l.bf16 %v2848_v40  ;;  %1252 = vrot.lane.b32.xlu1 %v1219_v39, %s2141_s30 }
  0xf7   : > { %v860_v33 = vsel %vm721_vm0, %v3525_v32, %v2098_v43  ;;  %v861_v45 = vsel %vm721_vm0, %v3526_v27, %v2099_v22  ;;  %v3530_v32 = vunpack.i.h.bf16 %v2848_v40  ;;  %v2063_v27 = vunpack.i.l.bf16 %v2850_v12 }
  0xf8   : > { %v3010_v0 = vmul.f32 %v860_v33, %v2632_v41  ;;  %v3013_v10 = vmul.f32 %v861_v45, %v2635_v19  ;;  %v858_v54 = vsel %vm721_vm0, %v3527_v21, %v2093_v53  ;;  %v859_v29 = vsel %vm721_vm0, %v3528_v24, %v2094_v31  ;;  %1250 = vrot.lane.b32.xlu0 %v1218_v34, %s2141_s30 }
  0xf9   : > { %v954_v42 = vmul.f32 %v858_v54, %v2668_v23  ;;  %v955_v62 = vmul.f32 %v859_v29, %v2671_v35  ;;  %v864_v57 = vsel %vm721_vm0, %v3529_v48, %v2108_v60  ;;  %v865_v33 = vsel %vm721_vm0, %v3530_v32, %v2109_v58 }
  0xfa   : > { %v3531_v45 = vunpack.i.l.bf16 %v2702_v26  ;;  %v3532_v21 = vunpack.i.l.bf16 %v2881_v6  ;;  %v3037_v24 = vmul.f32 %v864_v57, %v2711_v56  ;;  %v3040_v29 = vmul.f32 %v865_v33, %v2700_v28 }
  0xfb   : > { %v3044_v48 = vadd.f32 %v954_v42, %v2827_v8  ;;  %v3047_v32 = vadd.f32 %v955_v62, %v2823_v46  ;;  %v2104_v39 = vunpack.i.h.bf16 %v2102_v14  ;;  %v2103_v26 = vunpack.i.l.bf16 %v2102_v14 }
  0xfc   : > { %v996_v54 = vsel %vm721_vm0, %v3532_v21, %v3531_v45  ;;  %3533 = vst [vmem:[#allocation53_spill] sm:$0xff] %v3037_v24  ;;  %3534 = vst [vmem:[#allocation54_spill] sm:$0xff] %v3040_v29  ;;  %v1221_v6 = vmul.f32 %v997_v47, %v2531_v63  ;;  %v3535_v21 = vunpack.i.h.bf16 %v2850_v12  ;;  %v3536_v34 = vunpack.i.h.bf16 %v2757_v25  ;;  %v3577_v29 = vld [vmem:[#allocation48_spill] sm:$0xff] }
  0xfd   : > { %v1220_v45 = vmul.f32 %v996_v54, %v2526_v16  ;;  %v862_v57 = vsel %vm721_vm0, %v2063_v27, %v2103_v26  ;;  %v3537_v16 = vunpack.i.l.bf16 %v2757_v25  ;;  %v3538_v63 = vunpack.i.l.bf16 %v2920_v13 }
  0xfe   : > { %v863_v33 = vsel %vm721_vm0, %v3535_v21, %v2104_v39  ;;  %v999_v8 = vsel %vm721_vm0, %v2084_v9, %v3536_v34  ;;  %1256 = vrot.lane.b32.xlu1 %v1221_v6, %s2141_s30  ;;  %v3060_v46 = vmul.f32 %v862_v57, %v2742_v20  ;;  %v3539_v62 = vunpack.i.h.bf16 %v2755_v55 }
  0xff   : > { %v3063_v14 = vmul.f32 %v863_v33, %v2735_v7  ;;  %v998_v47 = vsel %vm721_vm0, %v3538_v63, %v3537_v16  ;;  %1254 = vrot.lane.b32.xlu0 %v1220_v45, %s2141_s30  ;;  %v1223_v42 = vmul.f32 %v999_v8, %v2587_v38  ;;  %v3540_v54 = vunpack.i.h.bf16 %v2918_v15 }
 0x100   : > { %v1222_v9 = vmul.f32 %v998_v47, %v2584_v37  ;;  %v3541_v25 = vunpack.i.l.bf16 %v2755_v55  ;;  %v3542_v13 = vunpack.i.l.bf16 %v2918_v15  ;;  %v3543_v45 = vunpack.i.h.bf16 %v2800_v18 }
 0x101   : > { %v1001_v6 = vsel %vm721_vm0, %v3540_v54, %v3539_v62  ;;  %v3544_v33 = vunpack.i.l.bf16 %v2800_v18  ;;  %v3548_v16 = vunpack.i.h.bf16 %v2848_v40 }
 0x102   : > { %1260 = vrot.lane.b32.xlu1 %v1223_v42, %s2141_s30  ;;  %v1000_v57 = vsel %vm721_vm0, %v3542_v13, %v3541_v25  ;;  %v1225_v38 = vmul.f32 %v1001_v6, %v2581_v44  ;;  %v1003_v21 = vsel %vm721_vm0, %v2094_v31, %v3543_v45  ;;  %v3545_v44 = vunpack.i.h.bf16 %v2798_v17  ;;  %v3550_v13 = vld [vmem:[#allocation7_spill] sm:$0xff] }
 0x103   : > { %1258 = vrot.lane.b32.xlu0 %v1222_v9, %s2141_s30  ;;  %v1224_v37 = vmul.f32 %v1000_v57, %v2566_v49  ;;  %v1002_v55 = vsel %vm721_vm0, %v2093_v53, %v3544_v33  ;;  %v1227_v15 = vmul.f32 %v1003_v21, %v2671_v35  ;;  %v3546_v31 = vunpack.i.l.bf16 %v2798_v17 }
 0x104   : > { %v1226_v34 = vmul.f32 %v1002_v55, %v2668_v23  ;;  %v1005_v49 = vsel %vm721_vm0, %v2099_v22, %v3545_v44  ;;  %v3547_v35 = vunpack.i.h.bf16 %v2850_v12  ;;  %v1006_v22 = vsel %vm721_vm0, %v2103_v26, %v2063_v27  ;;  %v3553_v44 = vld [vmem:[#allocation42_spill] sm:$0xff] }
 0x105   : > { %v1004_v8 = vsel %vm721_vm0, %v2098_v43, %v3546_v31  ;;  %v1229_v18 = vmul.f32 %v1005_v49, %v2635_v19  ;;  %v1230_v43 = vmul.f32 %v1006_v22, %v2742_v20  ;;  %v1009_v19 = vsel %vm721_vm0, %v2109_v58, %v3548_v16  ;;  %v3127_v20 = vpop.permute.xlu1 %1028 }
 0x106   : > { %1264 = vrot.lane.b32.xlu1 %v1225_v38, %s2141_s30  ;;  %v1228_v53 = vmul.f32 %v1004_v8, %v2632_v41  ;;  %v1007_v23 = vsel %vm721_vm0, %v2104_v39, %v3547_v35  ;;  %v3549_v41 = vunpack.i.l.bf16 %v2848_v40  ;;  %v1233_v27 = vmul.f32 %v1009_v19, %v2700_v28  ;;  %v3551_v38 = vld [vmem:[#allocation6_spill] sm:$0xff] }
 0x107   : > { %1262 = vrot.lane.b32.xlu0 %v1224_v37, %s2141_s30  ;;  %v1231_v17 = vmul.f32 %v1007_v23, %v2735_v7  ;;  %v3129_v7 = vpop.permute.xlu0 %1026  ;;  %v1075_v57 = vmul.f32 %v3550_v13, %v3127_v20  ;;  %v915_v49 = vmul.f32 0.125, %v3553_v44  ;;  %v3555_v35 = vld [vmem:[#allocation10_spill] sm:$0xff]  ;;  %v3557_v13 = vld [vmem:[#allocation40_spill] sm:$0xff] }
 0x108   : > { %v1008_v12 = vsel %vm721_vm0, %v2108_v60, %v3549_v41  ;;  %v1074_v37 = vmul.f32 %v3551_v38, %v3129_v7 }
 0x109   : > { %v1232_v39 = vmul.f32 %v1008_v12, %v2711_v56  ;;  %v3131_v58 = vpop.permute.xlu1 %1032 }
 0x10a   : > { %1268 = vrot.lane.b32.xlu1 %v1227_v15, %s2141_s30  ;;  %v3552_v15 = vld [vmem:[#allocation41_spill] sm:$0xff] }
 0x10b   : > { %1266 = vrot.lane.b32.xlu0 %v1226_v34, %s2141_s30  ;;  %v3133_v26 = vpop.permute.xlu0 %1030  ;;  %v914_v34 = vmul.f32 0.125, %v3552_v15 }
 0x10c   : > { %v1076_v23 = vmul.f32 %v3555_v35, %v3133_v26 }
 0x10d   : > { %v3135_v40 = vpop.permute.xlu1 %1036 }
 0x10e   : > { %1272 = vrot.lane.b32.xlu1 %v1229_v18, %s2141_s30  ;;  %v3554_v18 = vld [vmem:[#allocation11_spill] sm:$0xff] }
 0x10f   : > { %1270 = vrot.lane.b32.xlu0 %v1228_v53, %s2141_s30  ;;  %v3137_v60 = vpop.permute.xlu0 %1034  ;;  %v1077_v53 = vmul.f32 %v3554_v18, %v3131_v58 }
 0x111   : > { %v3139_v63 = vpop.permute.xlu1 %1040 }
 0x112   : > { %1276 = vrot.lane.b32.xlu1 %v1231_v17, %s2141_s30 }
 0x113   : > { %1274 = vrot.lane.b32.xlu0 %v1230_v43, %s2141_s30  ;;  %v3141_v28 = vpop.permute.xlu0 %1038 }
 0x115   : > { %v3143_v56 = vpop.permute.xlu1 %1044 }
 0x116   : > { %1280 = vrot.lane.b32.xlu1 %v1233_v27, %s2141_s30  ;;  %v3556_v27 = vld [vmem:[#allocation39_spill] sm:$0xff] }
 0x117   : > { %1278 = vrot.lane.b32.xlu0 %v1232_v39, %s2141_s30  ;;  %v3145_v47 = vpop.permute.xlu0 %1042  ;;  %v916_v39 = vmul.f32 0.125, %v3556_v27 }
 0x119   : > { %v3147_v42 = vpop.permute.xlu1 %1048 }
 0x11b   : > { %v3149_v9 = vpop.permute.xlu0 %1046 }
 0x11d   : > { %v3151_v62 = vpop.permute.xlu1 %1052 }
 0x11f   : > { %v3153_v54 = vpop.permute.xlu0 %1050 }
 0x121   : > { %v3155_v6 = vpop.permute.xlu1 %1056 }
 0x123   : > { %v3157_v25 = vpop.permute.xlu0 %1054 }
 0x141   : > { %v1125_v45 = vpop.permute.xlu1 %1124  ;;  %v1123_v21 = vpop.permute.xlu0 %1122 }
 0x142   : > { %v1171_v33 = vadd.f32 %v1125_v45, %v1075_v57  ;;  %v1170_v55 = vadd.f32 %v1123_v21, %v1074_v37  ;;  %v917_v57 = vmul.f32 0.125, %v3557_v13  ;;  %v3558_v45 = vld [vmem:[#allocation5_spill] sm:$0xff] }
 0x143   : > { %v1079_v21 = vmul.f32 %v3558_v45, %v3135_v40 }
 0x144   : > { %v1187_v31 = vmul.f32 0.125, %v1171_v33  ;;  %v1186_v8 = vmul.f32 0.125, %v1170_v55  ;;  %v3559_v33 = vld [vmem:[#allocation4_spill] sm:$0xff] }
 0x145   : > { %v1078_v55 = vmul.f32 %v3559_v33, %v3137_v60 }
 0x146   : > { %v1316_v22 = vsel %vm1314_vm1, %v915_v49, %v1187_v31  ;;  %v1315_v17 = vsel %vm1314_vm1, %v914_v34, %v1186_v8 }
 0x147   : > { %v1817_v19 = vpack.c.bf16 %v1316_v22, %v1315_v17 }
 0x149   : > { %v1129_v43 = vpop.permute.xlu1 %1128  ;;  %v1127_v16 = vpop.permute.xlu0 %1126  ;;  %1818 = vst [vmem:[%s3176_s12] sm:$0xff] %v1817_v19   ;;  %v3563_v19 = vld [vmem:[#allocation8_spill] sm:$0xff] }
 0x14a   : > { %v1173_v41 = vadd.f32 %v1129_v43, %v1077_v53  ;;  %v1172_v12 = vadd.f32 %v1127_v16, %v1076_v23  ;;  %v3560_v53 = vld [vmem:[#allocation45_spill] sm:$0xff]  ;;  %v3562_v43 = vld [vmem:[#allocation46_spill] sm:$0xff] }
 0x14b   : > { %v919_v35 = vmul.f32 0.125, %v3560_v53  ;;  %v3561_v23 = vld [vmem:[#allocation9_spill] sm:$0xff]  ;;  %v918_v16 = vmul.f32 0.125, %v3562_v43 }
 0x14c   : > { %v1189_v38 = vmul.f32 0.125, %v1173_v41  ;;  %v1188_v37 = vmul.f32 0.125, %v1172_v12  ;;  %v1081_v22 = vmul.f32 %v3561_v23, %v3139_v63  ;;  %v1080_v41 = vmul.f32 %v3563_v19, %v3141_v28 }
 0x14e   : > { %v1318_v15 = vsel %vm1314_vm1, %v917_v57, %v1189_v38  ;;  %v1317_v34 = vsel %vm1314_vm1, %v916_v39, %v1188_v37  ;;  %v1131_v8 = vpop.permute.xlu0 %1130  ;;  %v3564_v38 = vld [vmem:[#allocation33_spill] sm:$0xff] }
 0x14f   : > { %v1133_v44 = vpop.permute.xlu1 %1132  ;;  %v1822_v49 = vpack.c.bf16 %v1318_v15, %v1317_v34  ;;  %v1174_v18 = vadd.f32 %v1131_v8, %v1078_v55  ;;  %v3565_v37 = vld [vmem:[#allocation13_spill] sm:$0xff]  ;;  %v3566_v55 = vld [vmem:[#allocation43_spill] sm:$0xff]  ;;  %v3568_v8 = vld [vmem:[#allocation34_spill] sm:$0xff] }
 0x150   : > { %v1175_v31 = vadd.f32 %v1133_v44, %v1079_v21  ;;  %v877_v45 = vmul.f32 %v3565_v37, %v3564_v38  ;;  %v921_v15 = vmul.f32 0.125, %v3566_v55  ;;  %v3567_v34 = vld [vmem:[#allocation15_spill] sm:$0xff] }
 0x151   : > { %1908 = vst [vmem:[%s3176_s12 + $0x8] sm:$0xff] %v1822_v49   ;;  %v1190_v12 = vmul.f32 0.125, %v1174_v18  ;;  %v1083_v44 = vmul.f32 %v3567_v34, %v3143_v56  ;;  %v3569_v18 = vld [vmem:[#allocation12_spill] sm:$0xff]  ;;  %v3576_v34 = vld [vmem:[#allocation47_spill] sm:$0xff] }
 0x152   : > { %v1191_v17 = vmul.f32 0.125, %v1175_v31  ;;  %v876_v53 = vmul.f32 %v3569_v18, %v3568_v8  ;;  %v909_v8 = vadd.f32 %v3576_v34, %v877_v45  ;;  %v3578_v45 = vld [vmem:[#allocation37_spill] sm:$0xff] }
 0x153   : > { %v1319_v21 = vsel %vm1314_vm1, %v918_v16, %v1190_v12  ;;  %v3573_v16 = vld [vmem:[#allocation19_spill] sm:$0xff]  ;;  %v3579_v34 = vld [vmem:[#allocation17_spill] sm:$0xff] }
 0x154   : > { %v1137_v27 = vpop.permute.xlu1 %1136  ;;  %v1320_v39 = vsel %vm1314_vm1, %v919_v35, %v1191_v17  ;;  %v3570_v35 = vld [vmem:[#allocation44_spill] sm:$0xff] }
 0x155   : > { %v1177_v13 = vadd.f32 %v1137_v27, %v1081_v22  ;;  %v1135_v57 = vpop.permute.xlu0 %1134  ;;  %v1827_v49 = vpack.c.bf16 %v1320_v39, %v1319_v21  ;;  %v920_v23 = vmul.f32 0.125, %v3570_v35  ;;  %v3571_v22 = vld [vmem:[#allocation14_spill] sm:$0xff]  ;;  %v3572_v27 = vld [vmem:[#allocation35_spill] sm:$0xff] }
 0x156   : > { %v1176_v33 = vadd.f32 %v1135_v57, %v1080_v41  ;;  %v1082_v17 = vmul.f32 %v3571_v22, %v3145_v47  ;;  %v879_v41 = vmul.f32 %v3573_v16, %v3572_v27  ;;  %v3575_v21 = vld [vmem:[#allocation18_spill] sm:$0xff]  ;;  %v1085_v22 = vmul.f32 %v3565_v37, %v3147_v42 }
 0x157   : > { %v1193_v31 = vmul.f32 0.125, %v1177_v13  ;;  %1909 = vst [vmem:[%s3176_s12 + $0x10] sm:$0xff] %v1827_v49   ;;  %v3574_v13 = vld [vmem:[#allocation36_spill] sm:$0xff] }
 0x158   : > { %v1192_v43 = vmul.f32 0.125, %v1176_v33  ;;  %v1141_v19 = vpop.permute.xlu1 %1140  ;;  %v878_v55 = vmul.f32 %v3575_v21, %v3574_v13  ;;  %v923_v33 = vmul.f32 0.125, %v2727_v59 }
 0x159   : > { %v1322_v12 = vsel %vm1314_vm1, %v921_v15, %v1193_v31  ;;  %v1179_v57 = vadd.f32 %v1141_v19, %v1083_v44  ;;  %v1139_v39 = vpop.permute.xlu0 %1138  ;;  %v908_v15 = vadd.f32 %v3577_v29, %v876_v53  ;;  %v922_v44 = vmul.f32 0.125, %v2725_v36 }
 0x15a   : > { %v1321_v35 = vsel %vm1314_vm1, %v920_v23, %v1192_v43  ;;  %v1178_v24 = vadd.f32 %v1139_v39, %v1082_v17  ;;  %v1084_v31 = vmul.f32 %v3569_v18, %v3149_v9  ;;  %v881_v23 = vmul.f32 %v3579_v34, %v3578_v45  ;;  %v3580_v43 = vld [vmem:[#allocation38_spill] sm:$0xff] }
 0x15b   : > { %v1832_v27 = vpack.c.bf16 %v1322_v12, %v1321_v35  ;;  %v1195_v49 = vmul.f32 0.125, %v1179_v57  ;;  %v3581_v12 = vld [vmem:[#allocation16_spill] sm:$0xff]  ;;  %v925_v29 = vmul.f32 0.125, %v909_v8  ;;  %v911_v18 = vadd.f32 %v2766_v1, %v879_v41  ;;  %v3582_v1 = vld [vmem:[#allocation49_spill] sm:$0xff] }
 0x15c   : > { %v1194_v19 = vmul.f32 0.125, %v1178_v24  ;;  %v1145_v13 = vpop.permute.xlu1 %1144  ;;  %v880_v57 = vmul.f32 %v3581_v12, %v3580_v43  ;;  %v1087_v24 = vmul.f32 %v3573_v16, %v3151_v62  ;;  %v913_v41 = vadd.f32 %v3582_v1, %v881_v23 }
 0x15d   : > { %1910 = vst [vmem:[%s3176_s12 + $0x18] sm:$0xff] %v1832_v27   ;;  %v1324_v59 = vsel %vm1314_vm1, %v923_v33, %v1195_v49  ;;  %v1181_v17 = vadd.f32 %v1145_v13, %v1085_v22  ;;  %v1143_v37 = vpop.permute.xlu0 %1142  ;;  %v924_v27 = vmul.f32 0.125, %v908_v15  ;;  %v910_v33 = vadd.f32 %v2778_v61, %v878_v55 }
 0x15e   : > { %v1323_v36 = vsel %vm1314_vm1, %v922_v44, %v1194_v19  ;;  %v1180_v53 = vadd.f32 %v1143_v37, %v1084_v31  ;;  %v1086_v22 = vmul.f32 %v3575_v21, %v3153_v54  ;;  %v927_v45 = vmul.f32 0.125, %v911_v18  ;;  %v3583_v21 = vld [vmem:[#allocation50_spill] sm:$0xff] }
 0x15f   : > { %v1837_v39 = vpack.c.bf16 %v1324_v59, %v1323_v36  ;;  %v1197_v35 = vmul.f32 0.125, %v1181_v17  ;;  %v1089_v61 = vmul.f32 %v3579_v34, %v3155_v6  ;;  %v912_v59 = vadd.f32 %v3583_v21, %v880_v57 }
 0x160   : > { %v1196_v49 = vmul.f32 0.125, %v1180_v53  ;;  %v1149_v13 = vpop.permute.xlu1 %1148  ;;  %v926_v17 = vmul.f32 0.125, %v910_v33  ;;  %v1088_v37 = vmul.f32 %v3581_v12, %v3157_v25  ;;  %v929_v34 = vmul.f32 0.125, %v913_v41 }
 0x161   : > { %1911 = vst [vmem:[%s3176_s12 + $0x20] sm:$0xff] %v1837_v39   ;;  %v1326_v8 = vsel %vm1314_vm1, %v925_v29, %v1197_v35  ;;  %v1183_v44 = vadd.f32 %v1149_v13, %v1087_v24  ;;  %v1147_v31 = vpop.permute.xlu0 %1146  ;;  %v1203_v39 = vmul.f32 %v2330_v5, %v3127_v20  ;;  %v1202_v12 = vmul.f32 %v2328_v4, %v3129_v7  ;;  %v3584_v4 = vld [vmem:[#allocation20_spill] sm:$0xff] }
 0x162   : > { %v1325_v16 = vsel %vm1314_vm1, %v924_v27, %v1196_v49  ;;  %v1182_v19 = vadd.f32 %v1147_v31, %v1086_v22  ;;  %v928_v27 = vmul.f32 0.125, %v912_v59  ;;  %v1205_v5 = vmul.f32 %v2326_v3, %v3131_v58  ;;  %v3588_v59 = vld [vmem:[#allocation51_spill] sm:$0xff] }
 0x163   : > { %v1842_v55 = vpack.c.bf16 %v1326_v8, %v1325_v16  ;;  %v1199_v15 = vmul.f32 0.125, %v1183_v44  ;;  %v1204_v7 = vmul.f32 %v3584_v4, %v3133_v26 }
 0x164   : > { %v1198_v43 = vmul.f32 0.125, %v1182_v19  ;;  %v1153_v29 = vpop.permute.xlu1 %1152 }
 0x165   : > { %1912 = vst [vmem:[%s3176_s12 + $0x28] sm:$0xff] %v1842_v55   ;;  %v1328_v23 = vsel %vm1314_vm1, %v927_v45, %v1199_v15  ;;  %v1185_v36 = vadd.f32 %v1153_v29, %v1089_v61  ;;  %v3585_v45 = vld [vmem:[#allocation24_spill] sm:$0xff]  ;;  %v3587_v15 = vld [vmem:[#allocation23_spill] sm:$0xff] }
 0x166   : > { %v1151_v53 = vpop.permute.xlu0 %1150  ;;  %v1327_v18 = vsel %vm1314_vm1, %v926_v17, %v1198_v43  ;;  %v1207_v26 = vmul.f32 %v3585_v45, %v3135_v40  ;;  %v3586_v61 = vld [vmem:[#allocation52_spill] sm:$0xff]  ;;  %v1206_v21 = vmul.f32 %v3587_v15, %v3137_v60  ;;  %v3596_v45 = vld [vmem:[#allocation31_spill] sm:$0xff] }
 0x167   : > { %v1184_v24 = vadd.f32 %v1151_v53, %v1088_v37  ;;  %v1847_v57 = vpack.c.bf16 %v1328_v23, %v1327_v18  ;;  %v1201_v35 = vmul.f32 0.125, %v1185_v36  ;;  %v3589_v36 = vld [vmem:[#allocation22_spill] sm:$0xff]  ;;  %v3590_v18 = vld [vmem:[#allocation21_spill] sm:$0xff] }
 0x168   : > { %v1253_v22 = vpop.permute.xlu1 %1252  ;;  %v1209_v53 = vmul.f32 %v3589_v36, %v3139_v63 }
 0x169   : > { %v1200_v33 = vmul.f32 0.125, %v1184_v24  ;;  %1913 = vst [vmem:[%s3176_s12 + $0x30] sm:$0xff] %v1847_v57   ;;  %v1330_v49 = vsel %vm1314_vm1, %v929_v34, %v1201_v35  ;;  %v1299_v13 = vadd.f32 %v1253_v22, %v1203_v39  ;;  %v1208_v24 = vmul.f32 %v3590_v18, %v3141_v28 }
 0x16a   : > { %v1251_v8 = vpop.permute.xlu0 %1250 }
 0x16b   : > { %v1329_v44 = vsel %vm1314_vm1, %v928_v27, %v1200_v33  ;;  %v1298_v31 = vadd.f32 %v1251_v8, %v1202_v12  ;;  %v1412_v1 = vsel %vm1314_vm1, %v2939_v51, %v1299_v13  ;;  %v3591_v12 = vld [vmem:[#allocation28_spill] sm:$0xff]  ;;  %v3592_v33 = vld [vmem:[#allocation27_spill] sm:$0xff] }
 0x16c   : > { %v1852_v20 = vpack.c.bf16 %v1330_v49, %v1329_v44  ;;  %v1211_v63 = vmul.f32 %v3591_v12, %v3143_v56  ;;  %v1210_v28 = vmul.f32 %v3592_v33, %v3145_v47  ;;  %v3593_v49 = vld [vmem:[#allocation26_spill] sm:$0xff] }
 0x16d   : > { %v1411_v41 = vsel %vm1314_vm1, %v2936_v11, %v1298_v31  ;;  %v941_v13 = vmul.f32 %v3593_v49, %v3564_v38  ;;  %v2110_v56 = vld [vmem:[%s2398_s29 + $0x50] sm:$0xff] }
 0x16e   : > { %1914 = vst [vmem:[%s3176_s12 + $0x38] sm:$0xff] %v1852_v20   ;;  %v1857_v3 = vpack.c.bf16 %v1412_v1, %v1411_v41  ;;  %v3595_v41 = vld [vmem:[#allocation32_spill] sm:$0xff] }
 0x170   : > { %v1257_v16 = vpop.permute.xlu1 %1256  ;;  %1858 = vst [vmem:[%s3265_s15] sm:$0xff] %v1857_v3   ;;  %v973_v3 = vadd.f32 %v3013_v10, %v941_v13  ;;  %v1214_v10 = vmul.f32 %v3596_v45, %v3153_v54 }
 0x171   : > { %v1301_v58 = vadd.f32 %v1257_v16, %v1205_v5  ;;  %v1255_v19 = vpop.permute.xlu0 %1254  ;;  %v3594_v5 = vld [vmem:[#allocation25_spill] sm:$0xff] }
 0x172   : > { %v1300_v51 = vadd.f32 %v1255_v19, %v1204_v7  ;;  %v940_v20 = vmul.f32 %v2110_v56, %v3594_v5  ;;  %v1212_v47 = vmul.f32 %v3594_v5, %v3149_v9  ;;  %v2111_v7 = vld [vmem:[%s2398_s29 + $0x68] sm:$0xff] }
 0x173   : > { %v1414_v55 = vsel %vm1314_vm1, %v3586_v61, %v1301_v58  ;;  %v943_v16 = vmul.f32 %v2111_v7, %v3595_v41 }
 0x174   : > { %v1413_v11 = vsel %vm1314_vm1, %v3588_v59, %v1300_v51  ;;  %v1261_v17 = vpop.permute.xlu1 %1260  ;;  %v2112_v51 = vld [vmem:[%s2398_s29 + $0x60] sm:$0xff]  ;;  %v3597_v59 = vld [vmem:[#allocation30_spill] sm:$0xff] }
 0x175   : > { %v1862_v37 = vpack.c.bf16 %v1414_v55, %v1413_v11  ;;  %v1303_v43 = vadd.f32 %v1261_v17, %v1207_v26  ;;  %v1259_v29 = vpop.permute.xlu0 %1258  ;;  %v972_v26 = vadd.f32 %v3010_v0, %v940_v20  ;;  %v975_v17 = vadd.f32 %v3063_v14, %v943_v16 }
 0x176   : > { %v1302_v23 = vadd.f32 %v1259_v29, %v1206_v21  ;;  %v2113_v21 = vld [vmem:[%s2398_s29 + $0x78] sm:$0xff]  ;;  %v2114_v29 = vld [vmem:[%s2398_s29 + $0x70] sm:$0xff]  ;;  %v1217_v54 = vmul.f32 %v3597_v59, %v3155_v6 }
 0x177   : > { %1915 = vst [vmem:[%s3265_s15 + $0x8] sm:$0xff] %v1862_v37   ;;  %v1416_v40 = vsel %vm1314_vm1, %v2989_v52, %v1303_v43  ;;  %v945_v11 = vmul.f32 %v2113_v21, %v3597_v59 }
 0x178   : > { %v1415_v60 = vsel %vm1314_vm1, %v2986_v50, %v1302_v23  ;;  %v1265_v34 = vpop.permute.xlu1 %1264 }
 0x179   : > { %v1867_v39 = vpack.c.bf16 %v1416_v40, %v1415_v60  ;;  %v1305_v57 = vadd.f32 %v1265_v34, %v1209_v53  ;;  %v1263_v35 = vpop.permute.xlu0 %1262  ;;  %v3599_v60 = vld [vmem:[#allocation54_spill] sm:$0xff] }
 0x17a   : > { %v1304_v27 = vadd.f32 %v1263_v35, %v1208_v24  ;;  %v977_v34 = vadd.f32 %v3599_v60, %v945_v11 }
 0x17b   : > { %1916 = vst [vmem:[%s3265_s15 + $0x10] sm:$0xff] %v1867_v39   ;;  %v1418_v52 = vsel %vm1314_vm1, %v2980_v30, %v1305_v57  ;;  %v1213_v30 = vmul.f32 %v3593_v49, %v3147_v42 }
 0x17c   : > { %v1417_v50 = vsel %vm1314_vm1, %v2977_v2, %v1304_v27  ;;  %v1269_v22 = vpop.permute.xlu1 %1268 }
 0x17d   : > { %v1872_v8 = vpack.c.bf16 %v1418_v52, %v1417_v50  ;;  %v1307_v44 = vadd.f32 %v1269_v22, %v1211_v63  ;;  %v1267_v31 = vpop.permute.xlu0 %1266 }
 0x17e   : > { %v1306_v1 = vadd.f32 %v1267_v31, %v1210_v28 }
 0x17f   : > { %1917 = vst [vmem:[%s3265_s15 + $0x18] sm:$0xff] %v1872_v8   ;;  %v1420_v2 = vsel %vm1314_vm1, %v3047_v32, %v1307_v44  ;;  %v942_v32 = vmul.f32 %v2112_v51, %v3596_v45 }
 0x180   : > { %v1419_v38 = vsel %vm1314_vm1, %v3044_v48, %v1306_v1  ;;  %v1273_v4 = vpop.permute.xlu1 %1272  ;;  %v1215_v48 = vmul.f32 %v3595_v41, %v3151_v62  ;;  %v3598_v62 = vld [vmem:[#allocation29_spill] sm:$0xff] }
 0x181   : > { %v1877_v58 = vpack.c.bf16 %v1420_v2, %v1419_v38  ;;  %v1309_v42 = vadd.f32 %v1273_v4, %v1213_v30  ;;  %v1271_v19 = vpop.permute.xlu0 %1270  ;;  %v944_v23 = vmul.f32 %v2114_v29, %v3598_v62  ;;  %v974_v36 = vadd.f32 %v3060_v46, %v942_v32  ;;  %v3600_v46 = vld [vmem:[#allocation53_spill] sm:$0xff] }
 0x182   : > { %v1308_v9 = vadd.f32 %v1271_v19, %v1212_v47  ;;  %v1216_v14 = vmul.f32 %v3598_v62, %v3157_v25 }
 0x183   : > { %1918 = vst [vmem:[%s3265_s15 + $0x20] sm:$0xff] %v1877_v58   ;;  %v1422_v61 = vsel %vm1314_vm1, %v973_v3, %v1309_v42  ;;  %v976_v27 = vadd.f32 %v3600_v46, %v944_v23 }
 0x184   : > { %v1421_v55 = vsel %vm1314_vm1, %v972_v26, %v1308_v9  ;;  %v1277_v15 = vpop.permute.xlu1 %1276 }
 0x185   : > { %v1882_v0 = vpack.c.bf16 %v1422_v61, %v1421_v55  ;;  %v1311_v37 = vadd.f32 %v1277_v15, %v1215_v48  ;;  %v1275_v43 = vpop.permute.xlu0 %1274 }
 0x186   : > { %v1310_v53 = vadd.f32 %v1275_v43, %v1214_v10 }
 0x187   : > { %1919 = vst [vmem:[%s3265_s15 + $0x28] sm:$0xff] %v1882_v0   ;;  %v1424_v40 = vsel %vm1314_vm1, %v975_v17, %v1311_v37 }
 0x188   : > { %v1423_v18 = vsel %vm1314_vm1, %v974_v36, %v1310_v53  ;;  %v1281_v24 = vpop.permute.xlu1 %1280 }
 0x189   : > { %v1887_v39 = vpack.c.bf16 %v1424_v40, %v1423_v18  ;;  %v1313_v57 = vadd.f32 %v1281_v24, %v1217_v54  ;;  %v1279_v35 = vpop.permute.xlu0 %1278 }
 0x18a   : > { %v1312_v12 = vadd.f32 %v1279_v35, %v1216_v14 }
 0x18b   : > { %1920 = vst [vmem:[%s3265_s15 + $0x30] sm:$0xff] %v1887_v39   ;;  %v1426_v6 = vsel %vm1314_vm1, %v977_v34, %v1313_v57 }
 0x18c   : > { %v1425_v63 = vsel %vm1314_vm1, %v976_v27, %v1312_v12 }
 0x18d   : > { %v1892_v52 = vpack.c.bf16 %v1426_v6, %v1425_v63 }
 0x18f   : > { %1921 = vst [vmem:[%s3265_s15 + $0x38] sm:$0xff] %v1892_v52  }
 0x190 PF: > { %p13_p9 = scmp.ge.s32.totalorder %s2189_s22, 4   ;;  %s3601_s18 = smov %s2133_s19 }
 0x191   : > { %s3602_s19 = smov %s2198_s25  ;;  %s3603_s20 = smov %s2189_s22 }
 0x192   :  { %15 = sbr.rel (!%p13_p9) target bundleno = 2 (0x2), region = 179 }

// kernel: vision_flash_attention2.6
= control target key start
LH: loop header
LB: loop body
LE: loop exit
PB: predicated region body
PF: predicated region fallthrough
CT: control target
= control target key end

     0   :  { %s5707_s0 = inlined_call_operand.vmem [shape: s32[2], index: 0, kind: input, shape index: {}, may-alias: {0,2}]   ;;  %s5708_s4 = inlined_call_operand.vmem [shape: bf16[256,128], index: 4, kind: input, shape index: {}]   ;;  %s5709_s5 = inlined_call_operand.vmem [shape: bf16[256,128], index: 5, kind: input, shape index: {}]   ;;  %s5710_s6 = inlined_call_operand.vmem [shape: bf16[256,384], index: 6, kind: input, shape index: {}]   ;;  %s5711_s7 = inlined_call_operand.vmem [shape: s32[256,1], index: 7, kind: input, shape index: {}]   ;;  %s5712_s8 = inlined_call_operand.vmem [shape: s32[1,256], index: 8, kind: input, shape index: {}]   ;;  %s5713_s9 = inlined_call_operand.vmem [shape: bf16[256,128], index: 9, kind: output, shape index: {}]   ;;  %s5714_s1 = inlined_call_operand.vmem [shape: s32[2], index: 1, kind: input, shape index: {}, may-alias: {1,3}]   ;;  %s5715_s2 = inlined_call_operand.vmem [shape: s32[2], index: 2, kind: input, shape index: {}, may-alias: {0,2}]   ;;  %s5716_s3 = inlined_call_operand.vmem [shape: s32[2], index: 3, kind: input, shape index: {}, may-alias: {1,3}]  }
   0x1   :  { %5808 = sst [smem:[#allocation57_spill]] %s5708_s4  ;;  %s14_s11 = sshll.u32 %s5707_s0, 4  ;;  %s15_s11 = int_to_ptr.vmem [resolvable:$true] %s14_s11 }
   0x2   :  { %5809 = sst [smem:[#allocation58_spill]] %s5710_s6  ;;  %s18_s14 = sshll.u32 %s5714_s1, 4  ;;  %s19_s14 = int_to_ptr.vmem [resolvable:$true] %s18_s14 }
   0x3   :  { %s3752_s15 = scalar_lea.vmem %s15_s11, 16  ;;  %p3757_p1 = scmp.lt.s32.totalorder %s15_s11, %s15_s11 }
   0x4   :  { %p3753_p0 = scmp.ne.s32.totalorder %s15_s11, %s3752_s15  ;;  %p3758_p2 = scmp.lt.s32.totalorder %s3752_s15, %s3752_s15 }
   0x6   :  { %p3759_p3 = por %p3758_p2, %p3757_p1 }
   0x8   :  { %p3760_p4 = pnand %p3759_p3, %p3753_p0 }
   0xa   :  { %3763 = shalt.err (!%p3760_p4)  }
   0xb   :  { %s3858_s16 = smov [#allocation6]   ;;  %s3764_s17 = scalar_lea.vmem %s19_s14, 16 }
   0xc   :  { %17 = dma.vmem_to_smem %s15_s11, 16, %s3858_s16, [#allocation5] }
   0xd   :  { %p3765_p5 = scmp.ne.s32.totalorder %s19_s14, %s3764_s17  ;;  %p3769_p6 = scmp.lt.s32.totalorder %s19_s14, %s19_s14 }
   0xe   :  { %p3770_p7 = scmp.lt.s32.totalorder %s3764_s17, %s3764_s17 }
  0x10   :  { %p3771_p8 = por %p3770_p7, %p3769_p6 }
  0x12   :  { %p3772_p9 = pnand %p3771_p8, %p3765_p5 }
  0x14   :  { %3775 = shalt.err (!%p3772_p9)  }
  0x15   :  { %s3859_s0 = smov [#allocation7]   ;;  %s22_s19 = sshll.u32 %s5715_s2, 4  ;;  %s23_s19 = int_to_ptr.vmem [resolvable:$true] %s22_s19 }
  0x16   :  { %21 = dma.vmem_to_smem %s19_s14, 16, %s3859_s0, [#allocation5] }
  0x17   :  { %s26_s22 = sshll.u32 %s5716_s3, 4  ;;  %s3776_s23 = scalar_lea.vmem %s23_s19, 16  ;;  %s27_s22 = int_to_ptr.vmem [resolvable:$true] %s26_s22 }
  0x18   :  { %p3777_p10 = scmp.ne.s32.totalorder %s23_s19, %s3776_s23  ;;  %p3781_p11 = scmp.lt.s32.totalorder %s23_s19, %s23_s19 }
  0x19   :  { %p3782_p12 = scmp.lt.s32.totalorder %s3776_s23, %s3776_s23 }
  0x1b   :  { %p3783_p13 = por %p3782_p12, %p3781_p11 }
  0x1d   :  { %p3784_p0 = pnand %p3783_p13, %p3777_p10 }
  0x1f   :  { %3787 = shalt.err (!%p3784_p0)  }
  0x20   :  { %s3860_s24 = smov [#allocation8]   ;;  %s3788_s25 = scalar_lea.vmem %s27_s22, 16 }
  0x21   :  { %25 = dma.vmem_to_smem %s23_s19, 16, %s3860_s24, [#allocation5] }
  0x22   :  { %p3789_p1 = scmp.ne.s32.totalorder %s27_s22, %s3788_s25  ;;  %p3793_p2 = scmp.lt.s32.totalorder %s27_s22, %s27_s22 }
  0x23   :  { %p3794_p3 = scmp.lt.s32.totalorder %s3788_s25, %s3788_s25 }
  0x25   :  { %p3795_p4 = por %p3794_p3, %p3793_p2 }
  0x27   :  { %p3796_p5 = pnand %p3795_p4, %p3789_p1 }
  0x29   :  { %3799 = shalt.err (!%p3796_p5)  }
  0x2a   :  { %s3861_s2 = smov [#allocation9]  }
  0x2b   :  { %29 = dma.vmem_to_smem %s27_s22, 16, %s3861_s2, [#allocation5] }
  0x2c   :  { %3828 = dma.done.wait [#allocation5], 64 }
  0x2d   :  { %3829 = vsyncadd [#allocation5], 4294967232 }
  0x2e   :  { %31 = sfence }
  0x2f   :  { %s3930_s3 = smov 0   ;;  %s3932_s26 = smov 0  }
  0x30   :  { %s3934_s27 = smov 0   ;;  %s3936_s28 = smov 0  }
  0x31   :  { %s3938_s29 = smov 0   ;;  %s3940_s30 = smov 0  }
  0x32   :  { %s3942_s10 = smov 0  }
  0x33 LB: > { %s46_s11 = sadd.s32 1, %s3848_s29  ;;  %s49_s12 = sadd.s32 1, %s3852_s30  ;;  %s3856_s10 = sphi %s3942_s10, %s37_s10   ;;  %s3852_s30 = sphi %s3940_s30, %s6122_s30   ;;  %s3848_s29 = sphi %s3938_s29, %s6121_s29   ;;  %s3844_s28 = sphi %s3936_s28, %s6120_s28   ;;  %s3840_s27 = sphi %s3934_s27, %s6119_s27   ;;  %s3836_s26 = sphi %s3932_s26, %s6118_s26   ;;  %s3832_s3 = sphi %s3930_s3, %s6117_s3  }
  0x34   : > { %p47_p6 = scmp.ge.s32.totalorder %s46_s11, 2  ;;  %s108_s13 = sadd.s32 1, %s3836_s26 }
  0x35   : > { %p115_p7 = scmp.ne.s32.totalorder %s3836_s26, %s3832_s3  ;;  %p116_p8 = scmp.eq.s32.totalorder %s3856_s10, 0 }
  0x36   : > { %s6124_s11 = smov (%p47_p6, %s46_s11), 0  ;;  %s6126_s12 = smov (!%p47_p6, %s49_s12), %s3852_s30 }
  0x37   : > { %s105_s14 = ssub.s32 %s3848_s29, %s6124_s11  ;;  %p117_p9 = por %p116_p8, %p115_p7 }
  0x38   : > { %p51_p10 = scmp.ge.s32.totalorder %s6126_s12, 2  ;;  %p106_p11 = scmp.eq.s32.totalorder %s105_s14, 0 }
  0x39   : > { %p3015_p12 = scmp.ge.s32.totalorder %s3856_s10, 4 }
  0x3a   : > { %s6128_s12 = smov (%p51_p10, %s6126_s12), 0 }
  0x3b   : > { %s3979_s15 = scalar_select %p106_p11, %s3836_s26, %s108_s13  }
  0x3c   : > { %219 = sbr.rel (%p3015_p12) target bundleno = 87 (0x57), region = 16 }
  0x43   : > { %240 = sbr.rel (!%p117_p9) target bundleno = 87 (0x57), region = 28  ;;  %s242_s16 = sand.u32 (%p117_p9), 1, %s3836_s26  }
  0x44   : > { %s3017_s17 = smul.u32 (%p117_p9), 192, %s3848_s29  ;;  %s3016_s0 = sshll.u32 (%p117_p9), %s242_s16, 6 }
  0x45   : > { %s5810_s6 = sld [smem:[#allocation58_spill]] (%p117_p9)  ;;  %s244_s20 = scalar_lea.vmem (%p117_p9), [#allocation10], %s3016_s0 }
  0x4b   : > { %s3987_s19 = scalar_lea.vmem %s5810_s6, %s3017_s17 }
  0x4c   : > { %v3018_v0 = vld [vmem:[%s3987_s19 + $0x8] sm:$0xf]  ;;  %v3019_v1 = vld [vmem:[%s3987_s19 + $0x14] sm:$0xf]  ;;  %v3020_v2 = vld [vmem:[%s3987_s19 + $0x20] sm:$0xf] }
  0x4d   : > { %266 = vst [vmem:[%s244_s20] sm:$0xf] %v3018_v0  ;;  %268 = vst [vmem:[%s244_s20 + $0x4] sm:$0xf] %v3019_v1  ;;  %v3021_v3 = vld [vmem:[%s3987_s19 + $0x2c] sm:$0xf] }
  0x4e   : > { %270 = vst [vmem:[%s244_s20 + $0x8] sm:$0xf] %v3020_v2  ;;  %v3022_v4 = vld [vmem:[%s3987_s19 + $0x38] sm:$0xf]  ;;  %v3023_v5 = vld [vmem:[%s3987_s19 + $0x44] sm:$0xf] }
  0x4f   : > { %272 = vst [vmem:[%s244_s20 + $0xc] sm:$0xf] %v3021_v3  ;;  %274 = vst [vmem:[%s244_s20 + $0x10] sm:$0xf] %v3022_v4  ;;  %v3024_v6 = vld [vmem:[%s3987_s19 + $0x50] sm:$0xf] }
  0x50   : > { %276 = vst [vmem:[%s244_s20 + $0x14] sm:$0xf] %v3023_v5  ;;  %v3025_v7 = vld [vmem:[%s3987_s19 + $0x5c] sm:$0xf]  ;;  %v3026_v8 = vld [vmem:[%s3987_s19 + $0x68] sm:$0xf] }
  0x51   : > { %278 = vst [vmem:[%s244_s20 + $0x18] sm:$0xf] %v3024_v6  ;;  %280 = vst [vmem:[%s244_s20 + $0x1c] sm:$0xf] %v3025_v7  ;;  %v3027_v9 = vld [vmem:[%s3987_s19 + $0x74] sm:$0xf] }
  0x52   : > { %282 = vst [vmem:[%s244_s20 + $0x20] sm:$0xf] %v3026_v8  ;;  %v3028_v10 = vld [vmem:[%s3987_s19 + $0x80] sm:$0xf]  ;;  %v3029_v11 = vld [vmem:[%s3987_s19 + $0x8c] sm:$0xf] }
  0x53   : > { %284 = vst [vmem:[%s244_s20 + $0x24] sm:$0xf] %v3027_v9  ;;  %286 = vst [vmem:[%s244_s20 + $0x28] sm:$0xf] %v3028_v10  ;;  %v3030_v12 = vld [vmem:[%s3987_s19 + $0x98] sm:$0xf] }
  0x54   : > { %288 = vst [vmem:[%s244_s20 + $0x2c] sm:$0xf] %v3029_v11  ;;  %v3031_v13 = vld [vmem:[%s3987_s19 + $0xa4] sm:$0xf]  ;;  %v3032_v14 = vld [vmem:[%s3987_s19 + $0xb0] sm:$0xf] }
  0x55   : > { %290 = vst [vmem:[%s244_s20 + $0x30] sm:$0xf] %v3030_v12  ;;  %292 = vst [vmem:[%s244_s20 + $0x34] sm:$0xf] %v3031_v13  ;;  %v3033_v15 = vld [vmem:[%s3987_s19 + $0xbc] sm:$0xf] }
  0x56   : > { %294 = vst [vmem:[%s244_s20 + $0x38] sm:$0xf] %v3032_v14  ;;  %296 = vst [vmem:[%s244_s20 + $0x3c] sm:$0xf] %v3033_v15 }
  0x57 PF: > { %p3034_p13 = scmp.ge.s32.totalorder %s3856_s10, 1  ;;  %p365_p0 = scmp.lt.s32.totalorder %s3856_s10, 5 }
  0x59   : > { %p366_p1 = pnand %p3034_p13, %p365_p0 }
  0x5a   : > { %s372_s21 = sand.u32 (!%p366_p1), 1, %s3832_s3   ;;  %s3036_s22 = sshll.u32 (!%p366_p1), %s3844_s28, 4 }
  0x5b   : > { %369 = sbr.rel (%p366_p1) target bundleno = 1927 (0x787), region = 77  ;;  %s3035_s23 = sshll.u32 (!%p366_p1), %s372_s21, 6 }
  0x5c   : > { %p418_p2 = scmp.lt.s32.totalorder (!%p366_p1), %s3036_s22, 31  ;;  %s3038_s24 = sshll.u32 (!%p366_p1), %s3840_s27, 4 }
  0x5d   : > { %p424_p3 = scmp.lt.s32.totalorder (!%p366_p1), %s3038_s24, 31  ;;  %p436_p4 = scmp.lt.s32.totalorder (!%p366_p1), %s3840_s27, 1 }
  0x5e   : > { %s5811_s4 = sld [smem:[#allocation57_spill]] (!%p366_p1)  ;;  %s4038_s17 = scalar_lea.vmem (!%p366_p1), [#allocation10], %s3035_s23 }
  0x5f   : > { %p3044_p5 = scmp.ne.s32.totalorder (!%p366_p1), %s3840_s27, 0 }
  0x62   : > { %s6130_s22 = smov (!%p418_p2, %s3036_s22), 31  ;;  %s6132_s24 = smov (!%p424_p3, %s3038_s24), 31 }
  0x63   : > { %s3037_s25 = sshll.u32 %s6130_s22, 2  ;;  %s3041_s2 = sshll.u32 %s6130_s22, 3  ;;  %vm450_vm0 = vcmask (!%p3044_p5), 7168   ;;  %vm515_vm1 = vcmask (!%p3044_p5), 523264   ;;  %v3862_v16 = vmov (!%p3044_p5), -1e+30  }
  0x64   : > { %s4014_s16 = scalar_lea.vmem %s5811_s4, %s3037_s25  ;;  %s4019_s1 = scalar_lea.vmem %s5711_s7, %s3041_s2  ;;  %451 = vst.msk [vmem:[#allocation2] sm:$0xff] (!%p3044_p5), %vm450_vm0, %v3862_v16  ;;  %452 = vst.msk [vmem:[#allocation2 + $0x8] sm:$0xff] (!%p3044_p5), %vm450_vm0, %v3862_v16  ;;  %v3863_v17 = vmov (!%p3044_p5), 0.0  }
  0x65   : > { %s4022_s3 = scalar_select %p436_p4, %s3840_s27, 1 }
  0x66   : > { %s3039_s18 = sshll.u32 %s6132_s24, 2  ;;  %s4027_s21 = scalar_lea.vmem %s5713_s9, %s3037_s25  ;;  %453 = vst.msk [vmem:[#allocation2 + $0x10] sm:$0xff] (!%p3044_p5), %vm450_vm0, %v3862_v16  ;;  %454 = vst.msk [vmem:[#allocation2 + $0x18] sm:$0xff] (!%p3044_p5), %vm450_vm0, %v3862_v16 }
  0x67   : > { %s4032_s13 = scalar_lea.vmem %s5709_s5, %s3039_s18  ;;  %s438_s2 = scalar_lea.vmem %s5712_s8, %s4022_s3  ;;  %455 = vst.msk [vmem:[#allocation2 + $0x20] sm:$0xff] (!%p3044_p5), %vm450_vm0, %v3862_v16  ;;  %456 = vst.msk [vmem:[#allocation2 + $0x28] sm:$0xff] (!%p3044_p5), %vm450_vm0, %v3862_v16 }
  0x68   : > { %449 = sbr.rel (%p3044_p5) target bundleno = 149 (0x95), region = 85  ;;  %457 = vst.msk [vmem:[#allocation2 + $0x30] sm:$0xff] (!%p3044_p5), %vm450_vm0, %v3862_v16  ;;  %458 = vst.msk [vmem:[#allocation2 + $0x38] sm:$0xff] (!%p3044_p5), %vm450_vm0, %v3862_v16 }
  0x69   : > { %459 = vst.msk [vmem:[#allocation2 + $0x40] sm:$0xff] (!%p3044_p5), %vm450_vm0, %v3862_v16  ;;  %460 = vst.msk [vmem:[#allocation2 + $0x48] sm:$0xff] (!%p3044_p5), %vm450_vm0, %v3862_v16 }
  0x6a   : > { %461 = vst.msk [vmem:[#allocation2 + $0x50] sm:$0xff] (!%p3044_p5), %vm450_vm0, %v3862_v16  ;;  %462 = vst.msk [vmem:[#allocation2 + $0x58] sm:$0xff] (!%p3044_p5), %vm450_vm0, %v3862_v16 }
  0x6b   : > { %463 = vst.msk [vmem:[#allocation2 + $0x60] sm:$0xff] (!%p3044_p5), %vm450_vm0, %v3862_v16  ;;  %464 = vst.msk [vmem:[#allocation2 + $0x68] sm:$0xff] (!%p3044_p5), %vm450_vm0, %v3862_v16 }
  0x6c   : > { %465 = vst.msk [vmem:[#allocation2 + $0x70] sm:$0xff] (!%p3044_p5), %vm450_vm0, %v3862_v16  ;;  %466 = vst.msk [vmem:[#allocation2 + $0x78] sm:$0xff] (!%p3044_p5), %vm450_vm0, %v3862_v16 }
  0x6d   : > { %467 = vst.msk [vmem:[#allocation2 + $0x80] sm:$0xff] (!%p3044_p5), %vm450_vm0, %v3862_v16  ;;  %468 = vst.msk [vmem:[#allocation2 + $0x88] sm:$0xff] (!%p3044_p5), %vm450_vm0, %v3862_v16 }
  0x6e   : > { %469 = vst.msk [vmem:[#allocation2 + $0x90] sm:$0xff] (!%p3044_p5), %vm450_vm0, %v3862_v16  ;;  %470 = vst.msk [vmem:[#allocation2 + $0x98] sm:$0xff] (!%p3044_p5), %vm450_vm0, %v3862_v16 }
  0x6f   : > { %471 = vst.msk [vmem:[#allocation2 + $0xa0] sm:$0xff] %vm450_vm0, %v3862_v16  ;;  %472 = vst.msk [vmem:[#allocation2 + $0xa8] sm:$0xff] %vm450_vm0, %v3862_v16 }
  0x70   : > { %473 = vst.msk [vmem:[#allocation2 + $0xb0] sm:$0xff] %vm450_vm0, %v3862_v16  ;;  %474 = vst.msk [vmem:[#allocation2 + $0xb8] sm:$0xff] %vm450_vm0, %v3862_v16 }
  0x71   : > { %475 = vst.msk [vmem:[#allocation2 + $0xc0] sm:$0xff] %vm450_vm0, %v3862_v16  ;;  %476 = vst.msk [vmem:[#allocation2 + $0xc8] sm:$0xff] %vm450_vm0, %v3862_v16 }
  0x72   : > { %477 = vst.msk [vmem:[#allocation2 + $0xd0] sm:$0xff] %vm450_vm0, %v3862_v16  ;;  %478 = vst.msk [vmem:[#allocation2 + $0xd8] sm:$0xff] %vm450_vm0, %v3862_v16 }
  0x73   : > { %479 = vst.msk [vmem:[#allocation2 + $0xe0] sm:$0xff] %vm450_vm0, %v3862_v16  ;;  %480 = vst.msk [vmem:[#allocation2 + $0xe8] sm:$0xff] %vm450_vm0, %v3862_v16 }
  0x74   : > { %481 = vst.msk [vmem:[#allocation2 + $0xf0] sm:$0xff] %vm450_vm0, %v3862_v16  ;;  %482 = vst.msk [vmem:[#allocation2 + $0xf8] sm:$0xff] %vm450_vm0, %v3862_v16 }
  0x75   : > { %483 = vst.msk [vmem:[#allocation3] sm:$0xff] %vm450_vm0, %v3863_v17  ;;  %484 = vst.msk [vmem:[#allocation3 + $0x8] sm:$0xff] %vm450_vm0, %v3863_v17 }
  0x76   : > { %485 = vst.msk [vmem:[#allocation3 + $0x10] sm:$0xff] %vm450_vm0, %v3863_v17  ;;  %486 = vst.msk [vmem:[#allocation3 + $0x18] sm:$0xff] %vm450_vm0, %v3863_v17 }
  0x77   : > { %487 = vst.msk [vmem:[#allocation3 + $0x20] sm:$0xff] %vm450_vm0, %v3863_v17  ;;  %488 = vst.msk [vmem:[#allocation3 + $0x28] sm:$0xff] %vm450_vm0, %v3863_v17 }
  0x78   : > { %489 = vst.msk [vmem:[#allocation3 + $0x30] sm:$0xff] %vm450_vm0, %v3863_v17  ;;  %490 = vst.msk [vmem:[#allocation3 + $0x38] sm:$0xff] %vm450_vm0, %v3863_v17 }
  0x79   : > { %491 = vst.msk [vmem:[#allocation3 + $0x40] sm:$0xff] %vm450_vm0, %v3863_v17  ;;  %492 = vst.msk [vmem:[#allocation3 + $0x48] sm:$0xff] %vm450_vm0, %v3863_v17 }
  0x7a   : > { %493 = vst.msk [vmem:[#allocation3 + $0x50] sm:$0xff] %vm450_vm0, %v3863_v17  ;;  %494 = vst.msk [vmem:[#allocation3 + $0x58] sm:$0xff] %vm450_vm0, %v3863_v17 }
  0x7b   : > { %495 = vst.msk [vmem:[#allocation3 + $0x60] sm:$0xff] %vm450_vm0, %v3863_v17  ;;  %496 = vst.msk [vmem:[#allocation3 + $0x68] sm:$0xff] %vm450_vm0, %v3863_v17 }
  0x7c   : > { %497 = vst.msk [vmem:[#allocation3 + $0x70] sm:$0xff] %vm450_vm0, %v3863_v17  ;;  %498 = vst.msk [vmem:[#allocation3 + $0x78] sm:$0xff] %vm450_vm0, %v3863_v17 }
  0x7d   : > { %499 = vst.msk [vmem:[#allocation3 + $0x80] sm:$0xff] %vm450_vm0, %v3863_v17  ;;  %500 = vst.msk [vmem:[#allocation3 + $0x88] sm:$0xff] %vm450_vm0, %v3863_v17 }
  0x7e   : > { %501 = vst.msk [vmem:[#allocation3 + $0x90] sm:$0xff] %vm450_vm0, %v3863_v17  ;;  %502 = vst.msk [vmem:[#allocation3 + $0x98] sm:$0xff] %vm450_vm0, %v3863_v17 }
  0x7f   : > { %503 = vst.msk [vmem:[#allocation3 + $0xa0] sm:$0xff] %vm450_vm0, %v3863_v17  ;;  %504 = vst.msk [vmem:[#allocation3 + $0xa8] sm:$0xff] %vm450_vm0, %v3863_v17 }
  0x80   : > { %505 = vst.msk [vmem:[#allocation3 + $0xb0] sm:$0xff] %vm450_vm0, %v3863_v17  ;;  %506 = vst.msk [vmem:[#allocation3 + $0xb8] sm:$0xff] %vm450_vm0, %v3863_v17 }
  0x81   : > { %507 = vst.msk [vmem:[#allocation3 + $0xc0] sm:$0xff] %vm450_vm0, %v3863_v17  ;;  %508 = vst.msk [vmem:[#allocation3 + $0xc8] sm:$0xff] %vm450_vm0, %v3863_v17 }
  0x82   : > { %509 = vst.msk [vmem:[#allocation3 + $0xd0] sm:$0xff] %vm450_vm0, %v3863_v17  ;;  %510 = vst.msk [vmem:[#allocation3 + $0xd8] sm:$0xff] %vm450_vm0, %v3863_v17 }
  0x83   : > { %511 = vst.msk [vmem:[#allocation3 + $0xe0] sm:$0xff] %vm450_vm0, %v3863_v17  ;;  %512 = vst.msk [vmem:[#allocation3 + $0xe8] sm:$0xff] %vm450_vm0, %v3863_v17 }
  0x84   : > { %513 = vst.msk [vmem:[#allocation3 + $0xf0] sm:$0xff] %vm450_vm0, %v3863_v17  ;;  %514 = vst.msk [vmem:[#allocation3 + $0xf8] sm:$0xff] %vm450_vm0, %v3863_v17 }
  0x85   : > { %516 = vst.msk [vmem:[#allocation4] sm:$0xff] %vm515_vm1, %v3863_v17  ;;  %517 = vst.msk [vmem:[#allocation4 + $0x8] sm:$0xff] %vm515_vm1, %v3863_v17 }
  0x86   : > { %518 = vst.msk [vmem:[#allocation4 + $0x10] sm:$0xff] %vm515_vm1, %v3863_v17  ;;  %519 = vst.msk [vmem:[#allocation4 + $0x18] sm:$0xff] %vm515_vm1, %v3863_v17 }
  0x87   : > { %520 = vst.msk [vmem:[#allocation4 + $0x20] sm:$0xff] %vm515_vm1, %v3863_v17  ;;  %521 = vst.msk [vmem:[#allocation4 + $0x28] sm:$0xff] %vm515_vm1, %v3863_v17 }
  0x88   : > { %522 = vst.msk [vmem:[#allocation4 + $0x30] sm:$0xff] %vm515_vm1, %v3863_v17  ;;  %523 = vst.msk [vmem:[#allocation4 + $0x38] sm:$0xff] %vm515_vm1, %v3863_v17 }
  0x89   : > { %524 = vst.msk [vmem:[#allocation4 + $0x40] sm:$0xff] %vm515_vm1, %v3863_v17  ;;  %525 = vst.msk [vmem:[#allocation4 + $0x48] sm:$0xff] %vm515_vm1, %v3863_v17 }
  0x8a   : > { %526 = vst.msk [vmem:[#allocation4 + $0x50] sm:$0xff] %vm515_vm1, %v3863_v17  ;;  %527 = vst.msk [vmem:[#allocation4 + $0x58] sm:$0xff] %vm515_vm1, %v3863_v17 }
  0x8b   : > { %528 = vst.msk [vmem:[#allocation4 + $0x60] sm:$0xff] %vm515_vm1, %v3863_v17  ;;  %529 = vst.msk [vmem:[#allocation4 + $0x68] sm:$0xff] %vm515_vm1, %v3863_v17 }
  0x8c   : > { %530 = vst.msk [vmem:[#allocation4 + $0x70] sm:$0xff] %vm515_vm1, %v3863_v17  ;;  %531 = vst.msk [vmem:[#allocation4 + $0x78] sm:$0xff] %vm515_vm1, %v3863_v17 }
  0x8d   : > { %532 = vst.msk [vmem:[#allocation4 + $0x80] sm:$0xff] %vm515_vm1, %v3863_v17  ;;  %533 = vst.msk [vmem:[#allocation4 + $0x88] sm:$0xff] %vm515_vm1, %v3863_v17 }
  0x8e   : > { %534 = vst.msk [vmem:[#allocation4 + $0x90] sm:$0xff] %vm515_vm1, %v3863_v17  ;;  %535 = vst.msk [vmem:[#allocation4 + $0x98] sm:$0xff] %vm515_vm1, %v3863_v17 }
  0x8f   : > { %536 = vst.msk [vmem:[#allocation4 + $0xa0] sm:$0xff] %vm515_vm1, %v3863_v17  ;;  %537 = vst.msk [vmem:[#allocation4 + $0xa8] sm:$0xff] %vm515_vm1, %v3863_v17 }
  0x90   : > { %538 = vst.msk [vmem:[#allocation4 + $0xb0] sm:$0xff] %vm515_vm1, %v3863_v17  ;;  %539 = vst.msk [vmem:[#allocation4 + $0xb8] sm:$0xff] %vm515_vm1, %v3863_v17 }
  0x91   : > { %540 = vst.msk [vmem:[#allocation4 + $0xc0] sm:$0xff] %vm515_vm1, %v3863_v17  ;;  %541 = vst.msk [vmem:[#allocation4 + $0xc8] sm:$0xff] %vm515_vm1, %v3863_v17 }
  0x92   : > { %542 = vst.msk [vmem:[#allocation4 + $0xd0] sm:$0xff] %vm515_vm1, %v3863_v17  ;;  %543 = vst.msk [vmem:[#allocation4 + $0xd8] sm:$0xff] %vm515_vm1, %v3863_v17 }
  0x93   : > { %544 = vst.msk [vmem:[#allocation4 + $0xe0] sm:$0xff] %vm515_vm1, %v3863_v17  ;;  %545 = vst.msk [vmem:[#allocation4 + $0xe8] sm:$0xff] %vm515_vm1, %v3863_v17 }
  0x94   : > { %546 = vst.msk [vmem:[#allocation4 + $0xf0] sm:$0xff] %vm515_vm1, %v3863_v17  ;;  %547 = vst.msk [vmem:[#allocation4 + $0xf8] sm:$0xff] %vm515_vm1, %v3863_v17 }
  0x95 PF: > { %s548_s4 = sld [smem:[#allocation6 + %s3844_s28]] }
  0x96   : > { %s549_s6 = sld [smem:[#allocation9 + %s3840_s27]] }
  0x97   : > { %s551_s23 = sld [smem:[#allocation8 + %s3840_s27]] }
  0x98   : > { %s552_s24 = sld [smem:[#allocation7 + %s3844_s28]] }
  0x9c   : > { %p550_p6 = scmp.le.s32.totalorder %s548_s4, %s549_s6 }
  0x9e   : > { %p553_p7 = scmp.le.s32.totalorder %s551_s23, %s552_s24 }
  0xa0   : > { %p554_p8 = pnand %p553_p7, %p550_p6 }
  0xa2   : > { %557 = sbr.rel (%p554_p8) target bundleno = 1616 (0x650), region = 89 }
  0xa9   : > { %v4206_v18 = vld [vmem:[%s4032_s13] sm:$0xff]   ;;  %vm5717_vm2 = vcmask 523264   ;;  %v4209_v19 = vld [vmem:[%s4032_s13 + $0x8] sm:$0xff]   ;;  %v3864_v21 = vmov 0   ;;  %v4218_v22 = vld [vmem:[%s4032_s13 + $0x10] sm:$0xff]   ;;  %v5812_v3 = vmov 0 }
  0xaa   : > { %3408 = vmatprep.subr.msk.bf16.mxu0 %vm5717_vm2, %v4206_v18  ;;  %v797_v20 = vsel %vm5717_vm2, %v4206_v18, 0  ;;  %3491 = vset.pattern.permute.xlu1 %v3864_v21  ;;  %v800_v23 = vsel %vm5717_vm2, %v4209_v19, 0  ;;  %v4223_v24 = vld [vmem:[%s4014_s16] sm:$0xff]   ;;  %v803_v25 = vsel %vm5717_vm2, %v4218_v22, 0  ;;  %v4232_v26 = vld [vmem:[%s4032_s13 + $0x18] sm:$0xff]   ;;  %v560_v27 = vld [vmem:[%s4019_s1 + $0x10] sm:$0xff] }
  0xab   : > { %3281 = vmatpush3.bf16.xpose.msra.mxu0 %v797_v20  ;;  %3490 = vset.pattern.permute.xlu0 %v3864_v21  ;;  %v558_v28 = vld [vmem:[%s4019_s1] sm:$0xff]  ;;  %v561_v29 = vld [vmem:[%s4019_s1 + $0x18] sm:$0xff]  ;;  %v559_v30 = vld [vmem:[%s4019_s1 + $0x8] sm:$0xff]  ;;  %v806_v31 = vsel %vm5717_vm2, %v4232_v26, 0  ;;  %v5814_v9 = vmov 0  ;;  %v5819_v15 = vmov 0 }
  0xac   : > { %3409 = vmatprep.subr.msk.bf16.mxu0 %vm5717_vm2, %v4209_v19  ;;  %3296 = vmatprep.mubr.msk.bf16.mxu0 %vm5717_vm2, %v4223_v24  ;;  %v563_v32 = vld [vmem:[%s4019_s1 + $0x28] sm:$0xff]  ;;  %v562_v33 = vld [vmem:[%s4019_s1 + $0x20] sm:$0xff]  ;;  %v565_v35 = vld [vmem:[%s4019_s1 + $0x38] sm:$0xff]  ;;  %v5822_v16 = vmov 0 }
  0xad   : > { %582 = vperm.xlu1 %3491, %v560_v27   ;;  %576 = vperm.xlu0 %3490, %v558_v28   ;;  %v4245_v34 = vld [vmem:[%s4032_s13 + $0x20] sm:$0xff]   ;;  %v564_v36 = vld [vmem:[%s4019_s1 + $0x30] sm:$0xff]  ;;  %v567_v37 = vld [vmem:[%s4019_s1 + $0x48] sm:$0xff] }
  0xae   : > { %v566_v38 = vld [vmem:[%s4019_s1 + $0x40] sm:$0xff]  ;;  %v809_v39 = vsel %vm5717_vm2, %v4245_v34, 0  ;;  %v4256_v40 = vld [vmem:[%s4032_s13 + $0x28] sm:$0xff]   ;;  %v569_v41 = vld [vmem:[%s4019_s1 + $0x58] sm:$0xff] }
  0xaf   : > { %v568_v42 = vld [vmem:[%s4019_s1 + $0x50] sm:$0xff]  ;;  %v571_v43 = vld [vmem:[%s4019_s1 + $0x68] sm:$0xff]  ;;  %v570_v44 = vld [vmem:[%s4019_s1 + $0x60] sm:$0xff]  ;;  %v812_v45 = vsel %vm5717_vm2, %v4256_v40, 0 }
  0xb0   : > { %v4267_v46 = vld [vmem:[%s4032_s13 + $0x30] sm:$0xff]   ;;  %v573_v47 = vld [vmem:[%s4019_s1 + $0x78] sm:$0xff]  ;;  %v4283_v52 = vld [vmem:[%s4014_s16 + $0x8] sm:$0xff]  }
  0xb1   : > { %585 = vperm.xlu1 %3491, %v561_v29   ;;  %579 = vperm.xlu0 %3490, %v559_v30   ;;  %v572_v48 = vld [vmem:[%s4019_s1 + $0x70] sm:$0xff]  ;;  %v815_v49 = vsel %vm5717_vm2, %v4267_v46, 0  ;;  %v4276_v50 = vld [vmem:[%s4032_s13 + $0x38] sm:$0xff]   ;;  %v4296_v55 = vld [vmem:[%s4014_s16 + $0x20] sm:$0xff]   ;;  %v5825_v30 = vmov 0 }
  0xb2   : > { %v818_v51 = vsel %vm5717_vm2, %v4276_v50, 0  ;;  %v4286_v53 = vld [vmem:[%s4014_s16 + $0x10] sm:$0xff]   ;;  %v4293_v54 = vld [vmem:[%s4014_s16 + $0x18] sm:$0xff]   ;;  %v4303_v56 = vld [vmem:[%s4014_s16 + $0x28] sm:$0xff]  }
  0xb3   : > { %3283 = vmatpush3.bf16.xpose.msra.mxu0 %v800_v23  ;;  %v4306_v57 = vld [vmem:[%s4014_s16 + $0x30] sm:$0xff]   ;;  %v4313_v58 = vld [vmem:[%s4014_s16 + $0x38] sm:$0xff]   ;;  %v4322_v0 = vld [vmem:[%s438_s2] ss:$0 sm:$0xff]  ;;  %s3865_s16 = smov 64  }
  0xb4   : > { %3410 = vmatprep.subr.msk.bf16.mxu0 %vm5717_vm2, %v4218_v22 }
  0xb5   : > { %591 = vperm.xlu1 %3491, %v563_v32   ;;  %588 = vperm.xlu0 %3490, %v562_v33  }
  0xb9   : > { %597 = vperm.xlu1 %3491, %v565_v35   ;;  %594 = vperm.xlu0 %3490, %v564_v36  }
  0xbb   : > { %3285 = vmatpush3.bf16.xpose.msra.mxu0 %v803_v25 }
  0xbc   : > { %3411 = vmatprep.subr.msk.bf16.mxu0 %vm5717_vm2, %v4232_v26 }
  0xbd   : > { %603 = vperm.xlu1 %3491, %v567_v37   ;;  %600 = vperm.xlu0 %3490, %v566_v38   ;;  %v5831_v37 = vmov 0 }
  0xc1   : > { %609 = vperm.xlu1 %3491, %v569_v41   ;;  %606 = vperm.xlu0 %3490, %v568_v42  }
  0xc3   : > { %3287 = vmatpush3.bf16.xpose.msra.mxu0 %v806_v31  ;;  %v5828_v31 = vmov 0 }
  0xc4   : > { %3412 = vmatprep.subr.msk.bf16.mxu0 %vm5717_vm2, %v4245_v34 }
  0xc5   : > { %615 = vperm.xlu1 %3491, %v571_v43   ;;  %612 = vperm.xlu0 %3490, %v570_v44  }
  0xc9   : > { %621 = vperm.xlu1 %3491, %v573_v47   ;;  %618 = vperm.xlu0 %3490, %v572_v48   ;;  %v5837_v47 = vmov 0 }
  0xcb   : > { %3289 = vmatpush3.bf16.xpose.msra.mxu0 %v809_v39  ;;  %v5834_v39 = vmov 0 }
  0xcc   : > { %3413 = vmatprep.subr.msk.bf16.mxu0 %vm5717_vm2, %v4256_v40 }
  0xd3   : > { %3291 = vmatpush3.bf16.xpose.msra.mxu0 %v812_v45 }
  0xd4   : > { %3414 = vmatprep.subr.msk.bf16.mxu0 %vm5717_vm2, %v4267_v46 }
  0xdb   : > { %3293 = vmatpush3.bf16.xpose.msra.mxu0 %v815_v49  ;;  %v5840_v49 = vmov 0 }
  0xdc   : > { %3415 = vmatprep.subr.msk.bf16.mxu0 %vm5717_vm2, %v4276_v50 }
  0xe3   : > { %3295 = vmatpush3.bf16.xpose.msra.mxu0 %v818_v51 }
  0xea   : > { %3297 = vmatmul.mubr.msk.bf16.vlgmr.msra.gmra.mrb[0].mxu0 %vm5717_vm2, %v4283_v52 }
  0xeb   : > { %3300 = vmatprep.mubr.msk.bf16.mxu0 %vm5717_vm2, %v4286_v53 }
  0xf2   : > { %3301 = vmatmul.mubr.msk.bf16.gmra.mrb[4].mxu0 %vm5717_vm2, %v4293_v54 }
  0xf3   : > { %3304 = vmatprep.mubr.msk.bf16.mxu0 %vm5717_vm2, %v4296_v55 }
  0xfa   : > { %3305 = vmatmul.mubr.msk.bf16.gmra.mrb[8].mxu0 %vm5717_vm2, %v4303_v56 }
  0xfb   : > { %3308 = vmatprep.mubr.msk.bf16.mxu0 %vm5717_vm2, %v4306_v57 }
 0x102   : > { %3309 = vmatmul.mubr.msk.bf16.gmra.mrb[12].mxu0 %vm5717_vm2, %v4313_v58 }
 0x12c   : > { %v577_v59 = vpop.permute.xlu0 %576  ;;  %v583_v60 = vpop.permute.xlu1 %582 }
 0x12d   : > { %vm4325_vm3 = vcmp.eq.s32.totalorder %v577_v59, %v4322_v0  ;;  %vm4334_vm4 = vcmp.eq.s32.totalorder %v583_v60, %v4322_v0 }
 0x12e   : > { %v5813_v3 = vsel %vm4325_vm3, 4294967295, %v5812_v3  ;;  %v5815_v9 = vsel %vm4334_vm4, 4294967295, %v5814_v9 }
 0x12f   : > { %5816 = vst [vmem:[#allocation12_spill] sm:$0xff] %v5815_v9 }
 0x130   : > { %v580_v61 = vpop.permute.xlu0 %579  ;;  %v586_v62 = vpop.permute.xlu1 %585 }
 0x131   : > { %vm4339_vm5 = vcmp.eq.s32.totalorder %v580_v61, %v4322_v0  ;;  %vm4354_vm6 = vcmp.eq.s32.totalorder %v586_v62, %v4322_v0  ;;  %v5843_v61 = vmov 0 }
 0x132   : > { %v5820_v15 = vsel %vm4354_vm6, 4294967295, %v5819_v15 }
 0x133   : > { %5821 = vst [vmem:[#allocation13_spill] sm:$0xff] %v5820_v15  ;;  %v3645_v15 = vld [vmem:[%s4038_s17 + $0x38] sm:$0xff]  }
 0x134   : > { %v589_v63 = vpop.permute.xlu0 %588  ;;  %v592_v1 = vpop.permute.xlu1 %591 }
 0x135   : > { %vm4375_vm8 = vcmp.eq.s32.totalorder %v589_v63, %v4322_v0  ;;  %vm4400_vm11 = vcmp.eq.s32.totalorder %v592_v1, %v4322_v0  ;;  %v5845_v63 = vmov 0 }
 0x136   : > { %v5826_v30 = vsel %vm4375_vm8, 4294967295, %v5825_v30  ;;  %v5835_v39 = vsel %vm4400_vm11, 4294967295, %v5834_v39 }
 0x137   : > { %5827 = vst [vmem:[#allocation15_spill] sm:$0xff] %v5826_v30  ;;  %5836 = vst [vmem:[#allocation18_spill] sm:$0xff] %v5835_v39 }
 0x138   : > { %v595_v2 = vpop.permute.xlu0 %594  ;;  %v598_v6 = vpop.permute.xlu1 %597 }
 0x139   : > { %vm4360_vm7 = vcmp.eq.s32.totalorder %v595_v2, %v4322_v0  ;;  %vm4380_vm9 = vcmp.eq.s32.totalorder %v598_v6, %v4322_v0 }
 0x13a   : > { %v5823_v16 = vsel %vm4360_vm7, 4294967295, %v5822_v16  ;;  %v5829_v31 = vsel %vm4380_vm9, 4294967295, %v5828_v31 }
 0x13b   : > { %5824 = vst [vmem:[#allocation14_spill] sm:$0xff] %v5823_v16  ;;  %5830 = vst [vmem:[#allocation16_spill] sm:$0xff] %v5829_v31 }
 0x13c   : > { %v601_v11 = vpop.permute.xlu0 %600  ;;  %v604_v17 = vpop.permute.xlu1 %603 }
 0x13d   : > { %vm4415_vm12 = vcmp.eq.s32.totalorder %v601_v11, %v4322_v0  ;;  %vm4440_vm15 = vcmp.eq.s32.totalorder %v604_v17, %v4322_v0  ;;  %v5848_v11 = vmov 0 }
 0x13e   : > { %v5838_v47 = vsel %vm4415_vm12, 4294967295, %v5837_v47  ;;  %v5846_v63 = vsel %vm4440_vm15, 4294967295, %v5845_v63 }
 0x13f   : > { %5839 = vst [vmem:[#allocation19_spill] sm:$0xff] %v5838_v47  ;;  %5847 = vst [vmem:[#allocation21_spill] sm:$0xff] %v5846_v63 }
 0x140   : > { %v607_v21 = vpop.permute.xlu0 %606  ;;  %v610_v33 = vpop.permute.xlu1 %609 }
 0x141   : > { %vm4395_vm10 = vcmp.eq.s32.totalorder %v607_v21, %v4322_v0  ;;  %vm4420_vm13 = vcmp.eq.s32.totalorder %v610_v33, %v4322_v0  ;;  %v5852_v21 = vmov 0  ;;  %v4493_v33 = vld [vmem:[%s4038_s17 + $0x10] sm:$0xff]  }
 0x142   : > { %v5832_v37 = vsel %vm4395_vm10, 4294967295, %v5831_v37  ;;  %v5841_v49 = vsel %vm4420_vm13, 4294967295, %v5840_v49  ;;  %5856 = vst [vmem:[#allocation24_spill] sm:$0xff] %v4493_v33 }
 0x143   : > { %5833 = vst [vmem:[#allocation17_spill] sm:$0xff] %v5832_v37  ;;  %5842 = vst [vmem:[#allocation20_spill] sm:$0xff] %v5841_v49 }
 0x144   : > { %v613_v36 = vpop.permute.xlu0 %612  ;;  %v616_v48 = vpop.permute.xlu1 %615 }
 0x145   : > { %vm4455_vm0 = vcmp.eq.s32.totalorder %v613_v36, %v4322_v0  ;;  %vm4475_vm2 = vcmp.eq.s32.totalorder %v616_v48, %v4322_v0  ;;  %v4504_v36 = vld [vmem:[%s4038_s17 + $0x20] sm:$0xff]  }
 0x146   : > { %v5849_v11 = vsel %vm4455_vm0, 4294967295, %v5848_v11  ;;  %v5853_v21 = vsel %vm4475_vm2, 4294967295, %v5852_v21  ;;  %5858 = vst [vmem:[#allocation26_spill] sm:$0xff] %v4504_v36 }
 0x148   : > { %v619_v51 = vpop.permute.xlu0 %618 }
 0x149   : > { %vm4435_vm14 = vcmp.eq.s32.totalorder %v619_v51, %v4322_v0  ;;  %v4516_v51 = vld [vmem:[#allocation2 + $0x10] sm:$0xff] }
 0x14a   : > { %v5844_v61 = vsel %vm4435_vm14, 4294967295, %v5843_v61 }
 0x1bd   : > { %v3298_v4 = vpop.f32.mrb[0].mxu0 }
 0x1be   : > { %v854_v5 = vpop.f32.mrb[1].mxu0  ;;  %v4351_v14 = vsel %vm4334_vm4, %v3298_v4, -1e+30  ;;  %v622_v4 = vpop.permute.xlu1 %621 }
 0x1bf   : > { %v3299_v7 = vpop.f32.mrb[2].mxu0  ;;  %v4331_v8 = vsel %vm4325_vm3, %v854_v5, -1e+30  ;;  %vm4460_vm1 = vcmp.eq.s32.totalorder %v622_v4, %v4322_v0  ;;  %v4499_v0 = vld [vmem:[%s4038_s17 + $0x18] sm:$0xff]  }
 0x1c0   : > { %v857_v12 = vpop.f32.mrb[3].mxu0  ;;  %965 = vmax.xlane.f32.xlu0 %v4331_v8  ;;  %v4371_v28 = vsel %vm4354_vm6, %v3299_v7, -1e+30  ;;  %5857 = vst [vmem:[#allocation25_spill] sm:$0xff] %v4499_v0 }
 0x1c1   : > { %v4346_v13 = vsel %vm4339_vm5, %v857_v12, -1e+30  ;;  %v5850_v12 = vmov 0 }
 0x1c2   : > { %967 = vmax.xlane.f32.xlu1 %v4346_v13  ;;  %v5851_v12 = vsel %vm4460_vm1, 4294967295, %v5850_v12 }
 0x1c4   : > { %969 = vmax.xlane.f32.xlu0 %v4351_v14 }
 0x1c5   : > { %v3302_v20 = vpop.f32.mrb[4].mxu0 }
 0x1c6   : > { %v870_v23 = vpop.f32.mrb[5].mxu0  ;;  %v4366_v25 = vsel %vm4360_vm7, %v3302_v20, -1e+30 }
 0x1c7   : > { %v3303_v27 = vpop.f32.mrb[6].mxu0  ;;  %977 = vmax.xlane.f32.xlu1 %v4366_v25  ;;  %v4386_v32 = vsel %vm4375_vm8, %v870_v23, -1e+30 }
 0x1c8   : > { %v873_v29 = vpop.f32.mrb[7].mxu0  ;;  %971 = vmax.xlane.f32.xlu0 %v4371_v28  ;;  %v4391_v35 = vsel %vm4380_vm9, %v3303_v27, -1e+30  ;;  %v4485_v27 = vld [vmem:[%s4038_s17] sm:$0xff]  }
 0x1c9   : > { %v4411_v44 = vsel %vm4400_vm11, %v873_v29, -1e+30  ;;  %5854 = vst [vmem:[#allocation22_spill] sm:$0xff] %v4485_v27  ;;  %3312 = vmatprep.subr.bf16.mxu1 %v4485_v27  ;;  %v4490_v29 = vld [vmem:[%s4038_s17 + $0x8] sm:$0xff]  }
 0x1ca   : > { %3313 = vmatpush3.bf16.msra.mxu1 %v4485_v27  ;;  %5855 = vst [vmem:[#allocation23_spill] sm:$0xff] %v4490_v29  ;;  %v3515_v27 = vld [vmem:[%s4038_s17 + $0x38] sm:$0xff]  }
 0x1cb   : > { %973 = vmax.xlane.f32.xlu1 %v4386_v32  ;;  %3314 = vmatprep.subr.bf16.mxu1 %v4490_v29 }
 0x1cc   : > { %979 = vmax.xlane.f32.xlu0 %v4391_v35 }
 0x1cd   : > { %v3306_v38 = vpop.f32.mrb[8].mxu0 }
 0x1ce   : > { %v886_v41 = vpop.f32.mrb[9].mxu0  ;;  %v4406_v42 = vsel %vm4395_vm10, %v3306_v38, -1e+30  ;;  %3315 = vmatpush3.bf16.msra.mxu1 %v4490_v29  ;;  %v4509_v38 = vld [vmem:[#allocation2] sm:$0xff] }
 0x1cf   : > { %v3307_v43 = vpop.f32.mrb[10].mxu0  ;;  %985 = vmax.xlane.f32.xlu1 %v4406_v42  ;;  %v4426_v59 = vsel %vm4415_vm12, %v886_v41, -1e+30  ;;  %3316 = vmatprep.subr.bf16.mxu1 %v4493_v33 }
 0x1d0   : > { %v889_v45 = vpop.f32.mrb[11].mxu0  ;;  %975 = vmax.xlane.f32.xlu0 %v4411_v44  ;;  %v4431_v60 = vsel %vm4420_vm13, %v3307_v43, -1e+30  ;;  %v4511_v43 = vld [vmem:[#allocation2 + $0x8] sm:$0xff] }
 0x1d1   : > { %v4451_v6 = vsel %vm4440_vm15, %v889_v45, -1e+30  ;;  %5859 = vst [vmem:[#allocation27_spill] sm:$0xff] %v4511_v43 }
 0x1d2   : > { %3317 = vmatpush3.bf16.msra.mxu1 %v4493_v33 }
 0x1d3   : > { %981 = vmax.xlane.f32.xlu1 %v4426_v59  ;;  %3318 = vmatprep.subr.bf16.mxu1 %v4499_v0 }
 0x1d4   : > { %987 = vmax.xlane.f32.xlu0 %v4431_v60 }
 0x1d5   : > { %v3310_v62 = vpop.f32.mrb[12].mxu0 }
 0x1d6   : > { %v902_v1 = vpop.f32.mrb[13].mxu0  ;;  %v4446_v2 = vsel %vm4435_vm14, %v3310_v62, -1e+30  ;;  %3319 = vmatpush3.bf16.msra.mxu1 %v4499_v0  ;;  %v4519_v62 = vld [vmem:[%s4038_s17 + $0x28] sm:$0xff]   ;;  %v4557_v0 = vld [vmem:[#allocation2 + $0x20] sm:$0xff] }
 0x1d7   : > { %v3311_v5 = vpop.f32.mrb[14].mxu0  ;;  %993 = vmax.xlane.f32.xlu1 %v4446_v2  ;;  %v4466_v17 = vsel %vm4455_vm0, %v902_v1, -1e+30  ;;  %3320 = vmatprep.subr.bf16.mxu1 %v4504_v36  ;;  %5860 = vst [vmem:[#allocation28_spill] sm:$0xff] %v4519_v62  ;;  %v4538_v1 = vld [vmem:[#allocation2 + $0x30] sm:$0xff]  ;;  %5864 = vst [vmem:[#allocation32_spill] sm:$0xff] %v4557_v0 }
 0x1d8   : > { %v905_v7 = vpop.f32.mrb[15].mxu0  ;;  %983 = vmax.xlane.f32.xlu0 %v4451_v6  ;;  %v4471_v20 = vsel %vm4460_vm1, %v3311_v5, -1e+30  ;;  %vm5742_vm1 = vcmask 7168   ;;  %5862 = vst [vmem:[#allocation30_spill] sm:$0xff] %v4538_v1 }
 0x1d9   : > { %v4481_v23 = vsel %vm4475_vm2, %v905_v7, -1e+30 }
 0x1da   : > { %3321 = vmatpush3.bf16.msra.mxu1 %v4504_v36  ;;  %v3514_v36 = vld [vmem:[%s4038_s17 + $0x30] sm:$0xff]  }
 0x1db   : > { %989 = vmax.xlane.f32.xlu1 %v4466_v17  ;;  %3322 = vmatprep.subr.bf16.mxu1 %v4519_v62 }
 0x1dc   : > { %995 = vmax.xlane.f32.xlu0 %v4471_v20 }
 0x1de   : > { %3323 = vmatpush3.bf16.msra.mxu1 %v4519_v62 }
 0x1df   : > { %3324 = vmatprep.subr.bf16.mxu1 %v3514_v36 }
 0x1e0   : > { %991 = vmax.xlane.f32.xlu0 %v4481_v23 }
 0x1e2   : > { %3325 = vmatpush3.bf16.msra.mxu1 %v3514_v36 }
 0x1e3   : > { %3326 = vmatprep.subr.bf16.mxu1 %v3515_v27 }
 0x1e6   : > { %3327 = vmatpush3.bf16.msra.mxu1 %v3515_v27 }
 0x24d   : > { %v966_v41 = vpop.xlane.xlu0 %965 }
 0x24e   : > { %v4514_v45 = vmax.f32 %v4509_v38, %v966_v41 }
 0x24f   : > { %v968_v48 = vpop.xlane.xlu1 %967 }
 0x250   : > { %1583 = vst.msk [vmem:[#allocation2] sm:$0xff] %vm5742_vm1, %v4514_v45  ;;  %v4526_v4 = vmax.f32 %v4511_v43, %v968_v48  ;;  %1063 = vperm.xlu1 %3491, %v4514_v45   ;;  %v4541_v48 = vld [vmem:[#allocation2 + $0x18] sm:$0xff]  ;;  %v4585_v43 = vld [vmem:[#allocation2 + $0x28] sm:$0xff] }
 0x251   : > { %v970_v5 = vpop.xlane.xlu0 %969  ;;  %5869 = vst [vmem:[#allocation37_spill] sm:$0xff] %v4585_v43 }
 0x252   : > { %5861 = vst [vmem:[#allocation29_spill] sm:$0xff] %v4526_v4  ;;  %1584 = vst.msk [vmem:[#allocation2 + $0x8] sm:$0xff] %vm5742_vm1, %v4526_v4  ;;  %v4535_v41 = vmax.f32 %v4516_v51, %v970_v5  ;;  %1068 = vperm.xlu0 %3490, %v4526_v4  }
 0x254   : > { %1585 = vst.msk [vmem:[#allocation2 + $0x10] sm:$0xff] %vm5742_vm1, %v4535_v41  ;;  %v978_v7 = vpop.xlane.xlu1 %977  ;;  %1073 = vperm.xlu1 %3491, %v4535_v41  }
 0x255   : > { %v4550_v5 = vmax.f32 %v4538_v1, %v978_v7  ;;  %v972_v29 = vpop.xlane.xlu0 %971  ;;  %v4563_v7 = vld [vmem:[#allocation2 + $0x38] sm:$0xff]  ;;  %v4579_v1 = vld [vmem:[#allocation2 + $0x50] sm:$0xff] }
 0x256   : > { %v4553_v62 = vmax.f32 %v4541_v48, %v972_v29  ;;  %1615 = vrot.lane.b32.xlu0 %v4206_v18, %s3865_s16  ;;  %5865 = vst [vmem:[#allocation33_spill] sm:$0xff] %v4563_v7  ;;  %5868 = vst [vmem:[#allocation36_spill] sm:$0xff] %v4579_v1 }
 0x257   : > { %5863 = vst [vmem:[#allocation31_spill] sm:$0xff] %v4550_v5  ;;  %1589 = vst.msk [vmem:[#allocation2 + $0x30] sm:$0xff] %vm5742_vm1, %v4550_v5 }
 0x258   : > { %1586 = vst.msk [vmem:[#allocation2 + $0x18] sm:$0xff] %vm5742_vm1, %v4553_v62  ;;  %v974_v4 = vpop.xlane.xlu1 %973  ;;  %1078 = vperm.xlu1 %3491, %v4553_v62  }
 0x259   : > { %v4572_v18 = vmax.f32 %v4557_v0, %v974_v4  ;;  %v980_v36 = vpop.xlane.xlu0 %979  ;;  %v4600_v0 = vld [vmem:[#allocation2 + $0x40] sm:$0xff] }
 0x25a   : > { %v4575_v33 = vmax.f32 %v4563_v7, %v980_v36  ;;  %1619 = vrot.lane.b32.xlu0 %v4218_v22, %s3865_s16  ;;  %5871 = vst [vmem:[#allocation39_spill] sm:$0xff] %v4600_v0  ;;  %v4606_v7 = vld [vmem:[#allocation2 + $0x58] sm:$0xff] }
 0x25b   : > { %5866 = vst [vmem:[#allocation34_spill] sm:$0xff] %v4572_v18  ;;  %1587 = vst.msk [vmem:[#allocation2 + $0x20] sm:$0xff] %vm5742_vm1, %v4572_v18 }
 0x25c   : > { %5867 = vst [vmem:[#allocation35_spill] sm:$0xff] %v4575_v33  ;;  %1590 = vst.msk [vmem:[#allocation2 + $0x38] sm:$0xff] %vm5742_vm1, %v4575_v33  ;;  %v986_v36 = vpop.xlane.xlu1 %985  ;;  %1617 = vrot.lane.b32.xlu1 %v4209_v19, %s3865_s16 }
 0x25d   : > { %v4594_v22 = vmax.f32 %v4579_v1, %v986_v36  ;;  %v976_v27 = vpop.xlane.xlu0 %975  ;;  %5872 = vst [vmem:[#allocation40_spill] sm:$0xff] %v4606_v7  ;;  %v4620_v1 = vld [vmem:[#allocation2 + $0x70] sm:$0xff] }
 0x25e   : > { %v4597_v29 = vmax.f32 %v4585_v43, %v976_v27  ;;  %1093 = vperm.xlu0 %3490, %v4550_v5   ;;  %5874 = vst [vmem:[#allocation42_spill] sm:$0xff] %v4620_v1  ;;  %v4626_v43 = vld [vmem:[#allocation2 + $0x48] sm:$0xff] }
 0x25f   : > { %1593 = vst.msk [vmem:[#allocation2 + $0x50] sm:$0xff] %vm5742_vm1, %v4594_v22  ;;  %5875 = vst [vmem:[#allocation43_spill] sm:$0xff] %v4626_v43 }
 0x260   : > { %5870 = vst [vmem:[#allocation38_spill] sm:$0xff] %v4597_v29  ;;  %1588 = vst.msk [vmem:[#allocation2 + $0x28] sm:$0xff] %vm5742_vm1, %v4597_v29  ;;  %v982_v36 = vpop.xlane.xlu1 %981  ;;  %1098 = vperm.xlu1 %3491, %v4575_v33  }
 0x261   : > { %v4614_v27 = vmax.f32 %v4600_v0, %v982_v36  ;;  %v988_v5 = vpop.xlane.xlu0 %987  ;;  %v4640_v0 = vld [vmem:[#allocation2 + $0x60] sm:$0xff] }
 0x262   : > { %v4617_v4 = vmax.f32 %v4606_v7, %v988_v5  ;;  %1083 = vperm.xlu0 %3490, %v4572_v18   ;;  %v4646_v7 = vld [vmem:[#allocation2 + $0x78] sm:$0xff] }
 0x263   : > { %1591 = vst.msk [vmem:[#allocation2 + $0x40] sm:$0xff] %vm5742_vm1, %v4614_v27 }
 0x264   : > { %5873 = vst [vmem:[#allocation41_spill] sm:$0xff] %v4617_v4  ;;  %1594 = vst.msk [vmem:[#allocation2 + $0x58] sm:$0xff] %vm5742_vm1, %v4617_v4  ;;  %v994_v5 = vpop.xlane.xlu1 %993  ;;  %1088 = vperm.xlu1 %3491, %v4597_v29   ;;  %v5980_v16 = vld [vmem:[#allocation40_spill] sm:$0xff] }
 0x265   : > { %v4634_v18 = vmax.f32 %v4620_v1, %v994_v5  ;;  %v984_v33 = vpop.xlane.xlu0 %983  ;;  %v4664_v5 = vld [vmem:[#allocation2 + $0x68] sm:$0xff] }
 0x266   : > { %v4637_v19 = vmax.f32 %v4626_v43, %v984_v33  ;;  %1118 = vperm.xlu0 %3490, %v4617_v4  }
 0x267   : > { %1597 = vst.msk [vmem:[#allocation2 + $0x70] sm:$0xff] %vm5742_vm1, %v4634_v18 }
 0x268   : > { %1592 = vst.msk [vmem:[#allocation2 + $0x48] sm:$0xff] %vm5742_vm1, %v4637_v19  ;;  %v990_v33 = vpop.xlane.xlu1 %989  ;;  %1113 = vperm.xlu1 %3491, %v4594_v22  }
 0x269   : > { %v4654_v4 = vmax.f32 %v4640_v0, %v990_v33  ;;  %v996_v29 = vpop.xlane.xlu0 %995 }
 0x26a   : > { %v4657_v36 = vmax.f32 %v4646_v7, %v996_v29  ;;  %1108 = vperm.xlu0 %3490, %v4637_v19  }
 0x26b   : > { %1595 = vst.msk [vmem:[#allocation2 + $0x60] sm:$0xff] %vm5742_vm1, %v4654_v4  ;;  %v5981_v31 = vld [vmem:[#allocation41_spill] sm:$0xff] }
 0x26c   : > { %1598 = vst.msk [vmem:[#allocation2 + $0x78] sm:$0xff] %vm5742_vm1, %v4657_v36  ;;  %1103 = vperm.xlu1 %3491, %v4614_v27  }
 0x26d   : > { %v992_v29 = vpop.xlane.xlu0 %991 }
 0x26e   : > { %v4672_v33 = vmax.f32 %v4664_v5, %v992_v29  ;;  %1133 = vperm.xlu0 %3490, %v4634_v18  }
 0x270   : > { %1596 = vst.msk [vmem:[#allocation2 + $0x68] sm:$0xff] %vm5742_vm1, %v4672_v33  ;;  %1621 = vrot.lane.b32.xlu1 %v4232_v26, %s3865_s16  ;;  %vm5876_vm1 = vcmask 523264  }
 0x272   : > { %1123 = vperm.xlu0 %3490, %v4654_v4  }
 0x274   : > { %1128 = vperm.xlu1 %3491, %v4672_v33  }
 0x276   : > { %1623 = vrot.lane.b32.xlu0 %v4245_v34, %s3865_s16 }
 0x278   : > { %1138 = vperm.xlu1 %3491, %v4657_v36  }
 0x27a   : > { %1627 = vrot.lane.b32.xlu0 %v4267_v46, %s3865_s16 }
 0x27c   : > { %1625 = vrot.lane.b32.xlu1 %v4256_v40, %s3865_s16 }
 0x27e   : > { %1599 = vrot.lane.b32.xlu0 %v4223_v24, %s3865_s16 }
 0x280   : > { %1629 = vrot.lane.b32.xlu1 %v4276_v50, %s3865_s16 }
 0x282   : > { %1603 = vrot.lane.b32.xlu0 %v4286_v53, %s3865_s16 }
 0x284   : > { %1601 = vrot.lane.b32.xlu1 %v4283_v52, %s3865_s16 }
 0x286   : > { %1607 = vrot.lane.b32.xlu0 %v4296_v55, %s3865_s16 }
 0x288   : > { %1605 = vrot.lane.b32.xlu1 %v4293_v54, %s3865_s16 }
 0x28a   : > { %1611 = vrot.lane.b32.xlu0 %v4306_v57, %s3865_s16 }
 0x28c   : > { %1609 = vrot.lane.b32.xlu1 %v4303_v56, %s3865_s16 }
 0x290   : > { %1613 = vrot.lane.b32.xlu1 %v4313_v58, %s3865_s16 }
 0x2cf   : > { %v1064_v24 = vpop.permute.xlu1 %1063 }
 0x2d0   : > { %v1141_v26 = vsub.f32 %v4331_v8, %v1064_v24 }
 0x2d1   : > { %v1069_v34 = vpop.permute.xlu0 %1068 }
 0x2d2   : > { %v1157_v40 = vmul.f32 1.442695, %v1141_v26  ;;  %v1142_v46 = vsub.f32 %v4346_v13, %v1069_v34 }
 0x2d3   : > { %v1074_v50 = vpop.permute.xlu1 %1073 }
 0x2d4   : > { %3516 = vpow2.f32 %v1157_v40  ;;  %v1159_v52 = vmul.f32 1.442695, %v1142_v46  ;;  %v1143_v53 = vsub.f32 %v4351_v14, %v1074_v50 }
 0x2d5   : > { %v1616_v54 = vpop.permute.xlu0 %1615 }
 0x2d6   : > { %3518 = vpow2.f32 %v1159_v52  ;;  %v1161_v55 = vmul.f32 1.442695, %v1143_v53  ;;  %3416 = vmatprep.subr.msk.bf16.mxu1 %vm5876_vm1, %v1616_v54  ;;  %vm5743_vm1 = vmpackc.low %vm4339_vm5, %vm4325_vm3 }
 0x2d7   : > { %v1079_v56 = vpop.permute.xlu1 %1078 }
 0x2d8   : > { %3520 = vpow2.f32 %v1161_v55  ;;  %v1144_v57 = vsub.f32 %v4371_v28, %v1079_v56 }
 0x2d9   : > { %v4713_v58 = vpop.permute.xlu0 %1619 }
 0x2da   : > { %v1163_v8 = vmul.f32 1.442695, %v1144_v57 }
 0x2db   : > { %v4715_v29 = vpop.permute.xlu1 %1617 }
 0x2dc   : > { %3522 = vpow2.f32 %v1163_v8 }
 0x2dd   : > { %v1094_v13 = vpop.permute.xlu0 %1093 }
 0x2de   : > { %v3517_v24 = vpop.eup %3516  ;;  %v1147_v26 = vsub.f32 %v4366_v25, %v1094_v13 }
 0x2df   : > { %v1099_v14 = vpop.permute.xlu1 %1098  ;;  %v1189_v34 = vsel %vm4325_vm3, %v3517_v24, 0.0  ;;  %vm5877_vm3 = vcmask 523264  }
 0x2e0   : > { %v3519_v40 = vpop.eup %3518  ;;  %v1169_v46 = vmul.f32 1.442695, %v1147_v26  ;;  %v1148_v50 = vsub.f32 %v4391_v35, %v1099_v14  ;;  %1221 = vadd.xlane.f32.xlu0 %v1189_v34  ;;  %vm5878_vm14 = vmmov %vm5877_vm3 }
 0x2e1   : > { %v1084_v28 = vpop.permute.xlu0 %1083  ;;  %v3079_v52 = vpack.c.bf16 %v3519_v40, %v3517_v24 }
 0x2e2   : > { %v3521_v53 = vpop.eup %3520  ;;  %3524 = vpow2.f32 %v1169_v46  ;;  %v1171_v55 = vmul.f32 1.442695, %v1148_v50  ;;  %v1145_v56 = vsub.f32 %v4386_v32, %v1084_v28  ;;  %v1656_v50 = vsel %vm5877_vm3, %v1616_v54, 0 }
 0x2e3   : > { %v1089_v25 = vpop.permute.xlu1 %1088  ;;  %3328 = vmatprep.mubr.msk.bf16.mxu1 %vm5743_vm1, %v3079_v52  ;;  %v1191_v35 = vsel %vm4334_vm4, %v3521_v53, 0.0  ;;  %vm5750_vm1 = vmpackc.low %vm4354_vm6, %vm4334_vm4 }
 0x2e4   : > { %3526 = vpow2.f32 %v1171_v55  ;;  %v1165_v57 = vmul.f32 1.442695, %v1145_v56  ;;  %v1146_v8 = vsub.f32 %v4411_v44, %v1089_v25  ;;  %1225 = vadd.xlane.f32.xlu1 %v1191_v35 }
 0x2e5   : > { %v1119_v32 = vpop.permute.xlu0 %1118 }
 0x2e6   : > { %v3523_v13 = vpop.eup %3522  ;;  %3528 = vpow2.f32 %v1165_v57  ;;  %v1167_v24 = vmul.f32 1.442695, %v1146_v8  ;;  %v1152_v44 = vsub.f32 %v4431_v60, %v1119_v32  ;;  %v1190_v60 = vsel %vm4339_vm5, %v3519_v40, 0.0 }
 0x2e7   : > { %v1114_v26 = vpop.permute.xlu1 %1113  ;;  %v1192_v14 = vsel %vm4354_vm6, %v3523_v13, 0.0  ;;  %v3082_v34 = vpack.c.bf16 %v3523_v13, %v3521_v53 }
 0x2e8   : > { %3530 = vpow2.f32 %v1167_v24  ;;  %v1151_v46 = vsub.f32 %v4406_v42, %v1114_v26  ;;  %1227 = vadd.xlane.f32.xlu0 %v1192_v14  ;;  %v1179_v35 = vmul.f32 1.442695, %v1152_v44 }
 0x2e9   : > { %3329 = vmatmul.mubr.msk.bf16.vlgmr.msra.gmra.mrb[0].mxu1 %vm5750_vm1, %v3082_v34  ;;  %v1109_v28 = vpop.permute.xlu0 %1108  ;;  %vm5882_vm1 = vcmask 523264  }
 0x2ea   : > { %v1177_v52 = vmul.f32 1.442695, %v1151_v46  ;;  %3345 = vmatpush3.bf16.xpose.msra.mxu1 %v1656_v50  ;;  %v1150_v42 = vsub.f32 %v4451_v6, %v1109_v28 }
 0x2eb   : > { %3417 = vmatprep.subr.msk.bf16.mxu1 %vm5878_vm14, %v4715_v29  ;;  %v1104_v53 = vpop.permute.xlu1 %1103  ;;  %vm5879_vm14 = vmmov %vm5877_vm3 }
 0x2ec   : > { %v3525_v55 = vpop.eup %3524  ;;  %3532 = vpow2.f32 %v1177_v52  ;;  %v1175_v56 = vmul.f32 1.442695, %v1150_v42  ;;  %v1149_v25 = vsub.f32 %v4426_v59, %v1104_v53  ;;  %1223 = vadd.xlane.f32.xlu0 %v1190_v60  ;;  %v1659_v59 = vsel %vm5877_vm3, %v4715_v29, 0  ;;  %vm5748_vm3 = vmpackc.low %vm4400_vm11, %vm4375_vm8 }
 0x2ed   : > { %v1134_v54 = vpop.permute.xlu0 %1133  ;;  %v1195_v57 = vsel %vm4360_vm7, %v3525_v55, 0.0 }
 0x2ee   : > { %v3527_v8 = vpop.eup %3526  ;;  %3534 = vpow2.f32 %v1175_v56  ;;  %v1173_v6 = vmul.f32 1.442695, %v1149_v25  ;;  %1233 = vadd.xlane.f32.xlu1 %v1195_v57  ;;  %v1155_v46 = vsub.f32 %v4446_v2, %v1134_v54 }
 0x2ef   : > { %v1622_v32 = vpop.permute.xlu1 %1621  ;;  %v1196_v13 = vsel %vm4380_vm9, %v3527_v8, 0.0 }
 0x2f0   : > { %v3529_v40 = vpop.eup %3528  ;;  %3536 = vpow2.f32 %v1173_v6  ;;  %1235 = vadd.xlane.f32.xlu0 %v1196_v13  ;;  %v1185_v42 = vmul.f32 1.442695, %v1155_v46 }
 0x2f1   : > { %3538 = vpow2.f32 %v1179_v35  ;;  %v1124_v24 = vpop.permute.xlu0 %1123  ;;  %v1193_v26 = vsel %vm4375_vm8, %v3529_v40, 0.0 }
 0x2f2   : > { %v3531_v14 = vpop.eup %3530  ;;  %3347 = vmatpush3.bf16.xpose.msra.mxu1 %v1659_v59  ;;  %v1153_v34 = vsub.f32 %v4466_v17, %v1124_v24  ;;  %1229 = vadd.xlane.f32.xlu1 %v1193_v26  ;;  %v3088_v17 = vpack.c.bf16 %v3527_v8, %v3525_v55  ;;  %v1665_v59 = vsel %vm5882_vm1, %v1622_v32, 0 }
 0x2f3   : > { %3418 = vmatprep.subr.msk.bf16.mxu1 %vm5879_vm14, %v4713_v58  ;;  %v1129_v44 = vpop.permute.xlu1 %1128  ;;  %v1194_v50 = vsel %vm4400_vm11, %v3531_v14, 0.0  ;;  %v3085_v28 = vpack.c.bf16 %v3531_v14, %v3529_v40  ;;  %vm5749_vm14 = vmpackc.low %vm4380_vm9, %vm4360_vm7 }
 0x2f4   : > { %v1181_v29 = vmul.f32 1.442695, %v1153_v34  ;;  %v1154_v52 = vsub.f32 %v4481_v23, %v1129_v44  ;;  %1231 = vadd.xlane.f32.xlu0 %v1194_v50 }
 0x2f5   : > { %3332 = vmatprep.mubr.msk.bf16.mxu1 %vm5748_vm3, %v3085_v28  ;;  %vm5880_vm3 = vcmask 523264   ;;  %v1624_v13 = vpop.permute.xlu0 %1623 }
 0x2f6   : > { %v3533_v2 = vpop.eup %3532  ;;  %v1183_v23 = vmul.f32 1.442695, %v1154_v52  ;;  %3333 = vmatmul.mubr.msk.bf16.gmra.mrb[4].mxu1 %vm5749_vm14, %v3088_v17  ;;  %3540 = vpow2.f32 %v1181_v29  ;;  %v1662_v25 = vsel %vm5880_vm3, %v4713_v58, 0  ;;  %vm5881_vm14 = vmmov %vm5880_vm3  ;;  %v1668_v44 = vsel %vm5882_vm1, %v1624_v13, 0 }
 0x2f7   : > { %v1139_v53 = vpop.permute.xlu1 %1138  ;;  %v1199_v60 = vsel %vm4395_vm10, %v3533_v2, 0.0  ;;  %vm5751_vm3 = vmpackc.low %vm4440_vm15, %vm4415_vm12 }
 0x2f8   : > { %v3535_v55 = vpop.eup %3534  ;;  %3542 = vpow2.f32 %v1183_v23  ;;  %v1156_v56 = vsub.f32 %v4471_v20, %v1139_v53  ;;  %1241 = vadd.xlane.f32.xlu1 %v1199_v60 }
 0x2f9   : > { %v1198_v35 = vsel %vm4440_vm15, %v3535_v55, 0.0  ;;  %3544 = vpow2.f32 %v1185_v42  ;;  %v1628_v14 = vpop.permute.xlu0 %1627  ;;  %vm5757_vm15 = vmpackc.low %vm4475_vm2, %vm4455_vm0 }
 0x2fa   : > { %v3537_v54 = vpop.eup %3536  ;;  %v1187_v57 = vmul.f32 1.442695, %v1156_v56  ;;  %3349 = vmatpush3.bf16.xpose.msra.mxu1 %v1662_v25  ;;  %1239 = vadd.xlane.f32.xlu0 %v1198_v35  ;;  %vm5887_vm2 = vmmov %vm5882_vm1  ;;  %v5899_v35 = vsub.f32 %v4509_v38, %v4514_v45  ;;  %v5906_v38 = vld [vmem:[#allocation31_spill] sm:$0xff] }
 0x2fb   : > { %v4794_v8 = vpop.eup %3538  ;;  %3419 = vmatprep.subr.msk.bf16.mxu1 %vm5881_vm14, %v1622_v32  ;;  %v1197_v6 = vsel %vm4415_vm12, %v3537_v54, 0.0  ;;  %v3091_v20 = vpack.c.bf16 %v3535_v55, %v3537_v54  ;;  %vm5754_vm14 = vmpackc.low %vm4420_vm13, %vm4395_vm10  ;;  %v1626_v28 = vpop.permute.xlu1 %1625 }
 0x2fc   : > { %3546 = vpow2.f32 %v1187_v57  ;;  %1237 = vadd.xlane.f32.xlu1 %v1197_v6  ;;  %v3094_v58 = vpack.c.bf16 %v4794_v8, %v3533_v2  ;;  %vm5888_vm0 = vmmov %vm5882_vm1  ;;  %v1029_v54 = vmul.f32 1.442695, %v5899_v35  ;;  %v5900_v57 = vsub.f32 %v4516_v51, %v4535_v41  ;;  %v5908_v51 = vld [vmem:[#allocation33_spill] sm:$0xff]  ;;  %v5909_v41 = vld [vmem:[#allocation35_spill] sm:$0xff] }
 0x2fd   : > { %3336 = vmatprep.mubr.msk.bf16.mxu1 %vm5751_vm3, %v3091_v20  ;;  %vm5883_vm3 = vmmov %vm5882_vm1  ;;  %v1600_v50 = vpop.permute.xlu0 %1599  ;;  %v1671_v29 = vsel %vm5888_vm0, %v1626_v28, 0  ;;  %v5901_v20 = vsub.f32 %v4541_v48, %v4553_v62 }
 0x2fe   : > { %3337 = vmatmul.mubr.msk.bf16.gmra.mrb[8].mxu1 %vm5754_vm14, %v3094_v58  ;;  %vm5885_vm14 = vnez %v5851_v12  ;;  %vm5890_vm13 = vmmov %vm5888_vm0  ;;  %3548 = vpow2.f32 %v1029_v54  ;;  %v1033_v6 = vmul.f32 1.442695, %v5900_v57  ;;  %v1298_v12 = vld [vmem:[#allocation4 + $0x60] sm:$0xff] }
 0x2ff   : > { %v1674_v52 = vsel %vm5890_vm13, %v1628_v14, 0  ;;  %v1630_v17 = vpop.permute.xlu1 %1629  ;;  %vm5891_vm10 = vmmov %vm5888_vm0  ;;  %v1035_v58 = vmul.f32 1.442695, %v5901_v20 }
 0x300   : > { %v4818_v40 = vpop.eup %3540  ;;  %vm5892_vm11 = vmmov %vm5888_vm0  ;;  %3550 = vpow2.f32 %v1033_v6 }
 0x301   : > { %v1677_v2 = vsel %vm5892_vm11, %v1630_v17, 0  ;;  %v1604_v42 = vpop.permute.xlu0 %1603  ;;  %vm5896_vm13 = vmmov %vm5888_vm0  ;;  %3552 = vpow2.f32 %v1035_v58  ;;  %v952_v58 = vld [vmem:[#allocation3 + $0x18] sm:$0xff] }
 0x302   : > { %v4821_v24 = vpop.eup %3542  ;;  %3351 = vmatpush3.bf16.xpose.msra.mxu1 %v1665_v59  ;;  %vm5898_vm11 = vmmov %vm5888_vm0  ;;  %v5903_v59 = vld [vmem:[#allocation29_spill] sm:$0xff] }
 0x303   : > { %v3097_v26 = vpack.c.bf16 %v4821_v24, %v4818_v40  ;;  %3420 = vmatprep.subr.msk.bf16.mxu1 %vm5883_vm3, %v1624_v13  ;;  %v4830_v34 = vpop.eup %3544  ;;  %vm5884_vm3 = vnez %v5844_v61  ;;  %v1602_v23 = vpop.permute.xlu1 %1601  ;;  %v5902_v13 = vld [vmem:[#allocation27_spill] sm:$0xff] }
 0x304   : > { %vm5768_vm12 = vmpackc.low %vm5885_vm14, %vm5884_vm3 }
 0x305   : > { %3340 = vmatprep.mubr.msk.bf16.mxu1 %vm5757_vm15, %v3097_v26  ;;  %vm5886_vm15 = vmmov %vm5882_vm1  ;;  %v1608_v60 = vpop.permute.xlu0 %1607  ;;  %v5904_v26 = vsub.f32 %v5902_v13, %v5903_v59  ;;  %v5918_v59 = vld [vmem:[#allocation36_spill] sm:$0xff] }
 0x306   : > { %v4837_v32 = vpop.eup %3546  ;;  %vm5889_vm1 = vmmov %vm5888_vm0 }
 0x307   : > { %v3100_v46 = vpack.c.bf16 %v4837_v32, %v4830_v34  ;;  %v1606_v53 = vpop.permute.xlu1 %1605 }
 0x309   : > { %3341 = vmatmul.mubr.msk.bf16.gmra.mrb[12].mxu1 %vm5768_vm12, %v3100_v46  ;;  %vm5893_vm12 = vmmov %vm5888_vm0  ;;  %v1612_v56 = vpop.permute.xlu0 %1611  ;;  %v4877_v46 = vpop.eup %3548 }
 0x30a   : > { %3353 = vmatpush3.bf16.xpose.msra.mxu1 %v1668_v44  ;;  %3360 = vmatprep.mubr.msk.bf16.mxu1 %vm5886_vm15, %v1600_v50  ;;  %vm5894_vm15 = vmmov %vm5888_vm0  ;;  %v5905_v44 = vld [vmem:[#allocation30_spill] sm:$0xff]  ;;  %v4886_v48 = vpop.eup %3550 }
 0x30b   : > { %3421 = vmatprep.subr.msk.bf16.mxu1 %vm5887_vm2, %v1626_v28  ;;  %vm5895_vm2 = vmmov %vm5888_vm0  ;;  %v1610_v55 = vpop.permute.xlu1 %1609  ;;  %v5907_v45 = vsub.f32 %v5905_v44, %v5906_v38  ;;  %v949_v28 = vld [vmem:[#allocation3] sm:$0xff]  ;;  %v4896_v6 = vpop.eup %3552 }
 0x30c   : > { %v1205_v62 = vmul.f32 %v4877_v46, %v949_v28  ;;  %v1208_v44 = vmul.f32 %v4896_v6, %v952_v58  ;;  %v954_v58 = vld [vmem:[#allocation3 + $0x28] sm:$0xff] }
 0x30d   : > { %v1041_v50 = vmul.f32 1.442695, %v5907_v45  ;;  %v5921_v45 = vmov %v4626_v43 }
 0x30f   : > { %v1614_v25 = vpop.permute.xlu1 %1613 }
 0x312   : > { %3355 = vmatpush3.bf16.xpose.msra.mxu1 %v1671_v29  ;;  %v5910_v29 = vsub.f32 %v5908_v51, %v5909_v41  ;;  %v950_v41 = vld [vmem:[#allocation3 + $0x8] sm:$0xff] }
 0x313   : > { %3422 = vmatprep.subr.msk.bf16.mxu1 %vm5889_vm1, %v1628_v14  ;;  %v1031_v14 = vmul.f32 1.442695, %v5904_v26  ;;  %v5919_v26 = vsub.f32 %v5918_v59, %v4594_v22 }
 0x315   : > { %3554 = vpow2.f32 %v1031_v14  ;;  %v1049_v14 = vmul.f32 1.442695, %v5919_v26 }
 0x316   : > { %3556 = vpow2.f32 %v1041_v50  ;;  %v5922_v50 = vsub.f32 %v5921_v45, %v4637_v19 }
 0x318   : > { %v1047_v28 = vmul.f32 1.442695, %v5922_v50 }
 0x31a   : > { %3357 = vmatpush3.bf16.xpose.msra.mxu1 %v1674_v52  ;;  %v1043_v52 = vmul.f32 1.442695, %v5910_v29 }
 0x31b   : > { %3423 = vmatprep.subr.msk.bf16.mxu1 %vm5891_vm10, %v1630_v17  ;;  %vm5897_vm10 = vmmov %vm5888_vm0  ;;  %v5911_v17 = vld [vmem:[#allocation32_spill] sm:$0xff] }
 0x31c   : > { %3558 = vpow2.f32 %v1043_v52 }
 0x31f   : > { %v4903_v38 = vpop.eup %3554 }
 0x320   : > { %v4908_v52 = vpop.eup %3556 }
 0x322   : > { %3359 = vmatpush3.bf16.xpose.msra.mxu1 %v1677_v2  ;;  %v5912_v2 = vld [vmem:[#allocation34_spill] sm:$0xff] }
 0x329   : > { %3361 = vmatmul.mubr.msk.bf16.vlgmr.msra.gmra.mrb[16].mxu1 %vm5893_vm12, %v1602_v23  ;;  %v5913_v23 = vsub.f32 %v5911_v17, %v5912_v2  ;;  %vm5917_vm12 = vcmask 7168   ;;  %v955_v2 = vld [vmem:[#allocation3 + $0x30] sm:$0xff] }
 0x32a   : > { %3364 = vmatprep.mubr.msk.bf16.mxu1 %vm5894_vm15, %v1604_v42  ;;  %vm5920_vm1 = vmmov %vm5917_vm12 }
 0x32b   : > { %v1037_v42 = vmul.f32 1.442695, %v5913_v23  ;;  %vm5925_vm15 = vmmov %vm5920_vm1  ;;  %v1206_v23 = vmul.f32 %v4903_v38, %v950_v41 }
 0x32d   : > { %3560 = vpow2.f32 %v1037_v42  ;;  %v4915_v42 = vpop.eup %3558 }
 0x331   : > { %3365 = vmatmul.mubr.msk.bf16.gmra.mrb[20].mxu1 %vm5895_vm2, %v1606_v53  ;;  %vm5926_vm2 = vmmov %vm5920_vm1 }
 0x332   : > { %3368 = vmatprep.mubr.msk.bf16.mxu1 %vm5888_vm0, %v1608_v60  ;;  %v951_v60 = vld [vmem:[#allocation3 + $0x10] sm:$0xff]  ;;  %vm5927_vm0 = vmmov %vm5920_vm1 }
 0x333   : > { %v1207_v57 = vmul.f32 %v4886_v48, %v951_v60 }
 0x339   : > { %3369 = vmatmul.mubr.msk.bf16.gmra.mrb[24].mxu1 %vm5896_vm13, %v1610_v55  ;;  %vm5928_vm13 = vmmov %vm5927_vm0 }
 0x33a   : > { %3372 = vmatprep.mubr.msk.bf16.mxu1 %vm5897_vm10, %v1612_v56  ;;  %v5914_v56 = vld [vmem:[#allocation37_spill] sm:$0xff]  ;;  %vm5929_vm10 = vmmov %vm5927_vm0 }
 0x341   : > { %3373 = vmatmul.mubr.msk.bf16.gmra.mrb[28].mxu1 %vm5898_vm11, %v1614_v25  ;;  %v5915_v25 = vld [vmem:[#allocation38_spill] sm:$0xff]  ;;  %vm5930_vm11 = vmmov %vm5927_vm0 }
 0x342   : > { %v5916_v35 = vsub.f32 %v5914_v56, %v5915_v25  ;;  %v4918_v56 = vpop.eup %3560 }
 0x344   : > { %v1039_v54 = vmul.f32 1.442695, %v5916_v35  ;;  %v953_v35 = vld [vmem:[#allocation3 + $0x20] sm:$0xff] }
 0x345   : > { %v1209_v59 = vmul.f32 %v4918_v56, %v953_v35 }
 0x346   : > { %3562 = vpow2.f32 %v1039_v54 }
 0x347   : > { %3564 = vpow2.f32 %v1049_v14 }
 0x348   : > { %3566 = vpow2.f32 %v1047_v28  ;;  %v959_v28 = vld [vmem:[#allocation3 + $0x50] sm:$0xff] }
 0x36d   : > { %v1222_v53 = vpop.xlane.xlu0 %1221 }
 0x36e   : > { %v1253_v55 = vadd.f32 %v1222_v53, %v1205_v62  ;;  %v5923_v62 = vld [vmem:[#allocation39_spill] sm:$0xff] }
 0x36f   : > { %v5924_v22 = vsub.f32 %v5923_v62, %v4614_v27  ;;  %v956_v53 = vld [vmem:[#allocation3 + $0x38] sm:$0xff] }
 0x370   : > { %1270 = vst.msk [vmem:[#allocation3] sm:$0xff] %vm5917_vm12, %v1253_v55  ;;  %v1211_v55 = vmul.f32 %v4908_v52, %v955_v2  ;;  %v1212_v54 = vmul.f32 %v4915_v42, %v956_v53  ;;  %v957_v2 = vld [vmem:[#allocation3 + $0x40] sm:$0xff]  ;;  %vm5931_vm12 = vmmov %vm5927_vm0 }
 0x371   : > { %v1226_v20 = vpop.xlane.xlu1 %1225  ;;  %v1045_v17 = vmul.f32 1.442695, %v5924_v22 }
 0x372   : > { %v1255_v13 = vadd.f32 %v1226_v20, %v1207_v57  ;;  %v4922_v57 = vpop.eup %3562 }
 0x373   : > { %3568 = vpow2.f32 %v1045_v17  ;;  %v4928_v45 = vpop.eup %3564 }
 0x374   : > { %1272 = vst.msk [vmem:[#allocation3 + $0x10] sm:$0xff] %vm5920_vm1, %v1255_v13  ;;  %v4931_v41 = vpop.eup %3566  ;;  %v1215_v62 = vmul.f32 %v4928_v45, %v959_v28  ;;  %vm5932_vm1 = vmmov %vm5927_vm0 }
 0x375   : > { %v1228_v51 = vpop.xlane.xlu0 %1227 }
 0x376   : > { %v1256_v29 = vadd.f32 %v1228_v51, %v1208_v44  ;;  %v1210_v44 = vmul.f32 %v4922_v57, %v954_v58 }
 0x378   : > { %1273 = vst.msk [vmem:[#allocation3 + $0x18] sm:$0xff] %vm5925_vm15, %v1256_v29  ;;  %v958_v29 = vld [vmem:[#allocation3 + $0x48] sm:$0xff]  ;;  %vm5933_vm15 = vmmov %vm5927_vm0 }
 0x379   : > { %v1224_v19 = vpop.xlane.xlu0 %1223 }
 0x37a   : > { %v1254_v60 = vadd.f32 %v1224_v19, %v1206_v23  ;;  %v1214_v19 = vmul.f32 %v4931_v41, %v958_v29 }
 0x37b   : > { %v1234_v25 = vpop.xlane.xlu1 %1233 }
 0x37c   : > { %1271 = vst.msk [vmem:[#allocation3 + $0x8] sm:$0xff] %vm5926_vm2, %v1254_v60  ;;  %v1259_v27 = vadd.f32 %v1234_v25, %v1211_v55  ;;  %vm5950_vm2 = vnez %v5813_v3 }
 0x37d   : > { %v1236_v20 = vpop.xlane.xlu0 %1235  ;;  %v4935_v22 = vpop.eup %3568 }
 0x37e   : > { %1276 = vst.msk [vmem:[#allocation3 + $0x30] sm:$0xff] %vm5927_vm0, %v1259_v27  ;;  %v1260_v13 = vadd.f32 %v1236_v20, %v1212_v54  ;;  %v1213_v55 = vmul.f32 %v4935_v22, %v957_v2  ;;  %vm5951_vm0 = vnez %v5835_v39  ;;  %v5196_v39 = vld [vmem:[#allocation2 + $0xe0] sm:$0xff] }
 0x37f   : > { %v1230_v26 = vpop.xlane.xlu1 %1229 }
 0x380   : > { %1277 = vst.msk [vmem:[#allocation3 + $0x38] sm:$0xff] %vm5928_vm13, %v1260_v13  ;;  %v1257_v14 = vadd.f32 %v1230_v26, %v1209_v59  ;;  %vm5952_vm13 = vnez %v5832_v37 }
 0x381   : > { %v1232_v50 = vpop.xlane.xlu0 %1231 }
 0x382   : > { %1274 = vst.msk [vmem:[#allocation3 + $0x20] sm:$0xff] %vm5929_vm10, %v1257_v14  ;;  %v1258_v51 = vadd.f32 %v1232_v50, %v1210_v44  ;;  %vm5953_vm10 = vnez %v5841_v49  ;;  %v5115_v49 = vld [vmem:[#allocation2 + $0xa0] sm:$0xff] }
 0x384   : > { %1275 = vst.msk [vmem:[#allocation3 + $0x28] sm:$0xff] %vm5930_vm11, %v1258_v51  ;;  %vm5954_vm11 = vnez %v5838_v47 }
 0x385   : > { %v1242_v17 = vpop.xlane.xlu1 %1241 }
 0x386   : > { %v1263_v23 = vadd.f32 %v1242_v17, %v1215_v62 }
 0x387   : > { %v1240_v53 = vpop.xlane.xlu0 %1239 }
 0x388   : > { %1280 = vst.msk [vmem:[#allocation3 + $0x50] sm:$0xff] %vm5931_vm12, %v1263_v23  ;;  %v1262_v60 = vadd.f32 %v1240_v53, %v1214_v19  ;;  %vm5955_vm12 = vnez %v5846_v63  ;;  %v5126_v63 = vld [vmem:[#allocation2 + $0xa8] sm:$0xff] }
 0x389   : > { %v1238_v25 = vpop.xlane.xlu1 %1237  ;;  %5979 = vst [vmem:[#allocation52_spill] sm:$0xff] %v5126_v63 }
 0x38a   : > { %1279 = vst.msk [vmem:[#allocation3 + $0x48] sm:$0xff] %vm5932_vm1, %v1262_v60  ;;  %v1261_v35 = vadd.f32 %v1238_v25, %v1213_v55  ;;  %vm5957_vm1 = vnez %v5849_v11 }
 0x38c   : > { %1278 = vst.msk [vmem:[#allocation3 + $0x40] sm:$0xff] %vm5933_vm15, %v1261_v35  ;;  %vm5965_vm15 = vnez %v5853_v21 }
 0x3bc   : > { %v4942_v27 = vpop.f32.mrb[0].mxu1 }
 0x3bd   : > { %5934 = vst [vmem:[#allocation27_spill] sm:$0xff] %v4942_v27  ;;  %v4944_v54 = vpop.f32.mrb[1].mxu1 }
 0x3be   : > { %5935 = vst [vmem:[#allocation29_spill] sm:$0xff] %v4944_v54  ;;  %v4946_v20 = vpop.f32.mrb[2].mxu1 }
 0x3bf   : > { %5936 = vst [vmem:[#allocation30_spill] sm:$0xff] %v4946_v20  ;;  %v4948_v58 = vpop.f32.mrb[3].mxu1 }
 0x3c0   : > { %5937 = vst [vmem:[#allocation31_spill] sm:$0xff] %v4948_v58 }
 0x3c9   : > { %v4950_v13 = vpop.f32.mrb[4].mxu1 }
 0x3ca   : > { %5938 = vst [vmem:[#allocation33_spill] sm:$0xff] %v4950_v13  ;;  %v4952_v59 = vpop.f32.mrb[5].mxu1 }
 0x3cb   : > { %5939 = vst [vmem:[#allocation35_spill] sm:$0xff] %v4952_v59  ;;  %v4954_v26 = vpop.f32.mrb[6].mxu1  ;;  %v5079_v59 = vld [vmem:[#allocation2 + $0x88] sm:$0xff] }
 0x3cc   : > { %5940 = vst [vmem:[#allocation32_spill] sm:$0xff] %v4954_v26  ;;  %v4956_v14 = vpop.f32.mrb[7].mxu1 }
 0x3cd   : > { %5941 = vst [vmem:[#allocation34_spill] sm:$0xff] %v4956_v14 }
 0x3d1   : > { %v4958_v44 = vpop.f32.mrb[8].mxu1 }
 0x3d2   : > { %5942 = vst [vmem:[#allocation37_spill] sm:$0xff] %v4958_v44  ;;  %v4960_v50 = vpop.f32.mrb[9].mxu1  ;;  %v5961_v44 = vld [vmem:[#allocation23_spill] sm:$0xff] }
 0x3d3   : > { %5943 = vst [vmem:[#allocation38_spill] sm:$0xff] %v4960_v50  ;;  %v4962_v28 = vpop.f32.mrb[10].mxu1  ;;  %v5962_v50 = vld [vmem:[#allocation24_spill] sm:$0xff] }
 0x3d4   : > { %5944 = vst [vmem:[#allocation36_spill] sm:$0xff] %v4962_v28  ;;  %v4964_v51 = vpop.f32.mrb[11].mxu1 }
 0x3d5   : > { %5945 = vst [vmem:[#allocation43_spill] sm:$0xff] %v4964_v51 }
 0x3dc   : > { %v4966_v29 = vpop.f32.mrb[12].mxu1 }
 0x3dd   : > { %5946 = vst [vmem:[#allocation39_spill] sm:$0xff] %v4966_v29  ;;  %v4968_v62 = vpop.f32.mrb[13].mxu1 }
 0x3de   : > { %5947 = vst [vmem:[#allocation44_spill] sm:$0xff] %v4968_v62  ;;  %v4970_v17 = vpop.f32.mrb[14].mxu1  ;;  %v5959_v62 = vld [vmem:[#allocation22_spill] sm:$0xff] }
 0x3df   : > { %5948 = vst [vmem:[#allocation45_spill] sm:$0xff] %v4970_v17  ;;  %v4972_v2 = vpop.f32.mrb[15].mxu1 }
 0x3e0   : > { %5949 = vst [vmem:[#allocation46_spill] sm:$0xff] %v4972_v2 }
 0x3fc   : > { %v3362_v23 = vpop.f32.mrb[16].mxu1 }
 0x3fd   : > { %v1713_v19 = vpop.f32.mrb[17].mxu1  ;;  %v4976_v53 = vsel %vm4334_vm4, %v3362_v23, -1e+30 }
 0x3fe   : > { %1830 = vmax.xlane.f32.xlu0 %v4976_v53  ;;  %v3363_v60 = vpop.f32.mrb[18].mxu1  ;;  %v4981_v55 = vsel %vm5950_vm2, %v1713_v19, -1e+30 }
 0x3ff   : > { %1826 = vmax.xlane.f32.xlu1 %v4981_v55  ;;  %v1716_v25 = vpop.f32.mrb[19].mxu1  ;;  %v4991_v23 = vsel %vm4354_vm6, %v3363_v60, -1e+30 }
 0x400   : > { %v4986_v35 = vsel %vm4339_vm5, %v1716_v25, -1e+30 }
 0x402   : > { %1828 = vmax.xlane.f32.xlu0 %v4986_v35 }
 0x403   : > { %1832 = vmax.xlane.f32.xlu1 %v4991_v23 }
 0x404   : > { %v3366_v43 = vpop.f32.mrb[20].mxu1 }
 0x405   : > { %v1729_v1 = vpop.f32.mrb[21].mxu1  ;;  %v4996_v19 = vsel %vm4360_vm7, %v3366_v43, -1e+30 }
 0x406   : > { %1838 = vmax.xlane.f32.xlu0 %v4996_v19  ;;  %v3367_v17 = vpop.f32.mrb[22].mxu1  ;;  %v5006_v60 = vsel %vm4375_vm8, %v1729_v1, -1e+30 }
 0x407   : > { %v1732_v2 = vpop.f32.mrb[23].mxu1  ;;  %v5001_v25 = vsel %vm4380_vm9, %v3367_v17, -1e+30 }
 0x408   : > { %1840 = vmax.xlane.f32.xlu1 %v5001_v25  ;;  %v5011_v43 = vsel %vm5951_vm0, %v1732_v2, -1e+30 }
 0x40a   : > { %1834 = vmax.xlane.f32.xlu0 %v5006_v60 }
 0x40c   : > { %1836 = vmax.xlane.f32.xlu1 %v5011_v43  ;;  %v3370_v28 = vpop.f32.mrb[24].mxu1 }
 0x40d   : > { %v1745_v51 = vpop.f32.mrb[25].mxu1  ;;  %v5016_v17 = vsel %vm5952_vm13, %v3370_v28, -1e+30  ;;  %vm5971_vm13 = vcmask 7168  }
 0x40e   : > { %1846 = vmax.xlane.f32.xlu0 %v5016_v17  ;;  %v3371_v26 = vpop.f32.mrb[26].mxu1  ;;  %v5026_v2 = vsel %vm5954_vm11, %v1745_v51, -1e+30 }
 0x40f   : > { %v1748_v14 = vpop.f32.mrb[27].mxu1  ;;  %v5021_v1 = vsel %vm5953_vm10, %v3371_v26, -1e+30 }
 0x410   : > { %1848 = vmax.xlane.f32.xlu1 %v5021_v1  ;;  %v5031_v28 = vsel %vm5955_vm12, %v1748_v14, -1e+30  ;;  %v1200_v14 = vsel %vm5953_vm10, %v4794_v8, 0.0  ;;  %vm5973_vm10 = vmmov %vm5971_vm13 }
 0x412   : > { %1842 = vmax.xlane.f32.xlu0 %v5026_v2 }
 0x414   : > { %1844 = vmax.xlane.f32.xlu1 %v5031_v28  ;;  %v3374_v20 = vpop.f32.mrb[28].mxu1 }
 0x415   : > { %v1761_v27 = vpop.f32.mrb[29].mxu1  ;;  %v5036_v26 = vsel %vm5884_vm3, %v3374_v20, -1e+30  ;;  %v5960_v20 = vld [vmem:[#allocation25_spill] sm:$0xff] }
 0x416   : > { %5956 = vst [vmem:[#allocation47_spill] sm:$0xff] %v5036_v26  ;;  %1854 = vmax.xlane.f32.xlu0 %v5036_v26  ;;  %v3375_v54 = vpop.f32.mrb[30].mxu1  ;;  %v5041_v51 = vsel %vm5957_vm1, %v1761_v27, -1e+30  ;;  %v5963_v27 = vld [vmem:[#allocation26_spill] sm:$0xff] }
 0x417   : > { %v1764_v29 = vpop.f32.mrb[31].mxu1  ;;  %5958 = vst [vmem:[#allocation48_spill] sm:$0xff] %v5041_v51  ;;  %v5059_v13 = vsel %vm5885_vm14, %v3375_v54, -1e+30 }
 0x418   : > { %5964 = vst [vmem:[#allocation22_spill] sm:$0xff] %v5059_v13  ;;  %v5064_v8 = vsel %vm5965_vm15, %v1764_v29, -1e+30 }
 0x419   : > { %5966 = vst [vmem:[#allocation25_spill] sm:$0xff] %v5064_v8 }
 0x41a   : > { %1850 = vmax.xlane.f32.xlu0 %v5041_v51  ;;  %v5110_v51 = vld [vmem:[#allocation2 + $0xb8] sm:$0xff] }
 0x41b   : > { %5976 = vst [vmem:[#allocation50_spill] sm:$0xff] %v5110_v51 }
 0x41e   : > { %1243 = vadd.xlane.f32.xlu0 %v1200_v14 }
 0x425   : > { %2267 = vrot.lane.b32.xlu1 %v5959_v62, %s3865_s16  ;;  %v5069_v62 = vld [vmem:[#allocation2 + $0x90] sm:$0xff] }
 0x426   : > { %5968 = vst [vmem:[#allocation23_spill] sm:$0xff] %v5069_v62 }
 0x429   : > { %2273 = vrot.lane.b32.xlu1 %v5960_v20, %s3865_s16 }
 0x434   : > { %2269 = vrot.lane.b32.xlu0 %v5961_v44, %s3865_s16  ;;  %v5967_v44 = vld [vmem:[#allocation28_spill] sm:$0xff] }
 0x438   : > { %2271 = vrot.lane.b32.xlu0 %v5962_v50, %s3865_s16  ;;  %v5071_v50 = vld [vmem:[#allocation2 + $0x80] sm:$0xff] }
 0x43c   : > { %2275 = vrot.lane.b32.xlu0 %v5963_v27, %s3865_s16 }
 0x44d   : > { %1856 = vmax.xlane.f32.xlu1 %v5059_v13 }
 0x451   : > { %1852 = vmax.xlane.f32.xlu1 %v5064_v8  ;;  %v5099_v8 = vld [vmem:[#allocation2 + $0xb0] sm:$0xff] }
 0x462   : > { %2277 = vrot.lane.b32.xlu1 %v5967_v44, %s3865_s16  ;;  %v5086_v44 = vld [vmem:[#allocation2 + $0x98] sm:$0xff] }
 0x463   : > { %5972 = vst [vmem:[#allocation28_spill] sm:$0xff] %v5086_v44 }
 0x48b   : > { %v1831_v14 = vpop.xlane.xlu0 %1830 }
 0x48c   : > { %v5074_v20 = vmax.f32 %v5069_v62, %v1831_v14  ;;  %v1827_v54 = vpop.xlane.xlu1 %1826 }
 0x48d   : > { %v5077_v27 = vmax.f32 %v5071_v50, %v1827_v54 }
 0x48e   : > { %5969 = vst [vmem:[#allocation24_spill] sm:$0xff] %v5074_v20  ;;  %2422 = vst.msk [vmem:[#allocation2 + $0x90] sm:$0xff] %vm5971_vm13, %v5074_v20  ;;  %1934 = vperm.xlu0 %3490, %v5074_v20   ;;  %v5138_v20 = vld [vmem:[#allocation2 + $0xd0] sm:$0xff] }
 0x48f   : > { %5970 = vst [vmem:[#allocation26_spill] sm:$0xff] %v5077_v27  ;;  %2420 = vst.msk [vmem:[#allocation2 + $0x80] sm:$0xff] %vm5973_vm10, %v5077_v27  ;;  %1924 = vperm.xlu1 %3491, %v5077_v27   ;;  %v1829_v54 = vpop.xlane.xlu0 %1828 }
 0x490   : > { %v5094_v58 = vmax.f32 %v5079_v59, %v1829_v54  ;;  %v1833_v29 = vpop.xlane.xlu1 %1832  ;;  %vm5975_vm13 = vmmov %vm5973_vm10 }
 0x491   : > { %v5097_v13 = vmax.f32 %v5086_v44, %v1833_v29 }
 0x492   : > { %2421 = vst.msk [vmem:[#allocation2 + $0x88] sm:$0xff] %vm5975_vm13, %v5094_v58  ;;  %vm5977_vm13 = vmmov %vm5973_vm10 }
 0x493   : > { %5974 = vst [vmem:[#allocation49_spill] sm:$0xff] %v5097_v13  ;;  %2423 = vst.msk [vmem:[#allocation2 + $0x98] sm:$0xff] %vm5973_vm10, %v5097_v13  ;;  %1939 = vperm.xlu1 %3491, %v5097_v13   ;;  %v1839_v54 = vpop.xlane.xlu0 %1838 }
 0x494   : > { %v5113_v29 = vmax.f32 %v5099_v8, %v1839_v54 }
 0x495   : > { %v1841_v37 = vpop.xlane.xlu1 %1840 }
 0x496   : > { %2426 = vst.msk [vmem:[#allocation2 + $0xb0] sm:$0xff] %vm5977_vm13, %v5113_v29  ;;  %v5122_v14 = vmax.f32 %v5110_v51, %v1841_v37  ;;  %1954 = vperm.xlu0 %3490, %v5113_v29   ;;  %v5982_v37 = vsub.f32 %v5980_v16, %v5981_v31  ;;  %vm5983_vm13 = vmmov %vm5973_vm10  ;;  %v5149_v51 = vld [vmem:[#allocation2 + $0xd8] sm:$0xff] }
 0x497   : > { %1929 = vperm.xlu1 %3491, %v5094_v58   ;;  %v1835_v47 = vpop.xlane.xlu0 %1834  ;;  %5985 = vst [vmem:[#allocation41_spill] sm:$0xff] %v5149_v51 }
 0x498   : > { %5978 = vst [vmem:[#allocation51_spill] sm:$0xff] %v5122_v14  ;;  %2427 = vst.msk [vmem:[#allocation2 + $0xb8] sm:$0xff] %vm5973_vm10, %v5122_v14  ;;  %v5133_v26 = vmax.f32 %v5115_v49, %v1835_v47  ;;  %v1051_v13 = vmul.f32 1.442695, %v5982_v37 }
 0x499   : > { %v1837_v44 = vpop.xlane.xlu1 %1836 }
 0x49a   : > { %2424 = vst.msk [vmem:[#allocation2 + $0xa0] sm:$0xff] %vm5983_vm13, %v5133_v26  ;;  %v5145_v54 = vmax.f32 %v5126_v63, %v1837_v44  ;;  %1944 = vperm.xlu0 %3490, %v5133_v26   ;;  %3570 = vpow2.f32 %v1051_v13  ;;  %v5158_v44 = vld [vmem:[#allocation2 + $0xc0] sm:$0xff]  ;;  %vm5986_vm13 = vmmov %vm5973_vm10 }
 0x49b   : > { %1959 = vperm.xlu1 %3491, %v5122_v14   ;;  %v1847_v47 = vpop.xlane.xlu0 %1846 }
 0x49c   : > { %5984 = vst [vmem:[#allocation40_spill] sm:$0xff] %v5145_v54  ;;  %2425 = vst.msk [vmem:[#allocation2 + $0xa8] sm:$0xff] %vm5973_vm10, %v5145_v54  ;;  %v5156_v31 = vmax.f32 %v5138_v20, %v1847_v47  ;;  %v5169_v47 = vld [vmem:[#allocation2 + $0xc8] sm:$0xff] }
 0x49d   : > { %v1849_v37 = vpop.xlane.xlu1 %1848  ;;  %5988 = vst [vmem:[#allocation54_spill] sm:$0xff] %v5169_v47 }
 0x49e   : > { %2430 = vst.msk [vmem:[#allocation2 + $0xd0] sm:$0xff] %vm5986_vm13, %v5156_v31  ;;  %v5165_v14 = vmax.f32 %v5149_v51, %v1849_v37  ;;  %1974 = vperm.xlu0 %3490, %v5156_v31   ;;  %v5178_v37 = vld [vmem:[#allocation2 + $0xf0] sm:$0xff]  ;;  %vm5990_vm13 = vmmov %vm5973_vm10 }
 0x49f   : > { %1949 = vperm.xlu1 %3491, %v5145_v54   ;;  %v1843_v16 = vpop.xlane.xlu0 %1842  ;;  %5989 = vst [vmem:[#allocation55_spill] sm:$0xff] %v5178_v37 }
 0x4a0   : > { %5987 = vst [vmem:[#allocation53_spill] sm:$0xff] %v5165_v14  ;;  %2431 = vst.msk [vmem:[#allocation2 + $0xd8] sm:$0xff] %vm5973_vm10, %v5165_v14  ;;  %v5176_v62 = vmax.f32 %v5158_v44, %v1843_v16 }
 0x4a1   : > { %v1845_v63 = vpop.xlane.xlu1 %1844 }
 0x4a2   : > { %2428 = vst.msk [vmem:[#allocation2 + $0xc0] sm:$0xff] %vm5990_vm13, %v5176_v62  ;;  %v5185_v54 = vmax.f32 %v5169_v47, %v1845_v63  ;;  %1964 = vperm.xlu0 %3490, %v5176_v62   ;;  %vm5992_vm13 = vmmov %vm5973_vm10  ;;  %v960_v47 = vld [vmem:[#allocation3 + $0x58] sm:$0xff] }
 0x4a3   : > { %1979 = vperm.xlu1 %3491, %v5165_v14   ;;  %v1855_v13 = vpop.xlane.xlu0 %1854  ;;  %v3644_v14 = vld [vmem:[%s4038_s17 + $0x30] sm:$0xff]  }
 0x4a4   : > { %5991 = vst [vmem:[#allocation56_spill] sm:$0xff] %v5185_v54  ;;  %2429 = vst.msk [vmem:[#allocation2 + $0xc8] sm:$0xff] %vm5973_vm10, %v5185_v54  ;;  %v5194_v51 = vmax.f32 %v5178_v37, %v1855_v13  ;;  %v5204_v16 = vpop.eup %3570 }
 0x4a5   : > { %v2268_v30 = vpop.permute.xlu1 %2267 }
 0x4a6   : > { %2434 = vst.msk [vmem:[#allocation2 + $0xf0] sm:$0xff] %vm5992_vm13, %v5194_v51  ;;  %3376 = vmatprep.subr.bf16.mxu0 %v2268_v30  ;;  %2279 = vrot.lane.b32.xlu0 %v3644_v14, %s3865_s16  ;;  %v1216_v14 = vmul.f32 %v5204_v16, %v960_v47  ;;  %vm5993_vm13 = vmmov %vm5973_vm10  ;;  %v1203_v47 = vsel %vm5884_vm3, %v4830_v34, 0.0 }
 0x4a7   : > { %3377 = vmatpush3.bf16.msra.mxu0 %v2268_v30  ;;  %1969 = vperm.xlu1 %3491, %v5185_v54   ;;  %v1851_v13 = vpop.xlane.xlu0 %1850 }
 0x4a8   : > { %v5208_v9 = vmax.f32 %v5196_v39, %v1851_v13 }
 0x4a9   : > { %v2274_v54 = vpop.permute.xlu1 %2273 }
 0x4aa   : > { %2432 = vst.msk [vmem:[#allocation2 + $0xe0] sm:$0xff] %vm5973_vm10, %v5208_v9  ;;  %1984 = vperm.xlu0 %3490, %v5208_v9  }
 0x4ab   : > { %v1244_v37 = vpop.xlane.xlu0 %1243  ;;  %2281 = vrot.lane.b32.xlu1 %v3645_v15, %s3865_s16  ;;  %v1201_v15 = vsel %vm5957_vm1, %v4818_v40, 0.0 }
 0x4ac   : > { %v1264_v30 = vadd.f32 %v1244_v37, %v1216_v14  ;;  %v1204_v37 = vsel %vm5885_vm14, %v4837_v32, 0.0  ;;  %v5234_v14 = vld [vmem:[#allocation2 + $0xe8] sm:$0xff] }
 0x4ae   : > { %1281 = vst.msk [vmem:[#allocation3 + $0x58] sm:$0xff] %vm5993_vm13, %v1264_v30  ;;  %1994 = vperm.xlu0 %3490, %v5194_v51   ;;  %vm5994_vm13 = vmmov %vm5973_vm10 }
 0x4af   : > { %v2270_v13 = vpop.permute.xlu0 %2269 }
 0x4b0   : > { %3378 = vmatprep.subr.bf16.mxu0 %v2270_v13 }
 0x4b1   : > { %3379 = vmatpush3.bf16.msra.mxu0 %v2270_v13 }
 0x4b3   : > { %v2272_v63 = vpop.permute.xlu0 %2271 }
 0x4b4   : > { %3380 = vmatprep.subr.bf16.mxu0 %v2272_v63 }
 0x4b5   : > { %3381 = vmatpush3.bf16.msra.mxu0 %v2272_v63  ;;  %v5229_v63 = vld [vmem:[#allocation2 + $0xf8] sm:$0xff] }
 0x4b6   : > { %3382 = vmatprep.subr.bf16.mxu0 %v2274_v54 }
 0x4b7   : > { %v2276_v27 = vpop.permute.xlu0 %2275 }
 0x4b9   : > { %3383 = vmatpush3.bf16.msra.mxu0 %v2274_v54 }
 0x4ba   : > { %3384 = vmatprep.subr.bf16.mxu0 %v2276_v27 }
 0x4bd   : > { %3385 = vmatpush3.bf16.msra.mxu0 %v2276_v27 }
 0x4cd   : > { %1245 = vadd.xlane.f32.xlu0 %v1201_v15  ;;  %v5995_v15 = vsub.f32 %v4640_v0, %v4654_v4  ;;  %v5999_v0 = vsub.f32 %v5115_v49, %v5133_v26 }
 0x4cf   : > { %v1898_v4 = vmul.f32 1.442695, %v5999_v0 }
 0x4d1   : > { %1249 = vadd.xlane.f32.xlu0 %v1203_v47  ;;  %v1053_v47 = vmul.f32 1.442695, %v5995_v15 }
 0x4d3   : > { %3572 = vpow2.f32 %v1053_v47 }
 0x4d5   : > { %1251 = vadd.xlane.f32.xlu0 %v1204_v37  ;;  %v5996_v37 = vld [vmem:[#allocation42_spill] sm:$0xff] }
 0x4da   : > { %v1857_v54 = vpop.xlane.xlu1 %1856 }
 0x4db   : > { %v5232_v27 = vmax.f32 %v5229_v63, %v1857_v54  ;;  %v5997_v54 = vsub.f32 %v5996_v37, %v4634_v18  ;;  %v6000_v18 = vsub.f32 %v5099_v8, %v5113_v29  ;;  %v1202_v8 = vsel %vm5965_vm15, %v4821_v24, 0.0 }
 0x4dd   : > { %v1889_v40 = vsub.f32 %v5229_v63, %v5232_v27  ;;  %2435 = vst.msk [vmem:[#allocation2 + $0xf8] sm:$0xff] %vm5973_vm10, %v5232_v27  ;;  %vm6005_vm10 = vmpackc.low %vm4339_vm5, %vm5950_vm2 }
 0x4de   : > { %v1853_v34 = vpop.xlane.xlu1 %1852 }
 0x4df   : > { %v5241_v30 = vmax.f32 %v5234_v14, %v1853_v34  ;;  %v1057_v34 = vmul.f32 1.442695, %v5997_v54 }
 0x4e1   : > { %v1887_v32 = vsub.f32 %v5234_v14, %v5241_v30  ;;  %2433 = vst.msk [vmem:[#allocation2 + $0xe8] sm:$0xff] %vm5994_vm13, %v5241_v30  ;;  %1989 = vperm.xlu1 %3491, %v5241_v30   ;;  %3574 = vpow2.f32 %v1057_v34  ;;  %vm6011_vm13 = vmpackc.low %vm4354_vm6, %vm4334_vm4 }
 0x4e2   : > { %v2278_v13 = vpop.permute.xlu1 %2277 }
 0x4e3   : > { %3386 = vmatprep.subr.bf16.mxu0 %v2278_v13 }
 0x4e4   : > { %3387 = vmatpush3.bf16.msra.mxu0 %v2278_v13  ;;  %v5998_v13 = vsub.f32 %v5079_v59, %v5094_v58  ;;  %v6002_v59 = vsub.f32 %v5158_v44, %v5176_v62 }
 0x4e5   : > { %1999 = vperm.xlu1 %3491, %v5232_v27   ;;  %v1291_v27 = vld [vmem:[#allocation4 + $0x28] sm:$0xff] }
 0x4e6   : > { %v1906_v26 = vmul.f32 1.442695, %v6002_v59 }
 0x4eb   : > { %1309 = vperm.xlu0 %3490, %v4903_v38   ;;  %v1892_v38 = vmul.f32 1.442695, %v5998_v13 }
 0x4ed   : > { %3576 = vpow2.f32 %v1892_v38 }
 0x4ee   : > { %3578 = vpow2.f32 %v1898_v4 }
 0x4ef   : > { %1324 = vperm.xlu0 %3490, %v4918_v56   ;;  %v1902_v56 = vmul.f32 1.442695, %v6000_v18 }
 0x4f1   : > { %3580 = vpow2.f32 %v1902_v56 }
 0x4f3   : > { %1334 = vperm.xlu0 %3490, %v4908_v52   ;;  %v5266_v52 = vpop.eup %3572 }
 0x4f7   : > { %1344 = vperm.xlu0 %3490, %v4935_v22   ;;  %v5272_v22 = vpop.eup %3574 }
 0x4f8   : > { %v5278_v49 = vpop.eup %3576 }
 0x4f9   : > { %v5287_v29 = vpop.eup %3578 }
 0x4fb   : > { %1354 = vperm.xlu0 %3490, %v4928_v45   ;;  %v6001_v45 = vsub.f32 %v5138_v20, %v5156_v31  ;;  %v6003_v20 = vsub.f32 %v5196_v39, %v5208_v9  ;;  %v5293_v15 = vpop.eup %3580 }
 0x4fd   : > { %v1910_v58 = vmul.f32 1.442695, %v6001_v45  ;;  %v1914_v31 = vmul.f32 1.442695, %v6003_v20 }
 0x4ff   : > { %1364 = vperm.xlu0 %3490, %v5266_v52   ;;  %3582 = vpow2.f32 %v1910_v58 }
 0x500   : > { %3584 = vpow2.f32 %v1906_v26 }
 0x501   : > { %3586 = vpow2.f32 %v1914_v31 }
 0x503   : > { %1374 = vperm.xlu0 %3490, %v5272_v22  }
 0x507   : > { %2170 = vperm.xlu0 %3490, %v5278_v49  }
 0x509   : > { %1247 = vadd.xlane.f32.xlu1 %v1202_v8  ;;  %v5296_v44 = vpop.eup %3582 }
 0x50a   : > { %v5300_v34 = vpop.eup %3584 }
 0x50b   : > { %2185 = vperm.xlu0 %3490, %v5287_v29   ;;  %v5306_v56 = vpop.eup %3586 }
 0x50d   : > { %v1935_v62 = vpop.permute.xlu0 %1934 }
 0x50e   : > { %v1925_v47 = vpop.permute.xlu1 %1924  ;;  %v2004_v0 = vsub.f32 %v4976_v53, %v1935_v62 }
 0x50f   : > { %2195 = vperm.xlu0 %3490, %v5293_v15   ;;  %v2002_v24 = vsub.f32 %v4981_v55, %v1925_v47 }
 0x510   : > { %v2022_v58 = vmul.f32 1.442695, %v2004_v0 }
 0x511   : > { %v2018_v13 = vmul.f32 1.442695, %v2002_v24 }
 0x512   : > { %v1940_v37 = vpop.permute.xlu1 %1939 }
 0x513   : > { %2215 = vperm.xlu0 %3490, %v5296_v44   ;;  %v2005_v38 = vsub.f32 %v4991_v23, %v1940_v37  ;;  %3588 = vpow2.f32 %v2018_v13 }
 0x515   : > { %v1955_v54 = vpop.permute.xlu0 %1954 }
 0x516   : > { %v1930_v9 = vpop.permute.xlu1 %1929 }
 0x517   : > { %v2003_v39 = vsub.f32 %v4986_v35, %v1930_v9  ;;  %2205 = vperm.xlu0 %3490, %v5300_v34   ;;  %v2024_v35 = vmul.f32 1.442695, %v2005_v38  ;;  %v6006_v38 = vsub.f32 %v4646_v7, %v4657_v36  ;;  %v6033_v36 = vld [vmem:[#allocation20_spill] sm:$0xff] }
 0x518   : > { %v6042_v7 = vld [vmem:[#allocation56_spill] sm:$0xff] }
 0x519   : > { %v2020_v4 = vmul.f32 1.442695, %v2003_v39  ;;  %v1945_v18 = vpop.permute.xlu0 %1944 }
 0x51a   : > { %v2006_v55 = vsub.f32 %v5006_v60, %v1945_v18  ;;  %1304 = vperm.xlu1 %3491, %v4877_v46   ;;  %v1960_v45 = vpop.permute.xlu1 %1959  ;;  %v2008_v60 = vsub.f32 %v4996_v19, %v1955_v54 }
 0x51b   : > { %3590 = vpow2.f32 %v2020_v4  ;;  %2225 = vperm.xlu0 %3490, %v5306_v56   ;;  %v2009_v8 = vsub.f32 %v5001_v25, %v1960_v45 }
 0x51c   : > { %v2026_v26 = vmul.f32 1.442695, %v2006_v55  ;;  %3592 = vpow2.f32 %v2024_v35  ;;  %v2030_v37 = vmul.f32 1.442695, %v2008_v60 }
 0x51d   : > { %v1975_v59 = vpop.permute.xlu0 %1974  ;;  %3594 = vpow2.f32 %v2022_v58  ;;  %v2032_v24 = vmul.f32 1.442695, %v2009_v8  ;;  %v6016_v8 = vld [vmem:[#allocation24_spill] sm:$0xff] }
 0x51e   : > { %1314 = vperm.xlu1 %3491, %v4886_v48   ;;  %v1950_v53 = vpop.permute.xlu1 %1949  ;;  %3596 = vpow2.f32 %v2026_v26  ;;  %v6004_v48 = vsub.f32 %v4664_v5, %v4672_v33  ;;  %v2012_v9 = vsub.f32 %v5016_v17, %v1975_v59  ;;  %v962_v26 = vld [vmem:[#allocation3 + $0x68] sm:$0xff] }
 0x51f   : > { %v2007_v23 = vsub.f32 %v5011_v43, %v1950_v53  ;;  %v5320_v43 = vpop.eup %3588 }
 0x520   : > { %v1055_v62 = vmul.f32 1.442695, %v6004_v48  ;;  %v2038_v45 = vmul.f32 1.442695, %v2012_v9  ;;  %v6027_v9 = vld [vmem:[#allocation52_spill] sm:$0xff] }
 0x521   : > { %v2028_v46 = vmul.f32 1.442695, %v2007_v23  ;;  %v1965_v20 = vpop.permute.xlu0 %1964  ;;  %v6015_v23 = vld [vmem:[#allocation23_spill] sm:$0xff] }
 0x522   : > { %v2010_v31 = vsub.f32 %v5026_v2, %v1965_v20  ;;  %1319 = vperm.xlu1 %3491, %v4896_v6   ;;  %v1980_v47 = vpop.permute.xlu1 %1979  ;;  %v6017_v60 = vsub.f32 %v6015_v23, %v6016_v8  ;;  %v6035_v23 = vld [vmem:[#allocation17_spill] sm:$0xff] }
 0x523   : > { %3598 = vpow2.f32 %v2028_v46  ;;  %v2013_v33 = vsub.f32 %v5021_v1, %v1980_v47  ;;  %v1059_v1 = vmul.f32 1.442695, %v6006_v38 }
 0x524   : > { %v2034_v54 = vmul.f32 1.442695, %v2010_v31  ;;  %3600 = vpow2.f32 %v1055_v62  ;;  %v1894_v46 = vmul.f32 1.442695, %v6017_v60  ;;  %v6018_v62 = vld [vmem:[#allocation28_spill] sm:$0xff]  ;;  %v6039_v60 = vld [vmem:[#allocation53_spill] sm:$0xff] }
 0x525   : > { %v5322_v25 = vpop.eup %3590  ;;  %v2280_v19 = vpop.permute.xlu0 %2279  ;;  %3602 = vpow2.f32 %v2032_v24  ;;  %v2040_v4 = vmul.f32 1.442695, %v2013_v33  ;;  %v6019_v24 = vld [vmem:[#allocation49_spill] sm:$0xff] }
 0x526   : > { %1329 = vperm.xlu1 %3491, %v4922_v57   ;;  %v1970_v13 = vpop.permute.xlu1 %1969  ;;  %3388 = vmatprep.subr.bf16.mxu0 %v2280_v19  ;;  %v3111_v6 = vpack.c.bf16 %v5322_v25, %v5320_v43  ;;  %3604 = vpow2.f32 %v2030_v37  ;;  %v3593_v2 = vpop.eup %3592 }
 0x527   : > { %v2011_v5 = vsub.f32 %v5031_v28, %v1970_v13  ;;  %3389 = vmatpush3.bf16.msra.mxu0 %v2280_v19  ;;  %3606 = vpow2.f32 %v2034_v54  ;;  %v3595_v28 = vpop.eup %3594  ;;  %v2053_v3 = vsel %vm4354_vm6, %v3593_v2, 0.0  ;;  %v6044_v13 = vld [vmem:[#allocation48_spill] sm:$0xff]  ;;  %vm6045_vm6 = vcmask 7168  }
 0x528   : > { %3392 = vmatprep.mubr.msk.bf16.mxu0 %vm6005_vm10, %v3111_v6  ;;  %v5339_v0 = vpop.eup %3596  ;;  %v3114_v55 = vpack.c.bf16 %v3593_v2, %v3595_v28  ;;  %vm6014_vm10 = vmpackc.low %vm5951_vm0, %vm4375_vm8  ;;  %v2052_v33 = vsel %vm4334_vm4, %v3595_v28, 0.0  ;;  %v6030_v28 = vld [vmem:[#allocation50_spill] sm:$0xff]  ;;  %vm6034_vm4 = vnez %v6033_v36  ;;  %v1286_v6 = vld [vmem:[#allocation4] sm:$0xff] }
 0x529   : > { %v2036_v57 = vmul.f32 1.442695, %v2011_v5 }
 0x52a   : > { %1339 = vperm.xlu1 %3491, %v4915_v42   ;;  %v2282_v39 = vpop.permute.xlu1 %2281  ;;  %v6007_v42 = vld [vmem:[#allocation26_spill] sm:$0xff] }
 0x52b   : > { %3608 = vpow2.f32 %v2036_v57  ;;  %3390 = vmatprep.subr.bf16.mxu0 %v2282_v39  ;;  %v6008_v35 = vsub.f32 %v5071_v50, %v6007_v42  ;;  %v6031_v42 = vld [vmem:[#allocation51_spill] sm:$0xff] }
 0x52c   : > { %3391 = vmatpush3.bf16.msra.mxu0 %v2282_v39  ;;  %3610 = vpow2.f32 %v1059_v1  ;;  %v6028_v39 = vld [vmem:[#allocation40_spill] sm:$0xff] }
 0x52d   : > { %v3599_v18 = vpop.eup %3598  ;;  %v1890_v58 = vmul.f32 1.442695, %v6008_v35  ;;  %3612 = vpow2.f32 %v2040_v4  ;;  %v6029_v38 = vsub.f32 %v6027_v9, %v6028_v39  ;;  %v6032_v35 = vsub.f32 %v6030_v28, %v6031_v42  ;;  %v1985_v39 = vpop.permute.xlu0 %1984 }
 0x52e   : > { %1349 = vperm.xlu1 %3491, %v4931_v41   ;;  %v3117_v17 = vpack.c.bf16 %v3599_v18, %v5339_v0  ;;  %v5356_v41 = vpop.eup %3600  ;;  %3614 = vpow2.f32 %v2038_v45  ;;  %v2050_v45 = vsel %vm5950_vm2, %v5320_v43, 0.0  ;;  %v6038_v43 = vld [vmem:[#allocation41_spill] sm:$0xff]  ;;  %vm6049_vm2 = vmmov %vm6045_vm6 }
 0x52f   : > { %3393 = vmatmul.mubr.msk.bf16.vlgmr.msra.gmra.mrb[16].mxu0 %vm6011_vm13, %v3114_v55  ;;  %v3603_v53 = vpop.eup %3602  ;;  %3616 = vpow2.f32 %v1890_v58  ;;  %vm6023_vm13 = vmpackc.low %vm4380_vm9, %vm4360_vm7  ;;  %v1900_v1 = vmul.f32 1.442695, %v6029_v38  ;;  %v1904_v58 = vmul.f32 1.442695, %v6032_v35  ;;  %v964_v35 = vld [vmem:[#allocation3 + $0x78] sm:$0xff] }
 0x530   : > { %3396 = vmatprep.mubr.msk.bf16.mxu0 %vm6014_vm10, %v3117_v17  ;;  %v5359_v50 = vpop.eup %3604  ;;  %3618 = vpow2.f32 %v1894_v46  ;;  %vm6026_vm10 = vmpackc.low %vm5955_vm12, %vm5954_vm11  ;;  %v6040_v46 = vsub.f32 %v6038_v43, %v6039_v60 }
 0x531   : > { %v5364_v20 = vpop.eup %3606  ;;  %v3120_v47 = vpack.c.bf16 %v3603_v53, %v5359_v50  ;;  %v1995_v30 = vpop.permute.xlu0 %1994 }
 0x532   : > { %1359 = vperm.xlu1 %3491, %v5204_v16   ;;  %v6020_v16 = vsub.f32 %v6018_v62, %v6019_v24  ;;  %v2057_v62 = vsel %vm4380_vm9, %v3603_v53, 0.0  ;;  %v6041_v24 = vld [vmem:[#allocation54_spill] sm:$0xff]  ;;  %v1916_v53 = vmul.f32 1.442695, %v1887_v32  ;;  %v961_v32 = vld [vmem:[#allocation3 + $0x60] sm:$0xff]  ;;  %vm6047_vm9 = vmmov %vm6045_vm6 }
 0x533   : > { %v6043_v2 = vsub.f32 %v6041_v24, %v6042_v7  ;;  %v1217_v38 = vmul.f32 %v5266_v52, %v961_v32  ;;  %v6048_v52 = vld [vmem:[#allocation25_spill] sm:$0xff]  ;;  %v6051_v32 = vld [vmem:[#allocation31_spill] sm:$0xff] }
 0x534   : > { %v1896_v37 = vmul.f32 1.442695, %v6020_v16 }
 0x535   : > { %v3609_v31 = vpop.eup %3608  ;;  %v1908_v16 = vmul.f32 1.442695, %v6043_v2 }
 0x536   : > { %1369 = vperm.xlu1 %3491, %v5356_v41   ;;  %v3123_v48 = vpack.c.bf16 %v3609_v31, %v5364_v20  ;;  %v5382_v5 = vpop.eup %3610  ;;  %3620 = vpow2.f32 %v1896_v37 }
 0x537   : > { %3397 = vmatmul.mubr.msk.bf16.gmra.mrb[20].mxu0 %vm6023_vm13, %v3120_v47  ;;  %v3613_v57 = vpop.eup %3612  ;;  %3622 = vpow2.f32 %v1900_v1  ;;  %vm6036_vm13 = vnez %v6035_v23  ;;  %v1912_v47 = vmul.f32 1.442695, %v6040_v46 }
 0x538   : > { %3400 = vmatprep.mubr.msk.bf16.mxu0 %vm6026_vm10, %v3123_v48  ;;  %v5390_v4 = vpop.eup %3614  ;;  %vm6037_vm10 = vmpackc.low %vm6034_vm4, %vm6036_vm13  ;;  %3624 = vpow2.f32 %v1904_v58  ;;  %v2061_v9 = vsel %vm6034_vm4, %v3613_v57, 0.0 }
 0x539   : > { %v5392_v55 = vpop.eup %3616  ;;  %v3126_v17 = vpack.c.bf16 %v3613_v57, %v5390_v4  ;;  %3626 = vpow2.f32 %v1912_v47  ;;  %v1220_v47 = vmul.f32 %v5382_v5, %v964_v35  ;;  %v2060_v54 = vsel %vm6036_vm13, %v5390_v4, 0.0 }
 0x53a   : > { %1379 = vperm.xlu1 %3491, %v5382_v5   ;;  %2086 = vadd.xlane.f32.xlu0 %v2052_v33  ;;  %v5407_v8 = vpop.eup %3618  ;;  %v2055_v33 = vsel %vm5951_vm0, %v3599_v18, 0.0  ;;  %3628 = vpow2.f32 %v1908_v16  ;;  %v2059_v18 = vsel %vm5955_vm12, %v3609_v31, 0.0  ;;  %v2014_v31 = vsub.f32 %v6044_v13, %v1985_v39  ;;  %vm6054_vm12 = vmpackc.low %vm5965_vm15, %vm5957_vm1 }
 0x53b   : > { %3630 = vpow2.f32 %v1916_v53  ;;  %vm6052_vm0 = vcmask 523264  }
 0x53c   : > { %v2042_v36 = vmul.f32 1.442695, %v2014_v31  ;;  %v1292_v31 = vld [vmem:[#allocation4 + $0x30] sm:$0xff]  ;;  %vm6055_vm4 = vmmov %vm6052_vm0 }
 0x53d   : > { %vm6079_vm13 = vmmov %vm6052_vm0 }
 0x53e   : > { %2165 = vperm.xlu1 %3491, %v5392_v55   ;;  %2082 = vadd.xlane.f32.xlu0 %v2050_v45  ;;  %v963_v45 = vld [vmem:[#allocation3 + $0x70] sm:$0xff]  ;;  %3632 = vpow2.f32 %v2042_v36 }
 0x53f   : > { %3401 = vmatmul.mubr.msk.bf16.gmra.mrb[24].mxu0 %vm6037_vm10, %v3126_v17  ;;  %v1219_v28 = vmul.f32 %v5272_v22, %v963_v45  ;;  %v6050_v22 = vld [vmem:[#allocation22_spill] sm:$0xff]  ;;  %vm6057_vm10 = vmpackc.low %vm5885_vm14, %vm5884_vm3 }
 0x540   : > { %v5415_v48 = vpop.eup %3620 }
 0x541   : > { %v5423_v37 = vpop.eup %3622 }
 0x542   : > { %2175 = vperm.xlu1 %3491, %v5407_v8   ;;  %2088 = vadd.xlane.f32.xlu0 %v2053_v3  ;;  %v5431_v19 = vpop.eup %3624  ;;  %v6046_v3 = vld [vmem:[#allocation47_spill] sm:$0xff] }
 0x543   : > { %v5436_v59 = vpop.eup %3626  ;;  %v2016_v43 = vsub.f32 %v6046_v3, %v1995_v30  ;;  %v1290_v30 = vld [vmem:[#allocation4 + $0x20] sm:$0xff] }
 0x544   : > { %v5441_v14 = vpop.eup %3628 }
 0x545   : > { %v5444_v57 = vpop.eup %3630  ;;  %v2046_v2 = vmul.f32 1.442695, %v2016_v43 }
 0x546   : > { %2180 = vperm.xlu1 %3491, %v5415_v48   ;;  %2096 = vadd.xlane.f32.xlu0 %v2057_v62 }
 0x54a   : > { %2190 = vperm.xlu1 %3491, %v5423_v37   ;;  %2092 = vadd.xlane.f32.xlu0 %v2055_v33 }
 0x54e   : > { %2200 = vperm.xlu1 %3491, %v5431_v19   ;;  %2104 = vadd.xlane.f32.xlu0 %v2061_v9  ;;  %v1287_v9 = vld [vmem:[#allocation4 + $0x8] sm:$0xff] }
 0x552   : > { %2220 = vperm.xlu1 %3491, %v5436_v59   ;;  %2100 = vadd.xlane.f32.xlu0 %v2059_v18 }
 0x556   : > { %2210 = vperm.xlu1 %3491, %v5441_v14  }
 0x55a   : > { %2230 = vperm.xlu1 %3491, %v5444_v57   ;;  %v1246_v1 = vpop.xlane.xlu0 %1245 }
 0x55b   : > { %v1265_v17 = vadd.f32 %v1246_v1, %v1217_v38  ;;  %v3633_v38 = vpop.eup %3632 }
 0x55c   : > { %v2062_v4 = vsel %vm5957_vm1, %v3633_v38, 0.0  ;;  %vm6077_vm1 = vmmov %vm6052_vm0 }
 0x55d   : > { %1282 = vst.msk [vmem:[#allocation3 + $0x60] sm:$0xff] %vm6045_vm6, %v1265_v17  ;;  %vm6058_vm6 = vmmov %vm6052_vm0 }
 0x55e   : > { %v1250_v42 = vpop.xlane.xlu0 %1249 }
 0x55f   : > { %v1267_v58 = vadd.f32 %v1250_v42, %v1219_v28  ;;  %v6053_v28 = vld [vmem:[#allocation35_spill] sm:$0xff] }
 0x560   : > { %v1990_v60 = vpop.permute.xlu1 %1989 }
 0x561   : > { %1284 = vst.msk [vmem:[#allocation3 + $0x70] sm:$0xff] %vm6047_vm9, %v1267_v58  ;;  %v2015_v46 = vsub.f32 %v6048_v52, %v1990_v60  ;;  %v1294_v52 = vld [vmem:[#allocation4 + $0x40] sm:$0xff]  ;;  %vm6060_vm9 = vmmov %vm6052_vm0 }
 0x562   : > { %v1252_v62 = vpop.xlane.xlu0 %1251 }
 0x563   : > { %v2044_v24 = vmul.f32 1.442695, %v2015_v46  ;;  %v1268_v7 = vadd.f32 %v1252_v62, %v1220_v47  ;;  %v6056_v46 = vld [vmem:[#allocation33_spill] sm:$0xff] }
 0x564   : > { %v2000_v16 = vpop.permute.xlu1 %1999 }
 0x565   : > { %3634 = vpow2.f32 %v2044_v24  ;;  %1285 = vst.msk [vmem:[#allocation3 + $0x78] sm:$0xff] %vm6049_vm2, %v1268_v7  ;;  %v2017_v33 = vsub.f32 %v6050_v22, %v2000_v16  ;;  %v6059_v16 = vld [vmem:[#allocation38_spill] sm:$0xff] }
 0x566   : > { %3636 = vpow2.f32 %v2046_v2  ;;  %v1296_v2 = vld [vmem:[#allocation4 + $0x50] sm:$0xff] }
 0x567   : > { %v2048_v53 = vmul.f32 1.442695, %v2017_v33 }
 0x569   : > { %3638 = vpow2.f32 %v2048_v53 }
 0x56a   : > { %v1310_v39 = vpop.permute.xlu0 %1309 }
 0x56b   : > { %v1383_v18 = vmul.f32 %v1310_v39, %v1287_v9  ;;  %v6061_v9 = vld [vmem:[#allocation37_spill] sm:$0xff] }
 0x56d   : > { %v1552_v5 = vadd.f32 %v6051_v32, %v1383_v18  ;;  %v2051_v18 = vsel %vm4339_vm5, %v5322_v25, 0.0  ;;  %v6063_v32 = vld [vmem:[#allocation55_spill] sm:$0xff]  ;;  %vm6068_vm5 = vmmov %vm6052_vm0 }
 0x56e   : > { %v1325_v1 = vpop.permute.xlu0 %1324  ;;  %v6067_v25 = vld [vmem:[#allocation39_spill] sm:$0xff] }
 0x56f   : > { %v3635_v45 = vpop.eup %3634  ;;  %1568 = vst.msk [vmem:[#allocation4 + $0x8] sm:$0xff] %vm6052_vm0, %v1552_v5  ;;  %v1386_v17 = vmul.f32 %v1325_v1, %v1290_v30  ;;  %v6064_v5 = vsub.f32 %v6063_v32, %v5194_v51  ;;  %v2054_v51 = vsel %vm4375_vm8, %v5339_v0, 0.0  ;;  %vm6071_vm8 = vmmov %vm6052_vm0 }
 0x570   : > { %v3129_v13 = vpack.c.bf16 %v3635_v45, %v3633_v38  ;;  %v3637_v35 = vpop.eup %3636  ;;  %v2063_v7 = vsel %vm5965_vm15, %v3635_v45, 0.0  ;;  %v1300_v45 = vld [vmem:[#allocation4 + $0x70] sm:$0xff]  ;;  %vm6066_vm15 = vmmov %vm6052_vm0  ;;  %v1289_v38 = vld [vmem:[#allocation4 + $0x18] sm:$0xff] }
 0x571   : > { %v1555_v42 = vadd.f32 %v6053_v28, %v1386_v17  ;;  %v1918_v1 = vmul.f32 1.442695, %v6064_v5  ;;  %v6065_v17 = vld [vmem:[#allocation44_spill] sm:$0xff]  ;;  %v2064_v0 = vsel %vm5884_vm3, %v3637_v35, 0.0  ;;  %vm6073_vm3 = vmmov %vm6052_vm0 }
 0x572   : > { %3404 = vmatprep.mubr.msk.bf16.mxu0 %vm6054_vm12, %v3129_v13  ;;  %v1335_v58 = vpop.permute.xlu0 %1334  ;;  %vm6084_vm12 = vmmov %vm6052_vm0 }
 0x573   : > { %v3639_v36 = vpop.eup %3638  ;;  %1571 = vst.msk [vmem:[#allocation4 + $0x20] sm:$0xff] %vm6055_vm4, %v1555_v42  ;;  %v1388_v3 = vmul.f32 %v1335_v58, %v1292_v31  ;;  %v2056_v31 = vsel %vm4360_vm7, %v5359_v50, 0.0  ;;  %3640 = vpow2.f32 %v1918_v1  ;;  %v2058_v50 = vsel %vm5954_vm11, %v5364_v20, 0.0  ;;  %vm6069_vm7 = vmmov %vm6049_vm2 }
 0x574   : > { %v2065_v43 = vsel %vm5885_vm14, %v3639_v36, 0.0  ;;  %v3132_v60 = vpack.c.bf16 %v3639_v36, %v3637_v35  ;;  %vm6062_vm14 = vmmov %vm6052_vm0  ;;  %v1218_v36 = vmul.f32 %v5356_v41, %v962_v26  ;;  %v1920_v20 = vmul.f32 1.442695, %v1889_v40  ;;  %v1288_v35 = vld [vmem:[#allocation4 + $0x10] sm:$0xff]  ;;  %v1301_v26 = vld [vmem:[#allocation4 + $0x78] sm:$0xff] }
 0x575   : > { %v1557_v47 = vadd.f32 %v6056_v46, %v1388_v3  ;;  %2112 = vadd.xlane.f32.xlu0 %v2065_v43  ;;  %v6072_v46 = vld [vmem:[#allocation27_spill] sm:$0xff]  ;;  %vm6075_vm11 = vmmov %vm6052_vm0 }
 0x576   : > { %3405 = vmatmul.mubr.msk.bf16.gmra.mrb[28].mxu0 %vm6057_vm10, %v3132_v60  ;;  %v1345_v62 = vpop.permute.xlu0 %1344  ;;  %3642 = vpow2.f32 %v1920_v20  ;;  %v6070_v60 = vld [vmem:[#allocation29_spill] sm:$0xff]  ;;  %vm6081_vm2 = vmmov %vm6052_vm0 }
 0x577   : > { %1573 = vst.msk [vmem:[#allocation4 + $0x30] sm:$0xff] %vm6058_vm6, %v1557_v47  ;;  %v1390_v24 = vmul.f32 %v1345_v62, %v1294_v52  ;;  %vm6086_vm4 = vmmov %vm6052_vm0 }
 0x578   : > { %vm6087_vm10 = vmmov %vm6069_vm7 }
 0x579   : > { %v1559_v22 = vadd.f32 %v6059_v16, %v1390_v24  ;;  %2108 = vadd.xlane.f32.xlu0 %v2063_v7  ;;  %v6074_v24 = vld [vmem:[#allocation30_spill] sm:$0xff]  ;;  %vm6088_vm6 = vmmov %vm6069_vm7 }
 0x57a   : > { %v1355_v33 = vpop.permute.xlu0 %1354 }
 0x57b   : > { %1575 = vst.msk [vmem:[#allocation4 + $0x40] sm:$0xff] %vm6060_vm9, %v1559_v22  ;;  %v1392_v53 = vmul.f32 %v1355_v33, %v1296_v2  ;;  %v1293_v33 = vld [vmem:[#allocation4 + $0x38] sm:$0xff]  ;;  %vm6089_vm9 = vmmov %vm6088_vm6 }
 0x57d   : > { %v1561_v39 = vadd.f32 %v6061_v9, %v1392_v53  ;;  %v5503_v58 = vpop.eup %3640  ;;  %v6076_v53 = vld [vmem:[#allocation34_spill] sm:$0xff] }
 0x57e   : > { %2084 = vadd.xlane.f32.xlu1 %v2051_v18  ;;  %v1365_v30 = vpop.permute.xlu0 %1364 }
 0x57f   : > { %1577 = vst.msk [vmem:[#allocation4 + $0x50] sm:$0xff] %vm6062_vm14, %v1561_v39  ;;  %v1394_v21 = vmul.f32 %v1365_v30, %v1298_v12  ;;  %v1295_v30 = vld [vmem:[#allocation4 + $0x48] sm:$0xff]  ;;  %vm6090_vm14 = vmmov %vm6088_vm6 }
 0x580   : > { %v5522_v2 = vpop.eup %3642 }
 0x581   : > { %v1563_v13 = vadd.f32 %v6065_v17, %v1394_v21  ;;  %v6078_v21 = vld [vmem:[#allocation32_spill] sm:$0xff] }
 0x582   : > { %2094 = vadd.xlane.f32.xlu1 %v2056_v31  ;;  %v1375_v28 = vpop.permute.xlu0 %1374 }
 0x583   : > { %1579 = vst.msk [vmem:[#allocation4 + $0x60] sm:$0xff] %vm6066_vm15, %v1563_v13  ;;  %v1396_v10 = vmul.f32 %v1375_v28, %v1300_v45  ;;  %v1297_v45 = vld [vmem:[#allocation4 + $0x58] sm:$0xff]  ;;  %vm6091_vm15 = vmmov %vm6088_vm6 }
 0x584   : > { %v6080_v13 = vld [vmem:[#allocation43_spill] sm:$0xff] }
 0x585   : > { %v1565_v42 = vadd.f32 %v6067_v25, %v1396_v10  ;;  %v1299_v25 = vld [vmem:[#allocation4 + $0x68] sm:$0xff] }
 0x586   : > { %2090 = vadd.xlane.f32.xlu1 %v2054_v51  ;;  %v5519_v40 = vpop.permute.xlu0 %2170 }
 0x587   : > { %1581 = vst.msk [vmem:[#allocation4 + $0x70] sm:$0xff] %vm6068_vm5, %v1565_v42  ;;  %v6082_v42 = vld [vmem:[#allocation36_spill] sm:$0xff]  ;;  %vm6092_vm5 = vmmov %vm6088_vm6 }
 0x58a   : > { %2102 = vadd.xlane.f32.xlu1 %v2060_v54  ;;  %v5527_v39 = vpop.permute.xlu0 %2185 }
 0x58e   : > { %2098 = vadd.xlane.f32.xlu1 %v2058_v50  ;;  %v5532_v17 = vpop.permute.xlu0 %2195 }
 0x58f   : > { %2235 = vperm.xlu0 %3490, %v5503_v58  }
 0x592   : > { %2110 = vadd.xlane.f32.xlu1 %v2064_v0  ;;  %v5537_v50 = vpop.permute.xlu0 %2215 }
 0x596   : > { %v1248_v23 = vpop.xlane.xlu1 %1247  ;;  %2106 = vadd.xlane.f32.xlu1 %v2062_v4  ;;  %v5542_v20 = vpop.permute.xlu0 %2205 }
 0x597   : > { %v1266_v3 = vadd.f32 %v1248_v23, %v1218_v36  ;;  %v6083_v36 = vld [vmem:[#allocation46_spill] sm:$0xff] }
 0x599   : > { %1283 = vst.msk [vmem:[#allocation3 + $0x68] sm:$0xff] %vm6069_vm7, %v1266_v3  ;;  %vm6093_vm7 = vmmov %vm6092_vm5 }
 0x59a   : > { %v1305_v43 = vpop.permute.xlu1 %1304 }
 0x59b   : > { %v1382_v61 = vmul.f32 %v1305_v43, %v1286_v6  ;;  %v6085_v6 = vld [vmem:[#allocation45_spill] sm:$0xff] }
 0x59d   : > { %v1551_v52 = vadd.f32 %v6070_v60, %v1382_v61  ;;  %v5546_v61 = vpop.permute.xlu0 %2225 }
 0x59e   : > { %v1315_v41 = vpop.permute.xlu1 %1314 }
 0x59f   : > { %1567 = vst.msk [vmem:[#allocation4] sm:$0xff] %vm6071_vm8, %v1551_v52  ;;  %v1384_v11 = vmul.f32 %v1315_v41, %v1288_v35  ;;  %v1812_v35 = vld [vmem:[#allocation3 + $0x90] sm:$0xff]  ;;  %v1810_v41 = vld [vmem:[#allocation3 + $0x80] sm:$0xff]  ;;  %vm6094_vm8 = vmmov %vm6052_vm0 }
 0x5a0   : > { %v2068_v60 = vmul.f32 %v5407_v8, %v1812_v35 }
 0x5a1   : > { %v1553_v47 = vadd.f32 %v6072_v46, %v1384_v11 }
 0x5a2   : > { %v1320_v62 = vpop.permute.xlu1 %1319 }
 0x5a3   : > { %1569 = vst.msk [vmem:[#allocation4 + $0x10] sm:$0xff] %vm6073_vm3, %v1553_v47  ;;  %v1385_v63 = vmul.f32 %v1320_v62, %v1289_v38  ;;  %v2066_v38 = vmul.f32 %v5392_v55, %v1810_v41  ;;  %v1813_v47 = vld [vmem:[#allocation3 + $0x98] sm:$0xff]  ;;  %vm6095_vm3 = vmmov %vm6092_vm5 }
 0x5a5   : > { %v1554_v7 = vadd.f32 %v6074_v24, %v1385_v63  ;;  %v2069_v63 = vmul.f32 %v5415_v48, %v1813_v47  ;;  %v1817_v24 = vld [vmem:[#allocation3 + $0xb8] sm:$0xff] }
 0x5a6   : > { %v1330_v16 = vpop.permute.xlu1 %1329  ;;  %v2073_v8 = vmul.f32 %v5431_v19, %v1817_v24  ;;  %v1811_v24 = vld [vmem:[#allocation3 + $0x88] sm:$0xff] }
 0x5a7   : > { %1570 = vst.msk [vmem:[#allocation4 + $0x18] sm:$0xff] %vm6075_vm11, %v1554_v7  ;;  %v1387_v22 = vmul.f32 %v1330_v16, %v1291_v27  ;;  %2240 = vperm.xlu1 %3491, %v5522_v2   ;;  %vm6096_vm11 = vmmov %vm6052_vm0 }
 0x5a9   : > { %v1556_v12 = vadd.f32 %v6076_v53, %v1387_v22  ;;  %v1815_v22 = vld [vmem:[#allocation3 + $0xa8] sm:$0xff] }
 0x5aa   : > { %v1340_v9 = vpop.permute.xlu1 %1339  ;;  %v2071_v55 = vmul.f32 %v5423_v37, %v1815_v22 }
 0x5ab   : > { %1572 = vst.msk [vmem:[#allocation4 + $0x28] sm:$0xff] %vm6077_vm1, %v1556_v12  ;;  %v1389_v18 = vmul.f32 %v1340_v9, %v1293_v33  ;;  %v1821_v12 = vld [vmem:[#allocation3 + $0xd8] sm:$0xff]  ;;  %vm6097_vm1 = vmmov %vm6052_vm0 }
 0x5ac   : > { %v2077_v48 = vmul.f32 %v5436_v59, %v1821_v12  ;;  %v1825_v59 = vld [vmem:[#allocation3 + $0xf8] sm:$0xff] }
 0x5ad   : > { %v1558_v32 = vadd.f32 %v6078_v21, %v1389_v18 }
 0x5ae   : > { %v1350_v5 = vpop.permute.xlu1 %1349 }
 0x5af   : > { %1574 = vst.msk [vmem:[#allocation4 + $0x38] sm:$0xff] %vm6079_vm13, %v1558_v32  ;;  %v1391_v1 = vmul.f32 %v1350_v5, %v1295_v30  ;;  %v1819_v30 = vld [vmem:[#allocation3 + $0xc8] sm:$0xff]  ;;  %vm6098_vm13 = vmmov %vm6052_vm0 }
 0x5b0   : > { %v2075_v19 = vmul.f32 %v5441_v14, %v1819_v30  ;;  %v2081_v14 = vmul.f32 %v5522_v2, %v1825_v59  ;;  %v2156_v59 = vld [vmem:[#allocation4 + $0xc8] sm:$0xff] }
 0x5b1   : > { %v1560_v31 = vadd.f32 %v6080_v13, %v1391_v1 }
 0x5b2   : > { %v1360_v28 = vpop.permute.xlu1 %1359 }
 0x5b3   : > { %1576 = vst.msk [vmem:[#allocation4 + $0x48] sm:$0xff] %vm6081_vm2, %v1560_v31  ;;  %v1393_v10 = vmul.f32 %v1360_v28, %v1297_v45  ;;  %vm6099_vm2 = vmmov %vm6095_vm3 }
 0x5b5   : > { %v1562_v51 = vadd.f32 %v6082_v42, %v1393_v10  ;;  %v2149_v10 = vld [vmem:[#allocation4 + $0x90] sm:$0xff]  ;;  %v2150_v42 = vld [vmem:[#allocation4 + $0x98] sm:$0xff] }
 0x5b6   : > { %v1370_v54 = vpop.permute.xlu1 %1369 }
 0x5b7   : > { %1578 = vst.msk [vmem:[#allocation4 + $0x58] sm:$0xff] %vm6052_vm0, %v1562_v51  ;;  %v1395_v0 = vmul.f32 %v1370_v54, %v1299_v25  ;;  %v2147_v25 = vld [vmem:[#allocation4 + $0x80] sm:$0xff]  ;;  %v2148_v51 = vld [vmem:[#allocation4 + $0x88] sm:$0xff] }
 0x5b9   : > { %v1564_v4 = vadd.f32 %v6083_v36, %v1395_v0 }
 0x5ba   : > { %v1380_v23 = vpop.permute.xlu1 %1379 }
 0x5bb   : > { %1580 = vst.msk [vmem:[#allocation4 + $0x68] sm:$0xff] %vm6084_vm12, %v1564_v4  ;;  %v1397_v3 = vmul.f32 %v1380_v23, %v1301_v26  ;;  %v1823_v23 = vld [vmem:[#allocation3 + $0xe8] sm:$0xff]  ;;  %vm6100_vm12 = vmmov %vm6099_vm2 }
 0x5bc   : > { %v2079_v2 = vmul.f32 %v5444_v57, %v1823_v23 }
 0x5bd   : > { %v1566_v43 = vadd.f32 %v6085_v6, %v1397_v3 }
 0x5be   : > { %v2166_v32 = vpop.permute.xlu1 %2165 }
 0x5bf   : > { %1582 = vst.msk [vmem:[#allocation4 + $0x78] sm:$0xff] %vm6086_vm4, %v1566_v43  ;;  %v2243_v26 = vmul.f32 %v2166_v32, %v2147_v25  ;;  %vm6101_vm4 = vmmov %vm6052_vm0 }
 0x5c2   : > { %v2176_v37 = vpop.permute.xlu1 %2175 }
 0x5c3   : > { %v2245_v54 = vmul.f32 %v2176_v37, %v2149_v10 }
 0x5c6   : > { %v2181_v45 = vpop.permute.xlu1 %2180 }
 0x5c7   : > { %v2087_v52 = vpop.xlane.xlu0 %2086  ;;  %v2246_v3 = vmul.f32 %v2181_v45, %v2150_v42  ;;  %v1814_v45 = vld [vmem:[#allocation3 + $0xa0] sm:$0xff] }
 0x5c8   : > { %v2116_v11 = vadd.f32 %v2087_v52, %v2068_v60  ;;  %v2244_v60 = vmul.f32 %v5519_v40, %v2148_v51  ;;  %v2070_v51 = vmul.f32 %v5287_v29, %v1814_v45 }
 0x5ca   : > { %2132 = vst.msk [vmem:[#allocation3 + $0x90] sm:$0xff] %vm6087_vm10, %v2116_v11  ;;  %v2191_v13 = vpop.permute.xlu1 %2190  ;;  %vm6102_vm10 = vmmov %vm6052_vm0 }
 0x5cb   : > { %v2083_v46 = vpop.xlane.xlu0 %2082 }
 0x5cc   : > { %v2114_v62 = vadd.f32 %v2083_v46, %v2066_v38  ;;  %v2153_v46 = vld [vmem:[#allocation4 + $0xb0] sm:$0xff] }
 0x5ce   : > { %2130 = vst.msk [vmem:[#allocation3 + $0x80] sm:$0xff] %vm6088_vm6, %v2114_v62  ;;  %v2201_v31 = vpop.permute.xlu1 %2200  ;;  %vm6103_vm6 = vmmov %vm6052_vm0 }
 0x5cf   : > { %v2089_v27 = vpop.xlane.xlu0 %2088 }
 0x5d0   : > { %v2117_v7 = vadd.f32 %v2089_v27, %v2069_v63  ;;  %v2151_v63 = vld [vmem:[#allocation4 + $0xa0] sm:$0xff] }
 0x5d1   : > { %v2247_v57 = vmul.f32 %v5527_v39, %v2151_v63 }
 0x5d2   : > { %2133 = vst.msk [vmem:[#allocation3 + $0x98] sm:$0xff] %vm6089_vm9, %v2117_v7  ;;  %v5562_v28 = vpop.permute.xlu1 %2220  ;;  %v2154_v7 = vld [vmem:[#allocation4 + $0xb8] sm:$0xff]  ;;  %vm6104_vm9 = vmmov %vm6099_vm2 }
 0x5d3   : > { %v2097_v16 = vpop.xlane.xlu0 %2096 }
 0x5d4   : > { %v2121_v33 = vadd.f32 %v2097_v16, %v2073_v8  ;;  %v2249_v8 = vmul.f32 %v5532_v17, %v2153_v46  ;;  %v2152_v16 = vld [vmem:[#allocation4 + $0xa8] sm:$0xff] }
 0x5d6   : > { %2137 = vst.msk [vmem:[#allocation3 + $0xb8] sm:$0xff] %vm6090_vm14, %v2121_v33  ;;  %v5564_v0 = vpop.permute.xlu1 %2210  ;;  %v2067_v33 = vmul.f32 %v5278_v49, %v1811_v24  ;;  %vm6105_vm14 = vmmov %vm6052_vm0  ;;  %v2159_v24 = vld [vmem:[#allocation4 + $0xe0] sm:$0xff] }
 0x5d7   : > { %v2093_v53 = vpop.xlane.xlu0 %2092 }
 0x5d8   : > { %v2119_v9 = vadd.f32 %v2093_v53, %v2071_v55  ;;  %v2250_v55 = vmul.f32 %v2201_v31, %v2154_v7  ;;  %v2162_v7 = vld [vmem:[#allocation4 + $0xf8] sm:$0xff] }
 0x5da   : > { %2135 = vst.msk [vmem:[#allocation3 + $0xa8] sm:$0xff] %vm6091_vm15, %v2119_v9  ;;  %v5572_v27 = vpop.permute.xlu1 %2230  ;;  %vm6106_vm15 = vmmov %vm6099_vm2 }
 0x5db   : > { %v2105_v18 = vpop.xlane.xlu0 %2104 }
 0x5dc   : > { %v2125_v21 = vadd.f32 %v2105_v18, %v2077_v48  ;;  %v1816_v48 = vld [vmem:[#allocation3 + $0xb0] sm:$0xff]  ;;  %v2248_v18 = vmul.f32 %v2191_v13, %v2152_v16  ;;  %v2158_v13 = vld [vmem:[#allocation4 + $0xd8] sm:$0xff]  ;;  %v2160_v16 = vld [vmem:[#allocation4 + $0xe8] sm:$0xff] }
 0x5dd   : > { %v2072_v49 = vmul.f32 %v5293_v15, %v1816_v48  ;;  %v2254_v15 = vmul.f32 %v5562_v28, %v2158_v13 }
 0x5de   : > { %2141 = vst.msk [vmem:[#allocation3 + $0xd8] sm:$0xff] %vm6092_vm5, %v2125_v21  ;;  %vm6107_vm5 = vmmov %vm6052_vm0 }
 0x5df   : > { %v2101_v5 = vpop.xlane.xlu0 %2100 }
 0x5e0   : > { %v2123_v1 = vadd.f32 %v2101_v5, %v2075_v19  ;;  %v2157_v5 = vld [vmem:[#allocation4 + $0xd0] sm:$0xff] }
 0x5e1   : > { %v2253_v10 = vmul.f32 %v5537_v50, %v2157_v5 }
 0x5e2   : > { %2139 = vst.msk [vmem:[#allocation3 + $0xc8] sm:$0xff] %vm6093_vm7, %v2123_v1  ;;  %v2155_v1 = vld [vmem:[#allocation4 + $0xc0] sm:$0xff]  ;;  %vm6108_vm7 = vmmov %vm6052_vm0 }
 0x5e3   : > { %v2251_v25 = vmul.f32 %v5542_v20, %v2155_v1 }
 0x602   : > { %v3394_v36 = vpop.f32.mrb[16].mxu0  ;;  %v2113_v4 = vpop.xlane.xlu0 %2112 }
 0x603   : > { %v2390_v6 = vadd.f32 %v3394_v36, %v2245_v54  ;;  %v2129_v43 = vadd.f32 %v2113_v4, %v2081_v14  ;;  %v2325_v35 = vpop.f32.mrb[17].mxu0  ;;  %v1820_v36 = vld [vmem:[#allocation3 + $0xd0] sm:$0xff]  ;;  %v2252_v4 = vmul.f32 %v5564_v0, %v2156_v59 }
 0x604   : > { %v2388_v52 = vadd.f32 %v2325_v35, %v2243_v26  ;;  %v3395_v41 = vpop.f32.mrb[18].mxu0  ;;  %v2076_v28 = vmul.f32 %v5296_v44, %v1820_v36  ;;  %v1818_v35 = vld [vmem:[#allocation3 + $0xc0] sm:$0xff] }
 0x605   : > { %2406 = vst.msk [vmem:[#allocation4 + $0x90] sm:$0xff] %vm6094_vm8, %v2390_v6  ;;  %v2391_v11 = vadd.f32 %v3395_v41, %v2246_v3  ;;  %v2328_v38 = vpop.f32.mrb[19].mxu0  ;;  %vm6109_vm8 = vmmov %vm6052_vm0  ;;  %v1824_v41 = vld [vmem:[#allocation3 + $0xf0] sm:$0xff]  ;;  %v1822_v44 = vld [vmem:[#allocation3 + $0xe0] sm:$0xff] }
 0x606   : > { %2145 = vst.msk [vmem:[#allocation3 + $0xf8] sm:$0xff] %vm6095_vm3, %v2129_v43  ;;  %v2389_v47 = vadd.f32 %v2328_v38, %v2244_v60  ;;  %v2109_v62 = vpop.xlane.xlu0 %2108  ;;  %vm6110_vm3 = vmmov %vm6099_vm2  ;;  %v2074_v60 = vmul.f32 %v5300_v34, %v1818_v35  ;;  %v2080_v38 = vmul.f32 %v5503_v58, %v1824_v41  ;;  %v2255_v58 = vmul.f32 %v5546_v61, %v2159_v24 }
 0x607   : > { %2404 = vst.msk [vmem:[#allocation4 + $0x80] sm:$0xff] %vm6096_vm11, %v2388_v52  ;;  %v2127_v40 = vadd.f32 %v2109_v62, %v2079_v2  ;;  %vm6111_vm11 = vmmov %vm6099_vm2 }
 0x608   : > { %2407 = vst.msk [vmem:[#allocation4 + $0x98] sm:$0xff] %vm6097_vm1, %v2391_v11  ;;  %vm6112_vm1 = vmmov %vm6099_vm2 }
 0x609   : > { %2405 = vst.msk [vmem:[#allocation4 + $0x88] sm:$0xff] %vm6098_vm13, %v2389_v47  ;;  %v2078_v47 = vmul.f32 %v5306_v56, %v1822_v44  ;;  %vm6113_vm13 = vmmov %vm6112_vm1 }
 0x60a   : > { %2143 = vst.msk [vmem:[#allocation3 + $0xe8] sm:$0xff] %vm6099_vm2, %v2127_v40  ;;  %v3398_v22 = vpop.f32.mrb[20].mxu0  ;;  %v2161_v40 = vld [vmem:[#allocation4 + $0xf0] sm:$0xff]  ;;  %vm6114_vm2 = vmmov %vm6052_vm0 }
 0x60b   : > { %v2394_v53 = vadd.f32 %v3398_v22, %v2249_v8  ;;  %v2085_v12 = vpop.xlane.xlu1 %2084  ;;  %v2341_v9 = vpop.f32.mrb[21].mxu0 }
 0x60c   : > { %v2115_v30 = vadd.f32 %v2085_v12, %v2067_v33  ;;  %v2392_v21 = vadd.f32 %v2341_v9, %v2247_v57  ;;  %v3399_v32 = vpop.f32.mrb[22].mxu0  ;;  %v2256_v12 = vmul.f32 %v5572_v27, %v2160_v16 }
 0x60d   : > { %2410 = vst.msk [vmem:[#allocation4 + $0xb0] sm:$0xff] %vm6052_vm0, %v2394_v53  ;;  %v2395_v17 = vadd.f32 %v3399_v32, %v2250_v55  ;;  %v2344_v19 = vpop.f32.mrb[23].mxu0 }
 0x60e   : > { %2131 = vst.msk [vmem:[#allocation3 + $0x88] sm:$0xff] %vm6100_vm12, %v2115_v30  ;;  %v2393_v39 = vadd.f32 %v2344_v19, %v2248_v18  ;;  %v2236_v34 = vpop.permute.xlu0 %2235  ;;  %vm6115_vm12 = vmmov %vm6052_vm0 }
 0x60f   : > { %2408 = vst.msk [vmem:[#allocation4 + $0xa0] sm:$0xff] %vm6101_vm4, %v2392_v21  ;;  %v2095_v37 = vpop.xlane.xlu1 %2094  ;;  %v2257_v57 = vmul.f32 %v2236_v34, %v2161_v40  ;;  %vm6116_vm4 = vmmov %vm6052_vm0 }
 0x610   : > { %2411 = vst.msk [vmem:[#allocation4 + $0xb8] sm:$0xff] %vm6102_vm10, %v2395_v17  ;;  %v2120_v31 = vadd.f32 %v2095_v37, %v2072_v49 }
 0x611   : > { %2409 = vst.msk [vmem:[#allocation4 + $0xa8] sm:$0xff] %vm6103_vm6, %v2393_v39 }
 0x612   : > { %2136 = vst.msk [vmem:[#allocation3 + $0xb0] sm:$0xff] %vm6104_vm9, %v2120_v31  ;;  %v3402_v42 = vpop.f32.mrb[24].mxu0 }
 0x613   : > { %v2398_v54 = vadd.f32 %v3402_v42, %v2253_v10  ;;  %v2091_v14 = vpop.xlane.xlu1 %2090  ;;  %v2357_v26 = vpop.f32.mrb[25].mxu0 }
 0x614   : > { %v2118_v23 = vadd.f32 %v2091_v14, %v2070_v51  ;;  %v2396_v3 = vadd.f32 %v2357_v26, %v2251_v25  ;;  %v3403_v6 = vpop.f32.mrb[26].mxu0 }
 0x615   : > { %2414 = vst.msk [vmem:[#allocation4 + $0xd0] sm:$0xff] %vm6105_vm14, %v2398_v54  ;;  %v2399_v50 = vadd.f32 %v3403_v6, %v2254_v15  ;;  %v2360_v20 = vpop.f32.mrb[27].mxu0 }
 0x616   : > { %2134 = vst.msk [vmem:[#allocation3 + $0xa0] sm:$0xff] %vm6106_vm15, %v2118_v23  ;;  %v2397_v29 = vadd.f32 %v2360_v20, %v2252_v4 }
 0x617   : > { %2412 = vst.msk [vmem:[#allocation4 + $0xc0] sm:$0xff] %vm6107_vm5, %v2396_v3  ;;  %v2103_v43 = vpop.xlane.xlu1 %2102 }
 0x618   : > { %2415 = vst.msk [vmem:[#allocation4 + $0xd8] sm:$0xff] %vm6108_vm7, %v2399_v50  ;;  %v2124_v0 = vadd.f32 %v2103_v43, %v2076_v28 }
 0x619   : > { %2413 = vst.msk [vmem:[#allocation4 + $0xc8] sm:$0xff] %vm6109_vm8, %v2397_v29 }
 0x61a   : > { %2140 = vst.msk [vmem:[#allocation3 + $0xd0] sm:$0xff] %vm6110_vm3, %v2124_v0 }
 0x61b   : > { %v2099_v52 = vpop.xlane.xlu1 %2098 }
 0x61c   : > { %v2122_v11 = vadd.f32 %v2099_v52, %v2074_v60 }
 0x61e   : > { %2138 = vst.msk [vmem:[#allocation3 + $0xc0] sm:$0xff] %vm6111_vm11, %v2122_v11 }
 0x61f   : > { %v2111_v2 = vpop.xlane.xlu1 %2110 }
 0x620   : > { %v2128_v46 = vadd.f32 %v2111_v2, %v2080_v38 }
 0x622   : > { %2144 = vst.msk [vmem:[#allocation3 + $0xf0] sm:$0xff] %vm6112_vm1, %v2128_v46 }
 0x623   : > { %v2107_v62 = vpop.xlane.xlu1 %2106 }
 0x624   : > { %v2126_v63 = vadd.f32 %v2107_v62, %v2078_v47 }
 0x626   : > { %2142 = vst.msk [vmem:[#allocation3 + $0xe0] sm:$0xff] %vm6113_vm13, %v2126_v63 }
 0x627   : > { %v2241_v8 = vpop.permute.xlu1 %2240 }
 0x628   : > { %v2258_v33 = vmul.f32 %v2241_v8, %v2162_v7 }
 0x649   : > { %v3406_v22 = vpop.f32.mrb[28].mxu0 }
 0x64a   : > { %v2402_v55 = vadd.f32 %v3406_v22, %v2257_v57  ;;  %v2373_v53 = vpop.f32.mrb[29].mxu0 }
 0x64b   : > { %v2400_v56 = vadd.f32 %v2373_v53, %v2255_v58  ;;  %v3407_v9 = vpop.f32.mrb[30].mxu0 }
 0x64c   : > { %2418 = vst.msk [vmem:[#allocation4 + $0xf0] sm:$0xff] %vm6114_vm2, %v2402_v55  ;;  %v2403_v48 = vadd.f32 %v3407_v9, %v2258_v33  ;;  %v2376_v18 = vpop.f32.mrb[31].mxu0 }
 0x64d   : > { %2416 = vst.msk [vmem:[#allocation4 + $0xe0] sm:$0xff] %vm6052_vm0, %v2400_v56  ;;  %v2401_v30 = vadd.f32 %v2376_v18, %v2256_v12 }
 0x64e   : > { %2419 = vst.msk [vmem:[#allocation4 + $0xf8] sm:$0xff] %vm6115_vm12, %v2403_v48 }
 0x64f   : > { %2417 = vst.msk [vmem:[#allocation4 + $0xe8] sm:$0xff] %vm6116_vm4, %v2401_v30 }
 0x650 PF: > { %p3134_p9 = scmp.ne.s32.totalorder %s3840_s27, 1 }
 0x651   : > { %v2442_v61 = vld [vmem:[#allocation3 + $0x10] sm:$0xff] (!%p3134_p9)  ;;  %v2440_v21 = vld [vmem:[#allocation3] sm:$0xff] (!%p3134_p9)  ;;  %v2443_v27 = vld [vmem:[#allocation3 + $0x18] sm:$0xff] (!%p3134_p9)  ;;  %v3866_v32 = vmov (!%p3134_p9), 0   ;;  %s3867_s27 = smov (!%p3134_p9), 64   ;;  %vm2794_vm10 = vcmask (!%p3134_p9), 523264  }
 0x652   : > { %2439 = sbr.rel (%p3134_p9) target bundleno = 1927 (0x787), region = 93  ;;  %3647 = vset.pattern.permute.xlu1 (!%p3134_p9), %v3866_v32  ;;  %3646 = vset.pattern.permute.xlu0 (!%p3134_p9), %v3866_v32  ;;  %3688 = vrcp.f32 (!%p3134_p9), %v2442_v61  ;;  %v2441_v17 = vld [vmem:[#allocation3 + $0x8] sm:$0xff] (!%p3134_p9)  ;;  %v2444_v5 = vld [vmem:[#allocation3 + $0x20] sm:$0xff] (!%p3134_p9)  ;;  %v2447_v39 = vld [vmem:[#allocation3 + $0x38] sm:$0xff] (!%p3134_p9) }
 0x653   : > { %3690 = vrcp.f32 (!%p3134_p9), %v2440_v21  ;;  %v2445_v19 = vld [vmem:[#allocation3 + $0x28] sm:$0xff] (!%p3134_p9)  ;;  %v2446_v49 = vld [vmem:[#allocation3 + $0x30] sm:$0xff] (!%p3134_p9)  ;;  %v2585_v31 = vld [vmem:[#allocation3 + $0x80] sm:$0xff] (!%p3134_p9) }
 0x654   : > { %3692 = vrcp.f32 (!%p3134_p9), %v2443_v27  ;;  %v2586_v45 = vld [vmem:[#allocation3 + $0x88] sm:$0xff] (!%p3134_p9)  ;;  %v2588_v59 = vld [vmem:[#allocation3 + $0x98] sm:$0xff] (!%p3134_p9)  ;;  %v2587_v42 = vld [vmem:[#allocation3 + $0x90] sm:$0xff] (!%p3134_p9) }
 0x655   : > { %3694 = vrcp.f32 (!%p3134_p9), %v2441_v17  ;;  %v2590_v15 = vld [vmem:[#allocation3 + $0xa8] sm:$0xff] (!%p3134_p9)  ;;  %v2589_v14 = vld [vmem:[#allocation3 + $0xa0] sm:$0xff] (!%p3134_p9)  ;;  %v2592_v36 = vld [vmem:[#allocation3 + $0xb8] sm:$0xff] (!%p3134_p9) }
 0x656   : > { %3696 = vrcp.f32 (!%p3134_p9), %v2445_v19  ;;  %v2591_v23 = vld [vmem:[#allocation3 + $0xb0] sm:$0xff] (!%p3134_p9)  ;;  %v2594_v6 = vld [vmem:[#allocation3 + $0xc8] sm:$0xff] (!%p3134_p9)  ;;  %v2593_v20 = vld [vmem:[#allocation3 + $0xc0] sm:$0xff] (!%p3134_p9) }
 0x657   : > { %3698 = vrcp.f32 (!%p3134_p9), %v2444_v5  ;;  %v2596_v28 = vld [vmem:[#allocation3 + $0xd8] sm:$0xff] (!%p3134_p9)  ;;  %v2595_v35 = vld [vmem:[#allocation3 + $0xd0] sm:$0xff] (!%p3134_p9)  ;;  %v2598_v60 = vld [vmem:[#allocation3 + $0xe8] sm:$0xff] (!%p3134_p9) }
 0x658   : > { %3700 = vrcp.f32 (!%p3134_p9), %v2447_v39  ;;  %v2597_v41 = vld [vmem:[#allocation3 + $0xe0] sm:$0xff] (!%p3134_p9)  ;;  %v2600_v38 = vld [vmem:[#allocation3 + $0xf8] sm:$0xff] (!%p3134_p9)  ;;  %v2599_v44 = vld [vmem:[#allocation3 + $0xf0] sm:$0xff] (!%p3134_p9) }
 0x659   : > { %3702 = vrcp.f32 %v2446_v49  ;;  %v2449_v47 = vld [vmem:[#allocation3 + $0x48] sm:$0xff]  ;;  %v2448_v63 = vld [vmem:[#allocation3 + $0x40] sm:$0xff]  ;;  %v2451_v34 = vld [vmem:[#allocation3 + $0x58] sm:$0xff] }
 0x65a   : > { %3704 = vrcp.f32 %v2586_v45  ;;  %v2450_v7 = vld [vmem:[#allocation3 + $0x50] sm:$0xff]  ;;  %v2453_v16 = vld [vmem:[#allocation3 + $0x68] sm:$0xff]  ;;  %v2452_v58 = vld [vmem:[#allocation3 + $0x60] sm:$0xff] }
 0x65b   : > { %3706 = vrcp.f32 %v2585_v31  ;;  %v2455_v33 = vld [vmem:[#allocation3 + $0x78] sm:$0xff]  ;;  %v2454_v53 = vld [vmem:[#allocation3 + $0x70] sm:$0xff] }
 0x65c   : > { %v3689_v1 = vpop.eup %3688  ;;  %3708 = vrcp.f32 %v2588_v59  ;;  %v2621_v59 = vld [vmem:[#allocation4 + $0x98] sm:$0xff] }
 0x65d   : > { %v3691_v37 = vpop.eup %3690  ;;  %2500 = vperm.xlu1 %3647, %v3689_v1   ;;  %3710 = vrcp.f32 %v2587_v42  ;;  %v2619_v1 = vld [vmem:[#allocation4 + $0x88] sm:$0xff] }
 0x65e   : > { %v3693_v13 = vpop.eup %3692  ;;  %2490 = vperm.xlu0 %3646, %v3691_v37   ;;  %3712 = vrcp.f32 %v2590_v15  ;;  %v2618_v37 = vld [vmem:[#allocation4 + $0x80] sm:$0xff] }
 0x65f   : > { %v3695_v10 = vpop.eup %3694  ;;  %3714 = vrcp.f32 %v2589_v14 }
 0x660   : > { %v3697_v25 = vpop.eup %3696  ;;  %3716 = vrcp.f32 %v2592_v36  ;;  %v2622_v36 = vld [vmem:[#allocation4 + $0xa0] sm:$0xff] }
 0x661   : > { %2505 = vperm.xlu1 %3647, %v3693_v13   ;;  %v3699_v51 = vpop.eup %3698  ;;  %3718 = vrcp.f32 %v2591_v23 }
 0x662   : > { %2495 = vperm.xlu0 %3646, %v3695_v10   ;;  %v3701_v54 = vpop.eup %3700  ;;  %3720 = vrcp.f32 %v2594_v6 }
 0x663   : > { %v3703_v26 = vpop.eup %3702  ;;  %3722 = vrcp.f32 %v2593_v20  ;;  %v2625_v20 = vld [vmem:[#allocation4 + $0xb8] sm:$0xff] }
 0x664   : > { %v3705_v4 = vpop.eup %3704  ;;  %3724 = vrcp.f32 %v2596_v28 }
 0x665   : > { %2515 = vperm.xlu1 %3647, %v3697_v25   ;;  %v3707_v3 = vpop.eup %3706  ;;  %3726 = vrcp.f32 %v2595_v35  ;;  %v2620_v25 = vld [vmem:[#allocation4 + $0x90] sm:$0xff] }
 0x666   : > { %2510 = vperm.xlu0 %3646, %v3699_v51   ;;  %v3709_v50 = vpop.eup %3708  ;;  %3728 = vrcp.f32 %v2598_v60 }
 0x667   : > { %v3711_v29 = vpop.eup %3710  ;;  %3730 = vrcp.f32 %v2597_v41  ;;  %v2626_v41 = vld [vmem:[#allocation4 + $0xc0] sm:$0xff] }
 0x668   : > { %v3713_v43 = vpop.eup %3712  ;;  %3732 = vrcp.f32 %v2600_v38 }
 0x669   : > { %2525 = vperm.xlu1 %3647, %v3701_v54   ;;  %v3715_v0 = vpop.eup %3714  ;;  %3734 = vrcp.f32 %v2599_v44 }
 0x66a   : > { %2520 = vperm.xlu0 %3646, %v3703_v26   ;;  %v3717_v52 = vpop.eup %3716  ;;  %3736 = vrcp.f32 %v2449_v47  ;;  %v2623_v26 = vld [vmem:[#allocation4 + $0xa8] sm:$0xff]  ;;  %v2629_v47 = vld [vmem:[#allocation4 + $0xd8] sm:$0xff] }
 0x66b   : > { %v3719_v11 = vpop.eup %3718  ;;  %3738 = vrcp.f32 %v2448_v63 }
 0x66c   : > { %v3721_v2 = vpop.eup %3720  ;;  %3740 = vrcp.f32 %v2451_v34 }
 0x66d   : > { %2641 = vperm.xlu1 %3647, %v3705_v4   ;;  %v3723_v46 = vpop.eup %3722  ;;  %3742 = vrcp.f32 %v2450_v7 }
 0x66e   : > { %2636 = vperm.xlu0 %3646, %v3707_v3   ;;  %v3725_v62 = vpop.eup %3724  ;;  %3744 = vrcp.f32 %v2453_v16  ;;  %v2630_v16 = vld [vmem:[#allocation4 + $0xe0] sm:$0xff] }
 0x66f   : > { %v3727_v40 = vpop.eup %3726  ;;  %3746 = vrcp.f32 %v2452_v58 }
 0x670   : > { %v3729_v24 = vpop.eup %3728  ;;  %3748 = vrcp.f32 %v2455_v33 }
 0x671   : > { %2651 = vperm.xlu1 %3647, %v3709_v50   ;;  %v3731_v8 = vpop.eup %3730  ;;  %3750 = vrcp.f32 %v2454_v53  ;;  %v2633_v53 = vld [vmem:[#allocation4 + $0xf8] sm:$0xff] }
 0x672   : > { %2646 = vperm.xlu0 %3646, %v3711_v29   ;;  %v3733_v57 = vpop.eup %3732  ;;  %v2624_v29 = vld [vmem:[#allocation4 + $0xb0] sm:$0xff] }
 0x673   : > { %v3735_v22 = vpop.eup %3734 }
 0x674   : > { %v3737_v55 = vpop.eup %3736 }
 0x675   : > { %2661 = vperm.xlu1 %3647, %v3713_v43   ;;  %v3739_v12 = vpop.eup %3738 }
 0x676   : > { %2656 = vperm.xlu0 %3646, %v3715_v0   ;;  %v3741_v56 = vpop.eup %3740 }
 0x677   : > { %v3743_v9 = vpop.eup %3742 }
 0x678   : > { %v3745_v48 = vpop.eup %3744 }
 0x679   : > { %2671 = vperm.xlu1 %3647, %v3717_v52   ;;  %v3747_v18 = vpop.eup %3746  ;;  %v2627_v52 = vld [vmem:[#allocation4 + $0xc8] sm:$0xff] }
 0x67a   : > { %2666 = vperm.xlu0 %3646, %v3719_v11   ;;  %v3749_v30 = vpop.eup %3748 }
 0x67b   : > { %v3751_v61 = vpop.eup %3750 }
 0x67d   : > { %2681 = vperm.xlu1 %3647, %v3721_v2  }
 0x67e   : > { %2676 = vperm.xlu0 %3646, %v3723_v46  }
 0x681   : > { %2691 = vperm.xlu1 %3647, %v3725_v62   ;;  %v2628_v62 = vld [vmem:[#allocation4 + $0xd0] sm:$0xff] }
 0x682   : > { %2686 = vperm.xlu0 %3646, %v3727_v40  }
 0x685   : > { %2701 = vperm.xlu1 %3647, %v3729_v24  }
 0x686   : > { %2696 = vperm.xlu0 %3646, %v3731_v8   ;;  %v2631_v8 = vld [vmem:[#allocation4 + $0xe8] sm:$0xff] }
 0x689   : > { %2711 = vperm.xlu1 %3647, %v3733_v57  }
 0x68a   : > { %2706 = vperm.xlu0 %3646, %v3735_v22  }
 0x68d   : > { %2535 = vperm.xlu1 %3647, %v3737_v55  }
 0x68e   : > { %2530 = vperm.xlu0 %3646, %v3739_v12   ;;  %v2632_v12 = vld [vmem:[#allocation4 + $0xf0] sm:$0xff] }
 0x691   : > { %2545 = vperm.xlu1 %3647, %v3741_v56  }
 0x692   : > { %2540 = vperm.xlu0 %3646, %v3743_v9  }
 0x695   : > { %2555 = vperm.xlu1 %3647, %v3745_v48  }
 0x696   : > { %2550 = vperm.xlu0 %3646, %v3747_v18  }
 0x699   : > { %2565 = vperm.xlu1 %3647, %v3749_v30  }
 0x69a   : > { %2560 = vperm.xlu0 %3646, %v3751_v61  }
 0x6dc   : > { %v5612_v21 = vpop.permute.xlu1 %2500 }
 0x6dd   : > { %v5614_v27 = vpop.permute.xlu0 %2490 }
 0x6e0   : > { %v5616_v32 = vpop.permute.xlu1 %2505 }
 0x6e1   : > { %v5618_v17 = vpop.permute.xlu0 %2495 }
 0x6e4   : > { %v5620_v19 = vpop.permute.xlu1 %2515 }
 0x6e5   : > { %v5622_v5 = vpop.permute.xlu0 %2510 }
 0x6e8   : > { %v5624_v39 = vpop.permute.xlu1 %2525 }
 0x6e9   : > { %v5626_v49 = vpop.permute.xlu0 %2520 }
 0x6ec   : > { %v2642_v45 = vpop.permute.xlu1 %2641 }
 0x6ed   : > { %v2715_v13 = vmul.f32 %v2642_v45, %v2619_v1  ;;  %v2637_v31 = vpop.permute.xlu0 %2636 }
 0x6ee   : > { %v2714_v10 = vmul.f32 %v2637_v31, %v2618_v37 }
 0x6f0   : > { %v3648_v42 = vpack.i.bf16 %v2715_v13, %v2714_v10  ;;  %v2652_v51 = vpop.permute.xlu1 %2651 }
 0x6f1   : > { %v2717_v15 = vmul.f32 %v2652_v51, %v2621_v59  ;;  %v2647_v54 = vpop.permute.xlu0 %2646 }
 0x6f2   : > { %v2716_v14 = vmul.f32 %v2647_v54, %v2620_v25  ;;  %3649 = vrot.lane.b32.xlu0 %v3648_v42, %s3867_s27  ;;  %v2472_v25 = vld [vmem:[#allocation4] sm:$0xff]  ;;  %v2473_v42 = vld [vmem:[#allocation4 + $0x8] sm:$0xff] }
 0x6f3   : > { %v2568_v54 = vmul.f32 %v5614_v27, %v2472_v25  ;;  %v2484_v25 = vld [vmem:[#allocation4 + $0x60] sm:$0xff] }
 0x6f4   : > { %v3653_v4 = vpack.i.bf16 %v2717_v15, %v2716_v14  ;;  %v2662_v23 = vpop.permute.xlu1 %2661  ;;  %v2569_v14 = vmul.f32 %v5618_v17, %v2473_v42 }
 0x6f5   : > { %v2719_v3 = vmul.f32 %v2662_v23, %v2623_v26  ;;  %v2657_v6 = vpop.permute.xlu0 %2656  ;;  %v2475_v23 = vld [vmem:[#allocation4 + $0x18] sm:$0xff] }
 0x6f6   : > { %v2718_v50 = vmul.f32 %v2657_v6, %v2622_v36  ;;  %3654 = vrot.lane.b32.xlu1 %v3653_v4, %s3867_s27  ;;  %v2474_v4 = vld [vmem:[#allocation4 + $0x10] sm:$0xff] }
 0x6f8   : > { %v3658_v28 = vpack.i.bf16 %v2719_v3, %v2718_v50  ;;  %v2672_v43 = vpop.permute.xlu1 %2671 }
 0x6f9   : > { %v2721_v35 = vmul.f32 %v2672_v43, %v2625_v20  ;;  %v2667_v0 = vpop.permute.xlu0 %2666 }
 0x6fa   : > { %v2720_v60 = vmul.f32 %v2667_v0, %v2624_v29  ;;  %3659 = vrot.lane.b32.xlu0 %v3658_v28, %s3867_s27  ;;  %v2570_v29 = vmul.f32 %v5612_v21, %v2474_v4  ;;  %v2571_v28 = vmul.f32 %v5616_v32, %v2475_v23  ;;  %v2476_v0 = vld [vmem:[#allocation4 + $0x20] sm:$0xff]  ;;  %v2479_v32 = vld [vmem:[#allocation4 + $0x38] sm:$0xff]  ;;  %v2486_v23 = vld [vmem:[#allocation4 + $0x70] sm:$0xff] }
 0x6fc   : > { %v3663_v11 = vpack.i.bf16 %v2721_v35, %v2720_v60  ;;  %v2682_v38 = vpop.permute.xlu1 %2681  ;;  %v2477_v35 = vld [vmem:[#allocation4 + $0x28] sm:$0xff] }
 0x6fd   : > { %v2723_v2 = vmul.f32 %v2682_v38, %v2627_v52  ;;  %v2677_v44 = vpop.permute.xlu0 %2676  ;;  %v2572_v38 = vmul.f32 %v5622_v5, %v2476_v0  ;;  %v2481_v5 = vld [vmem:[#allocation4 + $0x48] sm:$0xff] }
 0x6fe   : > { %v2722_v46 = vmul.f32 %v2677_v44, %v2626_v41  ;;  %3664 = vrot.lane.b32.xlu1 %v3663_v11, %s3867_s27  ;;  %v2573_v11 = vmul.f32 %v5620_v19, %v2477_v35  ;;  %v2478_v44 = vld [vmem:[#allocation4 + $0x30] sm:$0xff] }
 0x700   : > { %v3668_v63 = vpack.i.bf16 %v2723_v2, %v2722_v46  ;;  %v2692_v40 = vpop.permute.xlu1 %2691 }
 0x701   : > { %v2725_v34 = vmul.f32 %v2692_v40, %v2629_v47  ;;  %v2687_v24 = vpop.permute.xlu0 %2686  ;;  %v2575_v40 = vmul.f32 %v5624_v39, %v2479_v32  ;;  %v2483_v39 = vld [vmem:[#allocation4 + $0x58] sm:$0xff] }
 0x702   : > { %v2724_v7 = vmul.f32 %v2687_v24, %v2628_v62  ;;  %3669 = vrot.lane.b32.xlu0 %v3668_v63, %s3867_s27 }
 0x704   : > { %v3673_v57 = vpack.i.bf16 %v2725_v34, %v2724_v7  ;;  %v2702_v58 = vpop.permute.xlu1 %2701  ;;  %v2574_v34 = vmul.f32 %v5626_v49, %v2478_v44  ;;  %v2480_v7 = vld [vmem:[#allocation4 + $0x40] sm:$0xff] }
 0x705   : > { %v2727_v22 = vmul.f32 %v2702_v58, %v2631_v8  ;;  %v2697_v33 = vpop.permute.xlu0 %2696 }
 0x706   : > { %v2726_v55 = vmul.f32 %v2697_v33, %v2630_v16  ;;  %3674 = vrot.lane.b32.xlu1 %v3673_v57, %s3867_s27 }
 0x708   : > { %v3678_v56 = vpack.i.bf16 %v2727_v22, %v2726_v55  ;;  %v2712_v9 = vpop.permute.xlu1 %2711 }
 0x709   : > { %v2729_v48 = vmul.f32 %v2712_v9, %v2633_v53  ;;  %v2707_v18 = vpop.permute.xlu0 %2706 }
 0x70a   : > { %v2728_v30 = vmul.f32 %v2707_v18, %v2632_v12  ;;  %3679 = vrot.lane.b32.xlu0 %v3678_v56, %s3867_s27  ;;  %v2482_v12 = vld [vmem:[#allocation4 + $0x50] sm:$0xff] }
 0x70c   : > { %v3683_v61 = vpack.i.bf16 %v2729_v48, %v2728_v30  ;;  %v2536_v37 = vpop.permute.xlu1 %2535 }
 0x70d   : > { %v2531_v1 = vpop.permute.xlu0 %2530  ;;  %v2577_v22 = vmul.f32 %v2536_v37, %v2481_v5 }
 0x70e   : > { %3684 = vrot.lane.b32.xlu1 %v3683_v61, %s3867_s27  ;;  %v2576_v33 = vmul.f32 %v2531_v1, %v2480_v7  ;;  %v2485_v1 = vld [vmem:[#allocation4 + $0x68] sm:$0xff] }
 0x710   : > { %v5638_v13 = vpop.permute.xlu1 %2545 }
 0x711   : > { %v5636_v45 = vpop.permute.xlu0 %2540  ;;  %v2579_v18 = vmul.f32 %v5638_v13, %v2483_v39 }
 0x712   : > { %v2578_v30 = vmul.f32 %v5636_v45, %v2482_v12  ;;  %v2487_v45 = vld [vmem:[#allocation4 + $0x78] sm:$0xff] }
 0x714   : > { %v5642_v10 = vpop.permute.xlu1 %2555 }
 0x715   : > { %v5640_v31 = vpop.permute.xlu0 %2550 }
 0x718   : > { %v5646_v51 = vpop.permute.xlu1 %2565 }
 0x719   : > { %v5644_v59 = vpop.permute.xlu0 %2560 }
 0x764   : > { %v3650_v15 = vpop.permute.xlu0 %3649 }
 0x765   : > { %v3652_v26 = vunpack.i.h.bf16 %v3650_v15  ;;  %v3651_v36 = vunpack.i.l.bf16 %v3650_v15 }
 0x767   : > { %v2796_v3 = vsel %vm2794_vm10, %v2569_v14, %v3652_v26  ;;  %v2795_v6 = vsel %vm2794_vm10, %v2568_v54, %v3651_v36  ;;  %v2581_v26 = vmul.f32 %v5642_v10, %v2485_v1  ;;  %v2580_v36 = vmul.f32 %v5640_v31, %v2484_v25 }
 0x768   : > { %v3172_v50 = vpack.c.bf16 %v2796_v3, %v2795_v6  ;;  %v3655_v20 = vpop.permute.xlu1 %3654 }
 0x769   : > { %v3657_v43 = vunpack.i.h.bf16 %v3655_v20  ;;  %v3656_v27 = vunpack.i.l.bf16 %v3655_v20 }
 0x76a   : > { %3173 = vst [vmem:[%s4027_s21] sm:$0xff] %v3172_v50  }
 0x76b   : > { %v2798_v17 = vsel %vm2794_vm10, %v2571_v28, %v3657_v43  ;;  %v2797_v60 = vsel %vm2794_vm10, %v2570_v29, %v3656_v27  ;;  %v2583_v29 = vmul.f32 %v5646_v51, %v2487_v45  ;;  %v2582_v28 = vmul.f32 %v5644_v59, %v2486_v23 }
 0x76c   : > { %v3177_v52 = vpack.c.bf16 %v2798_v17, %v2797_v60  ;;  %v3660_v41 = vpop.permute.xlu0 %3659 }
 0x76d   : > { %v3662_v21 = vunpack.i.h.bf16 %v3660_v41  ;;  %v3661_v2 = vunpack.i.l.bf16 %v3660_v41 }
 0x76e   : > { %3209 = vst [vmem:[%s4027_s21 + $0x8] sm:$0xff] %v3177_v52  }
 0x76f   : > { %v2800_v46 = vsel %vm2794_vm10, %v2573_v11, %v3662_v21  ;;  %v2799_v47 = vsel %vm2794_vm10, %v2572_v38, %v3661_v2 }
 0x770   : > { %v3182_v62 = vpack.c.bf16 %v2800_v46, %v2799_v47  ;;  %v3665_v63 = vpop.permute.xlu1 %3664 }
 0x771   : > { %v3667_v19 = vunpack.i.h.bf16 %v3665_v63  ;;  %v3666_v24 = vunpack.i.l.bf16 %v3665_v63 }
 0x772   : > { %3210 = vst [vmem:[%s4027_s21 + $0x10] sm:$0xff] %v3182_v62  }
 0x773   : > { %v2802_v8 = vsel %vm2794_vm10, %v2575_v40, %v3667_v19  ;;  %v2801_v16 = vsel %vm2794_vm10, %v2574_v34, %v3666_v24 }
 0x774   : > { %v3187_v57 = vpack.c.bf16 %v2802_v8, %v2801_v16  ;;  %v3670_v58 = vpop.permute.xlu0 %3669 }
 0x775   : > { %v3672_v55 = vunpack.i.h.bf16 %v3670_v58  ;;  %v3671_v53 = vunpack.i.l.bf16 %v3670_v58 }
 0x776   : > { %3211 = vst [vmem:[%s4027_s21 + $0x18] sm:$0xff] %v3187_v57  }
 0x777   : > { %v2804_v49 = vsel %vm2794_vm10, %v2577_v22, %v3672_v55  ;;  %v2803_v56 = vsel %vm2794_vm10, %v2576_v33, %v3671_v53 }
 0x778   : > { %v3192_v9 = vpack.c.bf16 %v2804_v49, %v2803_v56  ;;  %v3675_v48 = vpop.permute.xlu1 %3674 }
 0x779   : > { %v3677_v61 = vunpack.i.h.bf16 %v3675_v48  ;;  %v3676_v37 = vunpack.i.l.bf16 %v3675_v48 }
 0x77a   : > { %3212 = vst [vmem:[%s4027_s21 + $0x20] sm:$0xff] %v3192_v9  }
 0x77b   : > { %v2806_v42 = vsel %vm2794_vm10, %v2579_v18, %v3677_v61  ;;  %v2805_v15 = vsel %vm2794_vm10, %v2578_v30, %v3676_v37 }
 0x77c   : > { %v3197_v54 = vpack.c.bf16 %v2806_v42, %v2805_v15  ;;  %v3680_v14 = vpop.permute.xlu0 %3679 }
 0x77d   : > { %v3682_v13 = vunpack.i.h.bf16 %v3680_v14  ;;  %v3681_v4 = vunpack.i.l.bf16 %v3680_v14 }
 0x77e   : > { %3213 = vst [vmem:[%s4027_s21 + $0x28] sm:$0xff] %v3197_v54  }
 0x77f   : > { %v2808_v3 = vsel %vm2794_vm10, %v2581_v26, %v3682_v13  ;;  %v2807_v6 = vsel %vm2794_vm10, %v2580_v36, %v3681_v4 }
 0x780   : > { %v3202_v50 = vpack.c.bf16 %v2808_v3, %v2807_v6  ;;  %v3685_v20 = vpop.permute.xlu1 %3684 }
 0x781   : > { %v3687_v43 = vunpack.i.h.bf16 %v3685_v20  ;;  %v3686_v10 = vunpack.i.l.bf16 %v3685_v20 }
 0x782   : > { %3214 = vst [vmem:[%s4027_s21 + $0x30] sm:$0xff] %v3202_v50  }
 0x783   : > { %v2810_v31 = vsel %vm2794_vm10, %v2583_v29, %v3687_v43  ;;  %v2809_v27 = vsel %vm2794_vm10, %v2582_v28, %v3686_v10 }
 0x784   : > { %v3207_v35 = vpack.c.bf16 %v2810_v31, %v2809_v27 }
 0x786   : > { %3215 = vst [vmem:[%s4027_s21 + $0x38] sm:$0xff] %v3207_v35  }
 0x787 PF: > { %s37_s10 = sadd.s32 1, %s3856_s10   ;;  %s6117_s3 = smov %s3836_s26 }
 0x788   : > { %p34_p10 = scmp.ge.s32.totalorder %s37_s10, 6   ;;  %s6118_s26 = smov %s3979_s15 }
 0x789   : > { %s6119_s27 = smov %s3848_s29  ;;  %s6120_s28 = smov %s3852_s30 }
 0x78a   : > { %s6121_s29 = smov %s6124_s11  ;;  %s6122_s30 = smov %s6128_s12 }
 0x78b   :  { %36 = sbr.rel (!%p34_p10) target bundleno = 51 (0x33), region = 145 }

</bundles_post_ra>
